<compile_context>
chip_gen: v7x
topology: tpu7x:2x2x1
jax: 0.10.0
libtpu: 0.0.40
codegen_flags: <defaults>
</compile_context>

<pallas_src>
import functools

import jax
import jax.numpy as jnp
import numpy as np
from jax.experimental import pallas as pl
from jax.experimental.pallas import tpu as pltpu

SQRT2_INV = float(1.0 / np.sqrt(2.0))
# The torch module constructs nn.LayerNorm(context_dim, eps=1e-06) explicitly.
LN_EPS = 1e-6


def _merger_kernel(x_ref, g_ref, bt_ref, w1_ref, b1_ref, w2_ref, b2_ref,
                   o_ref, *scratch, sm2, acc_into_out):
    # Block shapes (tm = row tile, C = context dim, K = sm2*C, th = hidden
    # tile, D = out dim):
    #   x_ref : (1, tm, K)   native dtype (f32 here)  one row block of one
    #                        stream, merged-token layout
    #   g_ref / bt_ref : (1, 1, C)  f32  per-stream LayerNorm gamma / beta
    #   w1_ref: (1, K, th)   bf16  column tile of W1^T
    #   b1_ref: (1, 1, th)   f32
    #   w2_ref: (1, th, D)   bf16  row tile of W2^T
    #   b2_ref: (1, 1, D)    f32
    #   o_ref : (tm, D)      resident across the h axis (constant block idx)
    #   scratch[0] (xn_ref): (tm, K) bf16  normalized block, reused across h
    #   scratch[1] (acc)   : (tm, D) f32   only when out dtype != f32
    xn_ref = scratch[0]
    acc_ref = o_ref if acc_into_out else scratch[1]

    h_idx = pl.program_id(2)
    n_h = pl.num_programs(2)
    C = g_ref.shape[-1]

    @pl.when(h_idx == 0)
    def _init():
        g = g_ref[0].astype(jnp.float32)        # (1, C)
        b = bt_ref[0].astype(jnp.float32)       # (1, C)
        x_view = x_ref.at[0]                    # (tm, K) ref view, no load
        # LayerNorm over each C-chunk, written straight into xn_ref so only
        # one (tm, C) f32 chunk is ever live (no (tm, K) f32 temporaries).
        for j in range(sm2):
            xj = x_view[:, j * C:(j + 1) * C].astype(jnp.float32)
            mu = jnp.mean(xj, axis=-1, keepdims=True)
            var = jnp.mean(jnp.square(xj - mu), axis=-1, keepdims=True)
            xn = (xj - mu) * jax.lax.rsqrt(var + LN_EPS) * g + b
            xn_ref[:, j * C:(j + 1) * C] = xn.astype(xn_ref.dtype)
        # Initialize the accumulator with the (broadcast) output bias; adding
        # it up-front is mathematically identical to adding it at the end.
        acc_ref[...] = jnp.broadcast_to(
            b2_ref[0].astype(acc_ref.dtype), acc_ref.shape)

    # First Linear: single K = sm2*C contraction (bf16 MXU, f32 accumulation).
    h1 = jnp.dot(xn_ref[...], w1_ref[0], preferred_element_type=jnp.float32)
    h1 = h1 + b1_ref[0].astype(jnp.float32)
    # Exact (erf-based) GELU, matching torch.nn.GELU() default.
    h1 = 0.5 * h1 * (1.0 + jax.lax.erf(h1 * SQRT2_INV))

    # Second Linear, accumulated over hidden tiles.
    contrib = jnp.dot(h1.astype(w2_ref.dtype), w2_ref[0],
                      preferred_element_type=jnp.float32)
    if acc_into_out:
        # Output block is resident across h (constant block index) -> safe.
        o_ref[...] += contrib
    else:
        acc_ref[...] += contrib

        @pl.when(h_idx == n_h - 1)
        def _finalize():
            o_ref[...] = acc_ref[...].astype(o_ref.dtype)


def _run_streams(xs, gamma, beta, w1, b1, w2, b2, *, sm2, tm, th,
                 out_dtype, compute_dtype, vmem_limit):
    """Run the merger kernel for a batch of streams.

    xs: (n, Mp, K) activations (native dtype), K = sm2*C, Mp % tm == 0;
    per-stream weights stacked along the leading axis.
    Returns (Mp, n*D) with stream s occupying columns [s*D, (s+1)*D).
    """
    n, Mp, K = xs.shape
    C = gamma.shape[-1]
    H = w1.shape[-1]
    D = w2.shape[-1]
    assert K == sm2 * C, (K, sm2, C)
    assert Mp % tm == 0, (Mp, tm)
    assert H % th == 0, (H, th)
    # Deepstack output columns are lane-sliced per stream.
    assert n == 1 or D % 128 == 0, (n, D)

    grid = (n, Mp // tm, H // th)
    acc_into_out = (jnp.dtype(out_dtype) == jnp.dtype(jnp.float32))

    scratch = [pltpu.VMEM((tm, K), compute_dtype)]        # normalized block
    if not acc_into_out:
        scratch.append(pltpu.VMEM((tm, D), jnp.float32))  # accumulator

    kernel = functools.partial(_merger_kernel, sm2=sm2,
                               acc_into_out=acc_into_out)
    return pl.pallas_call(
        kernel,
        out_shape=jax.ShapeDtypeStruct((Mp, n * D), out_dtype),
        grid_spec=pltpu.PrefetchScalarGridSpec(
            num_scalar_prefetch=0,
            grid=grid,
            in_specs=[
                pl.BlockSpec((1, tm, K), lambda s, i, h: (s, i, 0)),   # x
                pl.BlockSpec((1, 1, C),  lambda s, i, h: (s, 0, 0)),   # gamma
                pl.BlockSpec((1, 1, C),  lambda s, i, h: (s, 0, 0)),   # beta
                pl.BlockSpec((1, K, th), lambda s, i, h: (s, 0, h)),   # W1^T
                pl.BlockSpec((1, 1, th), lambda s, i, h: (s, 0, h)),   # b1
                pl.BlockSpec((1, th, D), lambda s, i, h: (s, h, 0)),   # W2^T
                pl.BlockSpec((1, 1, D),  lambda s, i, h: (s, 0, 0)),   # b2
            ],
            out_specs=pl.BlockSpec((tm, D), lambda s, i, h: (i, s)),
            scratch_shapes=scratch,
        ),
        compiler_params=pltpu.CompilerParams(
            dimension_semantics=("parallel", "parallel", "arbitrary"),
            vmem_limit_bytes=vmem_limit),
    )(xs, gamma, beta, w1, b1, w2, b2)


def deepstack_merger_forward(x, x_list, params, *, spatial_merge_size=2,
                             feat_reverse=False, tm=None, th=None,
                             compute_dtype=jnp.bfloat16,
                             out_dtype=jnp.float32):
    """Pallas implementation of DeepStackMidLayerMerger.forward.

    x       : (S, C)  main hidden states
    x_list  : list of 4 tensors, each (S, C)
    params  : stacked per-stream weights (stream 0 = main, 1..4 = deepstack):
        gamma, beta : (5, 1, C)
        w1          : (5, H, H)   (torch W1.T, input-dim major; H = sm2*C)
        b1          : (5, 1, H)
        w2          : (5, H, D)   (torch W2.T)
        b2          : (5, 1, D)
    Returns (x_out: (M, D), x_deepstack: (4*M, D)) with M = S // sm**2.
    """
    S, C = x.shape
    sm2 = spatial_merge_size ** 2
    assert S % sm2 == 0
    M = S // sm2
    K = sm2 * C                      # hidden_size of the module
    H = params["w1"].shape[-1]
    D = params["w2"].shape[-1]
    n_ds = params["w1"].shape[0] - 1

    try:
        vmem_cap = int(pltpu.get_tpu_info().vmem_capacity_bytes)
    except Exception:
        vmem_cap = 128 << 20

    x_bytes = jnp.dtype(x.dtype).itemsize
    w_bytes = jnp.dtype(compute_dtype).itemsize
    out_bytes = jnp.dtype(out_dtype).itemsize

    # ---- tile selection (never collapse tm; pad M instead) ----------------
    tm_auto = tm is None
    th_auto = th is None
    if tm_auto:
        tm = next((t for t in (512, 256, 128) if M % t == 0), None)
        if tm is None:
            if M >= 512:
                tm = 512
            elif M >= 128:
                tm = 128 * int(pl.cdiv(M, 128))
            else:
                tm = 8 * int(pl.cdiv(M, 8))
    if th_auto:
        prefs = (256, 128, 512) if vmem_cap <= (72 << 20) else (512, 256, 128)
        th = next((t for t in prefs if H % t == 0), H)

    def _estimate(tm_, th_):
        # double-buffered input/output blocks + persistent scratch
        blocks = 2 * (tm_ * K * x_bytes            # x block
                      + 2 * C * 4                  # gamma + beta
                      + K * th_ * w_bytes          # W1^T tile
                      + th_ * 4                    # b1 tile
                      + th_ * D * w_bytes          # W2^T tile
                      + D * 4                      # b2
                      + tm_ * D * out_bytes)       # output block
        scratch = tm_ * K * w_bytes                # xn
        if out_bytes != 4:
            scratch += tm_ * D * 4                 # f32 accumulator
        return blocks + scratch

    if th_auto:
        while (_estimate(tm, th) > int(0.85 * vmem_cap) and th > 128
               and H % (th // 2) == 0):
            th //= 2
    if tm_auto:
        while _estimate(tm, th) > int(0.85 * vmem_cap) and tm >= 256:
            tm //= 2

    vmem_limit = int(min(max(int(_estimate(tm, th) * 1.25), 32 << 20),
                         vmem_cap))

    Mp = tm * int(pl.cdiv(M, tm))    # padded row count (multiple of tm)

    # ---- parameters (bf16 weights for the MXU; LN params / biases f32) ----
    gamma = params["gamma"].astype(jnp.float32)        # (n, 1, C), no tiling
    beta = params["beta"].astype(jnp.float32)
    w1 = params["w1"].astype(compute_dtype)
    b1 = params["b1"].astype(jnp.float32)
    w2 = params["w2"].astype(compute_dtype)
    b2 = params["b2"].astype(jnp.float32)

    run = functools.partial(_run_streams, sm2=sm2, tm=tm, th=th,
                            out_dtype=out_dtype, compute_dtype=compute_dtype,
                            vmem_limit=vmem_limit)

    # Main stream: (S, C) -> (1, M, K) is a free reshape; native dtype (no
    # wrapper cast pass).  Pad rows only if M is not a multiple of tm.
    xs_main = x.reshape(1, M, K)
    if Mp != M:
        xs_main = jnp.pad(xs_main, ((0, 0), (0, Mp - M), (0, 0)))
    x_out = run(xs_main, gamma[:1], beta[:1], w1[:1], b1[:1],
                w2[:1], b2[:1])[:M]                                  # (M, D)

    # Deepstack streams: one call handles all 4; output already interleaved.
    # TODO(synk): pass the deepstack activations pre-stacked as (4, M, K) to
    # remove this wrapper-side jnp.stack HBM copy.
    xl = list(x_list)[::-1] if feat_reverse else list(x_list)
    assert len(xl) == n_ds
    xs_ds = jnp.stack([xi.reshape(M, K) for xi in xl], axis=0)       # (4,M,K)
    if Mp != M:
        xs_ds = jnp.pad(xs_ds, ((0, 0), (0, Mp - M), (0, 0)))
    out_ds = run(xs_ds, gamma[1:], beta[1:], w1[1:], b1[1:],
                 w2[1:], b2[1:])[:M]                                 # (M,4*D)
    # torch.stack(dim=1).flatten(0, 1) is a free reshape of (M, 4*D).
    x_deepstack = out_ds.reshape(n_ds * M, D)
    return x_out, x_deepstack


def _ref_forward(x, x_list, params, *, spatial_merge_size=2, feat_reverse=False,
                 compute_dtype=jnp.bfloat16):
    """Pure-JAX reference mirroring the PyTorch module (f32 LayerNorm stats,
    bf16 MXU operands, f32 matmul accumulation, exact-erf GELU)."""
    C = x.shape[-1]
    sm2 = spatial_merge_size ** 2
    K = sm2 * C
    D = params["w2"].shape[-1]

    def one(xi, g, b, w1, b1, w2, b2):
        xi = xi.astype(jnp.float32)
        mu = xi.mean(-1, keepdims=True)
        var = ((xi - mu) ** 2).mean(-1, keepdims=True)
        xn = (xi - mu) * jax.lax.rsqrt(var + LN_EPS) * g + b
        h = xn.reshape(-1, K).astype(compute_dtype)
        h1 = jnp.dot(h, w1.astype(compute_dtype),
                     preferred_element_type=jnp.float32) + b1
        h1 = 0.5 * h1 * (1.0 + jax.lax.erf(h1 * SQRT2_INV))
        return jnp.dot(h1.astype(compute_dtype), w2.astype(compute_dtype),
                       preferred_element_type=jnp.float32) + b2

    xl = list(x_list)[::-1] if feat_reverse else list(x_list)
    streams = [x] + xl
    outs = [one(streams[k],
                params["gamma"][k, 0].astype(jnp.float32),
                params["beta"][k, 0].astype(jnp.float32),
                params["w1"][k],
                params["b1"][k, 0].astype(jnp.float32),
                params["w2"][k],
                params["b2"][k, 0].astype(jnp.float32))
            for k in range(len(streams))]
    x_out = outs[0]
    x_ds = jnp.stack(outs[1:], axis=1).reshape(-1, D)
    return x_out, x_ds


if __name__ == "__main__":
    # Small shapes that still exercise the main tiling paths:
    #   context_dim C = 128, spatial_merge_size = 2 -> hidden_size H = 512
    #   output dim D = 128, 5 streams (main + 4 deepstack).
    C, sm, D = 128, 2, 128
    sm2 = sm * sm
    H = C * sm2
    n_streams = 5

    key = jax.random.PRNGKey(0)
    ks = jax.random.split(key, 16)
    params = dict(
        gamma=1.0 + 0.02 * jax.random.normal(ks[5], (n_streams, 1, C), jnp.float32),
        beta=0.02 * jax.random.normal(ks[6], (n_streams, 1, C), jnp.float32),
        w1=0.05 * jax.random.normal(ks[7], (n_streams, H, H), jnp.float32),
        b1=0.05 * jax.random.normal(ks[8], (n_streams, 1, H), jnp.float32),
        w2=0.05 * jax.random.normal(ks[9], (n_streams, H, D), jnp.float32),
        b2=0.05 * jax.random.normal(ks[10], (n_streams, 1, D), jnp.float32),
    )

    # --- Config 1: S=1024 -> M=256; tm=128, th=256 exercises the row-tiled
    #     grid and the h-axis accumulation directly into the output block.
    S1 = 1024
    x1 = jax.random.normal(ks[0], (S1, C), jnp.float32)
    xl1 = [jax.random.normal(ks[1 + i], (S1, C), jnp.float32) for i in range(4)]
    out1, ds1 = deepstack_merger_forward(x1, xl1, params,
                                         spatial_merge_size=sm,
                                         tm=128, th=256)
    jax.block_until_ready((out1, ds1))
    r_out1, r_ds1 = _ref_forward(x1, xl1, params, spatial_merge_size=sm)
    M1 = S1 // sm2
    assert out1.shape == (M1, D) and ds1.shape == (4 * M1, D)
    np.testing.assert_allclose(np.asarray(out1), np.asarray(r_out1),
                               rtol=1e-2, atol=1e-2)
    np.testing.assert_allclose(np.asarray(ds1), np.asarray(r_ds1),
                               rtol=1e-2, atol=1e-2)

    # --- Config 2: S=800 -> M=200 (not a multiple of 128); exercises the
    #     auto tile pick with row padding + output slicing.
    S2 = 800
    x2 = jax.random.normal(ks[11], (S2, C), jnp.float32)
    xl2 = [jax.random.normal(ks[12 + i], (S2, C), jnp.float32) for i in range(4)]
    out2, ds2 = deepstack_merger_forward(x2, xl2, params,
                                         spatial_merge_size=sm)
    jax.block_until_ready((out2, ds2))
    r_out2, r_ds2 = _ref_forward(x2, xl2, params, spatial_merge_size=sm)
    M2 = S2 // sm2
    assert out2.shape == (M2, D) and ds2.shape == (4 * M2, D)
    np.testing.assert_allclose(np.asarray(out2), np.asarray(r_out2),
                               rtol=1e-2, atol=1e-2)
    np.testing.assert_allclose(np.asarray(ds2), np.asarray(r_ds2),
                               rtol=1e-2, atol=1e-2)

    print("KERNEL_OK")
</pallas_src>

<mosaic_0001>
module attributes {stable_mosaic.version = 11 : i64} {
  func.func @_merger_kernel(%arg0: i32, %arg1: i32, %arg2: i32, %arg3: memref<1x128x512xf32, #tpu.memory_space<vmem>>, %arg4: memref<1x1x128xf32, #tpu.memory_space<vmem>>, %arg5: memref<1x1x128xf32, #tpu.memory_space<vmem>>, %arg6: memref<1x512x256xbf16, #tpu.memory_space<vmem>>, %arg7: memref<1x1x256xf32, #tpu.memory_space<vmem>>, %arg8: memref<1x256x128xbf16, #tpu.memory_space<vmem>>, %arg9: memref<1x1x128xf32, #tpu.memory_space<vmem>>, %arg10: memref<128x128xf32, #tpu.memory_space<vmem>>, %arg11: memref<128x512xbf16, #tpu.memory_space<vmem>>) attributes {dimension_semantics = [#tpu.dimension_semantics<parallel>, #tpu.dimension_semantics<parallel>, #tpu.dimension_semantics<arbitrary>], iteration_bounds = array<i64: 1, 2, 2>, scalar_prefetch = 0 : i64, scratch_operands = 1 : i64, tpu.core_type = #tpu.core_type<tc>, window_params = [{transform_indices = @transform_0, window_bounds = array<i64: 1, 128, 512>}, {transform_indices = @transform_1, window_bounds = array<i64: 1, 1, 128>}, {transform_indices = @transform_2, window_bounds = array<i64: 1, 1, 128>}, {transform_indices = @transform_3, window_bounds = array<i64: 1, 512, 256>}, {transform_indices = @transform_4, window_bounds = array<i64: 1, 1, 256>}, {transform_indices = @transform_5, window_bounds = array<i64: 1, 256, 128>}, {transform_indices = @transform_6, window_bounds = array<i64: 1, 1, 128>}, {transform_indices = @transform_7, window_bounds = array<i64: 128, 128>}]} {
    %c0_i32 = arith.constant 0 : i32
    %0 = arith.cmpi eq, %arg2, %c0_i32 : i32
    %1 = arith.extui %0 : i1 to i32
    %c0_i32_0 = arith.constant 0 : i32
    %2 = arith.cmpi ne, %1, %c0_i32_0 : i32
    scf.if %2 {
      %c0_19 = arith.constant 0 : index
      %c0_20 = arith.constant 0 : index
      %c0_21 = arith.constant 0 : index
      %26 = vector.load %arg4[%c0_19, %c0_20, %c0_21] : memref<1x1x128xf32, #tpu.memory_space<vmem>>, vector<1x1x128xf32>
      %27 = vector.shape_cast %26 : vector<1x1x128xf32> to vector<1x128xf32>
      %c0_22 = arith.constant 0 : index
      %c0_23 = arith.constant 0 : index
      %c0_24 = arith.constant 0 : index
      %28 = vector.load %arg5[%c0_22, %c0_23, %c0_24] : memref<1x1x128xf32, #tpu.memory_space<vmem>>, vector<1x1x128xf32>
      %29 = vector.shape_cast %28 : vector<1x1x128xf32> to vector<1x128xf32>
      %c0_i32_25 = arith.constant 0 : i32
      %c0_i32_26 = arith.constant 0 : i32
      %c0_i32_27 = arith.constant 0 : i32
      %30 = tpu.memref_slice %arg3[%c0_i32_25, %c0_i32_26, %c0_i32_27] : memref<1x128x512xf32, #tpu.memory_space<vmem>> -> memref<1x128x512xf32, #tpu.memory_space<vmem>>
      %31 = tpu.memref_squeeze %30 : memref<1x128x512xf32, #tpu.memory_space<vmem>> -> memref<128x512xf32, #tpu.memory_space<vmem>>
      %c0_28 = arith.constant 0 : index
      %c0_29 = arith.constant 0 : index
      %32 = vector.load %31[%c0_28, %c0_29] : memref<128x512xf32, #tpu.memory_space<vmem>>, vector<128x128xf32>
      %cst_30 = arith.constant dense<0.000000e+00> : vector<128xf32>
      %33 = vector.multi_reduction <add>, %32, %cst_30 [1] : vector<128x128xf32> to vector<128xf32>
      %34 = vector.shape_cast %33 : vector<128xf32> to vector<128x1xf32>
      %cst_31 = arith.constant 1.280000e+02 : f32
      %35 = vector.broadcast %cst_31 : f32 to vector<128x1xf32>
      %36 = arith.divf %34, %35 : vector<128x1xf32>
      %37 = vector.broadcast %36 : vector<128x1xf32> to vector<128x128xf32>
      %38 = arith.subf %32, %37 : vector<128x128xf32>
      %39 = arith.mulf %38, %38 : vector<128x128xf32>
      %cst_32 = arith.constant dense<0.000000e+00> : vector<128xf32>
      %40 = vector.multi_reduction <add>, %39, %cst_32 [1] : vector<128x128xf32> to vector<128xf32>
      %41 = vector.shape_cast %40 : vector<128xf32> to vector<128x1xf32>
      %cst_33 = arith.constant 1.280000e+02 : f32
      %42 = vector.broadcast %cst_33 : f32 to vector<128x1xf32>
      %43 = arith.divf %41, %42 : vector<128x1xf32>
      %44 = vector.broadcast %36 : vector<128x1xf32> to vector<128x128xf32>
      %45 = arith.subf %32, %44 : vector<128x128xf32>
      %cst_34 = arith.constant 9.99999997E-7 : f32
      %46 = vector.broadcast %cst_34 : f32 to vector<128x1xf32>
      %47 = arith.addf %43, %46 : vector<128x1xf32>
      %48 = math.rsqrt %47 : vector<128x1xf32>
      %49 = vector.broadcast %48 : vector<128x1xf32> to vector<128x128xf32>
      %50 = arith.mulf %45, %49 : vector<128x128xf32>
      %51 = vector.broadcast %27 : vector<1x128xf32> to vector<128x128xf32>
      %52 = arith.mulf %50, %51 : vector<128x128xf32>
      %53 = vector.broadcast %29 : vector<1x128xf32> to vector<128x128xf32>
      %54 = arith.addf %52, %53 : vector<128x128xf32>
      %55 = arith.truncf %54 : vector<128x128xf32> to vector<128x128xbf16>
      %c0_35 = arith.constant 0 : index
      %c0_36 = arith.constant 0 : index
      %56 = vector.load %arg11[%c0_35, %c0_36] : memref<128x512xbf16, #tpu.memory_space<vmem>>, vector<128x128xbf16>
      tpu.vector_store %arg11[%c0_35, %c0_36], %55 {strides = array<i32>} : memref<128x512xbf16, #tpu.memory_space<vmem>>, vector<128x128xbf16>,
      %c0_i32_37 = arith.constant 0 : i32
      %c0_i32_38 = arith.constant 0 : i32
      %c0_i32_39 = arith.constant 0 : i32
      %57 = tpu.memref_slice %arg3[%c0_i32_37, %c0_i32_38, %c0_i32_39] : memref<1x128x512xf32, #tpu.memory_space<vmem>> -> memref<1x128x512xf32, #tpu.memory_space<vmem>>
      %58 = tpu.memref_squeeze %57 : memref<1x128x512xf32, #tpu.memory_space<vmem>> -> memref<128x512xf32, #tpu.memory_space<vmem>>
      %c0_40 = arith.constant 0 : index
      %c128 = arith.constant 128 : index
      %59 = vector.load %58[%c0_40, %c128] : memref<128x512xf32, #tpu.memory_space<vmem>>, vector<128x128xf32>
      %cst_41 = arith.constant dense<0.000000e+00> : vector<128xf32>
      %60 = vector.multi_reduction <add>, %59, %cst_41 [1] : vector<128x128xf32> to vector<128xf32>
      %61 = vector.shape_cast %60 : vector<128xf32> to vector<128x1xf32>
      %cst_42 = arith.constant 1.280000e+02 : f32
      %62 = vector.broadcast %cst_42 : f32 to vector<128x1xf32>
      %63 = arith.divf %61, %62 : vector<128x1xf32>
      %64 = vector.broadcast %63 : vector<128x1xf32> to vector<128x128xf32>
      %65 = arith.subf %59, %64 : vector<128x128xf32>
      %66 = arith.mulf %65, %65 : vector<128x128xf32>
      %cst_43 = arith.constant dense<0.000000e+00> : vector<128xf32>
      %67 = vector.multi_reduction <add>, %66, %cst_43 [1] : vector<128x128xf32> to vector<128xf32>
      %68 = vector.shape_cast %67 : vector<128xf32> to vector<128x1xf32>
      %cst_44 = arith.constant 1.280000e+02 : f32
      %69 = vector.broadcast %cst_44 : f32 to vector<128x1xf32>
      %70 = arith.divf %68, %69 : vector<128x1xf32>
      %71 = vector.broadcast %63 : vector<128x1xf32> to vector<128x128xf32>
      %72 = arith.subf %59, %71 : vector<128x128xf32>
      %cst_45 = arith.constant 9.99999997E-7 : f32
      %73 = vector.broadcast %cst_45 : f32 to vector<128x1xf32>
      %74 = arith.addf %70, %73 : vector<128x1xf32>
      %75 = math.rsqrt %74 : vector<128x1xf32>
      %76 = vector.broadcast %75 : vector<128x1xf32> to vector<128x128xf32>
      %77 = arith.mulf %72, %76 : vector<128x128xf32>
      %78 = vector.broadcast %27 : vector<1x128xf32> to vector<128x128xf32>
      %79 = arith.mulf %77, %78 : vector<128x128xf32>
      %80 = vector.broadcast %29 : vector<1x128xf32> to vector<128x128xf32>
      %81 = arith.addf %79, %80 : vector<128x128xf32>
      %82 = arith.truncf %81 : vector<128x128xf32> to vector<128x128xbf16>
      %c0_46 = arith.constant 0 : index
      %c128_47 = arith.constant 128 : index
      %83 = vector.load %arg11[%c0_46, %c128_47] : memref<128x512xbf16, #tpu.memory_space<vmem>>, vector<128x128xbf16>
      tpu.vector_store %arg11[%c0_46, %c128_47], %82 {strides = array<i32>} : memref<128x512xbf16, #tpu.memory_space<vmem>>, vector<128x128xbf16>,
      %c0_i32_48 = arith.constant 0 : i32
      %c0_i32_49 = arith.constant 0 : i32
      %c0_i32_50 = arith.constant 0 : i32
      %84 = tpu.memref_slice %arg3[%c0_i32_48, %c0_i32_49, %c0_i32_50] : memref<1x128x512xf32, #tpu.memory_space<vmem>> -> memref<1x128x512xf32, #tpu.memory_space<vmem>>
      %85 = tpu.memref_squeeze %84 : memref<1x128x512xf32, #tpu.memory_space<vmem>> -> memref<128x512xf32, #tpu.memory_space<vmem>>
      %c0_51 = arith.constant 0 : index
      %c256 = arith.constant 256 : index
      %86 = vector.load %85[%c0_51, %c256] : memref<128x512xf32, #tpu.memory_space<vmem>>, vector<128x128xf32>
      %cst_52 = arith.constant dense<0.000000e+00> : vector<128xf32>
      %87 = vector.multi_reduction <add>, %86, %cst_52 [1] : vector<128x128xf32> to vector<128xf32>
      %88 = vector.shape_cast %87 : vector<128xf32> to vector<128x1xf32>
      %cst_53 = arith.constant 1.280000e+02 : f32
      %89 = vector.broadcast %cst_53 : f32 to vector<128x1xf32>
      %90 = arith.divf %88, %89 : vector<128x1xf32>
      %91 = vector.broadcast %90 : vector<128x1xf32> to vector<128x128xf32>
      %92 = arith.subf %86, %91 : vector<128x128xf32>
      %93 = arith.mulf %92, %92 : vector<128x128xf32>
      %cst_54 = arith.constant dense<0.000000e+00> : vector<128xf32>
      %94 = vector.multi_reduction <add>, %93, %cst_54 [1] : vector<128x128xf32> to vector<128xf32>
      %95 = vector.shape_cast %94 : vector<128xf32> to vector<128x1xf32>
      %cst_55 = arith.constant 1.280000e+02 : f32
      %96 = vector.broadcast %cst_55 : f32 to vector<128x1xf32>
      %97 = arith.divf %95, %96 : vector<128x1xf32>
      %98 = vector.broadcast %90 : vector<128x1xf32> to vector<128x128xf32>
      %99 = arith.subf %86, %98 : vector<128x128xf32>
      %cst_56 = arith.constant 9.99999997E-7 : f32
      %100 = vector.broadcast %cst_56 : f32 to vector<128x1xf32>
      %101 = arith.addf %97, %100 : vector<128x1xf32>
      %102 = math.rsqrt %101 : vector<128x1xf32>
      %103 = vector.broadcast %102 : vector<128x1xf32> to vector<128x128xf32>
      %104 = arith.mulf %99, %103 : vector<128x128xf32>
      %105 = vector.broadcast %27 : vector<1x128xf32> to vector<128x128xf32>
      %106 = arith.mulf %104, %105 : vector<128x128xf32>
      %107 = vector.broadcast %29 : vector<1x128xf32> to vector<128x128xf32>
      %108 = arith.addf %106, %107 : vector<128x128xf32>
      %109 = arith.truncf %108 : vector<128x128xf32> to vector<128x128xbf16>
      %c0_57 = arith.constant 0 : index
      %c256_58 = arith.constant 256 : index
      %110 = vector.load %arg11[%c0_57, %c256_58] : memref<128x512xbf16, #tpu.memory_space<vmem>>, vector<128x128xbf16>
      tpu.vector_store %arg11[%c0_57, %c256_58], %109 {strides = array<i32>} : memref<128x512xbf16, #tpu.memory_space<vmem>>, vector<128x128xbf16>,
      %c0_i32_59 = arith.constant 0 : i32
      %c0_i32_60 = arith.constant 0 : i32
      %c0_i32_61 = arith.constant 0 : i32
      %111 = tpu.memref_slice %arg3[%c0_i32_59, %c0_i32_60, %c0_i32_61] : memref<1x128x512xf32, #tpu.memory_space<vmem>> -> memref<1x128x512xf32, #tpu.memory_space<vmem>>
      %112 = tpu.memref_squeeze %111 : memref<1x128x512xf32, #tpu.memory_space<vmem>> -> memref<128x512xf32, #tpu.memory_space<vmem>>
      %c0_62 = arith.constant 0 : index
      %c384 = arith.constant 384 : index
      %113 = vector.load %112[%c0_62, %c384] : memref<128x512xf32, #tpu.memory_space<vmem>>, vector<128x128xf32>
      %cst_63 = arith.constant dense<0.000000e+00> : vector<128xf32>
      %114 = vector.multi_reduction <add>, %113, %cst_63 [1] : vector<128x128xf32> to vector<128xf32>
      %115 = vector.shape_cast %114 : vector<128xf32> to vector<128x1xf32>
      %cst_64 = arith.constant 1.280000e+02 : f32
      %116 = vector.broadcast %cst_64 : f32 to vector<128x1xf32>
      %117 = arith.divf %115, %116 : vector<128x1xf32>
      %118 = vector.broadcast %117 : vector<128x1xf32> to vector<128x128xf32>
      %119 = arith.subf %113, %118 : vector<128x128xf32>
      %120 = arith.mulf %119, %119 : vector<128x128xf32>
      %cst_65 = arith.constant dense<0.000000e+00> : vector<128xf32>
      %121 = vector.multi_reduction <add>, %120, %cst_65 [1] : vector<128x128xf32> to vector<128xf32>
      %122 = vector.shape_cast %121 : vector<128xf32> to vector<128x1xf32>
      %cst_66 = arith.constant 1.280000e+02 : f32
      %123 = vector.broadcast %cst_66 : f32 to vector<128x1xf32>
      %124 = arith.divf %122, %123 : vector<128x1xf32>
      %125 = vector.broadcast %117 : vector<128x1xf32> to vector<128x128xf32>
      %126 = arith.subf %113, %125 : vector<128x128xf32>
      %cst_67 = arith.constant 9.99999997E-7 : f32
      %127 = vector.broadcast %cst_67 : f32 to vector<128x1xf32>
      %128 = arith.addf %124, %127 : vector<128x1xf32>
      %129 = math.rsqrt %128 : vector<128x1xf32>
      %130 = vector.broadcast %129 : vector<128x1xf32> to vector<128x128xf32>
      %131 = arith.mulf %126, %130 : vector<128x128xf32>
      %132 = vector.broadcast %27 : vector<1x128xf32> to vector<128x128xf32>
      %133 = arith.mulf %131, %132 : vector<128x128xf32>
      %134 = vector.broadcast %29 : vector<1x128xf32> to vector<128x128xf32>
      %135 = arith.addf %133, %134 : vector<128x128xf32>
      %136 = arith.truncf %135 : vector<128x128xf32> to vector<128x128xbf16>
      %c0_68 = arith.constant 0 : index
      %c384_69 = arith.constant 384 : index
      %137 = vector.load %arg11[%c0_68, %c384_69] : memref<128x512xbf16, #tpu.memory_space<vmem>>, vector<128x128xbf16>
      tpu.vector_store %arg11[%c0_68, %c384_69], %136 {strides = array<i32>} : memref<128x512xbf16, #tpu.memory_space<vmem>>, vector<128x128xbf16>,
      %c0_70 = arith.constant 0 : index
      %c0_71 = arith.constant 0 : index
      %c0_72 = arith.constant 0 : index
      %138 = vector.load %arg9[%c0_70, %c0_71, %c0_72] : memref<1x1x128xf32, #tpu.memory_space<vmem>>, vector<1x1x128xf32>
      %139 = vector.shape_cast %138 : vector<1x1x128xf32> to vector<1x128xf32>
      %140 = vector.shape_cast %139 : vector<1x128xf32> to vector<1x128xf32>
      %141 = vector.broadcast %140 : vector<1x128xf32> to vector<128x128xf32>
      %c0_73 = arith.constant 0 : index
      %c0_74 = arith.constant 0 : index
      %142 = vector.load %arg10[%c0_73, %c0_74] : memref<128x128xf32, #tpu.memory_space<vmem>>, vector<128x128xf32>
      tpu.vector_store %arg10[%c0_73, %c0_74], %141 {strides = array<i32>} : memref<128x128xf32, #tpu.memory_space<vmem>>, vector<128x128xf32>,
    } else {
    }
    %c0 = arith.constant 0 : index
    %c0_1 = arith.constant 0 : index
    %3 = vector.load %arg11[%c0, %c0_1] : memref<128x512xbf16, #tpu.memory_space<vmem>>, vector<128x512xbf16>
    %c0_2 = arith.constant 0 : index
    %c0_3 = arith.constant 0 : index
    %c0_4 = arith.constant 0 : index
    %4 = vector.load %arg6[%c0_2, %c0_3, %c0_4] : memref<1x512x256xbf16, #tpu.memory_space<vmem>>, vector<1x512x256xbf16>
    %5 = vector.shape_cast %4 : vector<1x512x256xbf16> to vector<512x256xbf16>
    %cst = arith.constant dense<0.000000e+00> : vector<128x256xf32>
    %6 = tpu.matmul %3, %5, %cst {dimension_numbers = #tpu.dot_dimension_numbers<[1], [0], [0], [1], [0, 0, 1, 1], [], []>} : vector<128x512xbf16>, vector<512x256xbf16>, vector<128x256xf32> -> vector<128x256xf32>
    %c0_5 = arith.constant 0 : index
    %c0_6 = arith.constant 0 : index
    %c0_7 = arith.constant 0 : index
    %7 = vector.load %arg7[%c0_5, %c0_6, %c0_7] : memref<1x1x256xf32, #tpu.memory_space<vmem>>, vector<1x1x256xf32>
    %8 = vector.shape_cast %7 : vector<1x1x256xf32> to vector<1x256xf32>
    %9 = vector.broadcast %8 : vector<1x256xf32> to vector<128x256xf32>
    %10 = arith.addf %6, %9 : vector<128x256xf32>
    %cst_8 = arith.constant 5.000000e-01 : f32
    %11 = vector.broadcast %cst_8 : f32 to vector<128x256xf32>
    %12 = arith.mulf %11, %10 : vector<128x256xf32>
    %cst_9 = arith.constant 0.707106769 : f32
    %13 = vector.broadcast %cst_9 : f32 to vector<128x256xf32>
    %14 = arith.mulf %10, %13 : vector<128x256xf32>
    %15 = math.erf %14 : vector<128x256xf32>
    %cst_10 = arith.constant 1.000000e+00 : f32
    %16 = vector.broadcast %cst_10 : f32 to vector<128x256xf32>
    %17 = arith.addf %16, %15 : vector<128x256xf32>
    %18 = arith.mulf %12, %17 : vector<128x256xf32>
    %19 = arith.truncf %18 : vector<128x256xf32> to vector<128x256xbf16>
    %c0_11 = arith.constant 0 : index
    %c0_12 = arith.constant 0 : index
    %c0_13 = arith.constant 0 : index
    %20 = vector.load %arg8[%c0_11, %c0_12, %c0_13] : memref<1x256x128xbf16, #tpu.memory_space<vmem>>, vector<1x256x128xbf16>
    %21 = vector.shape_cast %20 : vector<1x256x128xbf16> to vector<256x128xbf16>
    %cst_14 = arith.constant dense<0.000000e+00> : vector<128x128xf32>
    %22 = tpu.matmul %19, %21, %cst_14 {dimension_numbers = #tpu.dot_dimension_numbers<[1], [0], [0], [1], [0, 0, 1, 1], [], []>} : vector<128x256xbf16>, vector<256x128xbf16>, vector<128x128xf32> -> vector<128x128xf32>
    %c0_15 = arith.constant 0 : index
    %c0_16 = arith.constant 0 : index
    %23 = vector.load %arg10[%c0_15, %c0_16] : memref<128x128xf32, #tpu.memory_space<vmem>>, vector<128x128xf32>
    %24 = arith.addf %23, %22 : vector<128x128xf32>
    %c0_17 = arith.constant 0 : index
    %c0_18 = arith.constant 0 : index
    %25 = vector.load %arg10[%c0_17, %c0_18] : memref<128x128xf32, #tpu.memory_space<vmem>>, vector<128x128xf32>
    tpu.vector_store %arg10[%c0_17, %c0_18], %24 {strides = array<i32>} : memref<128x128xf32, #tpu.memory_space<vmem>>, vector<128x128xf32>,
    return
  }
  func.func @transform_0(%arg0: i32, %arg1: i32, %arg2: i32) -> (i32, i32, i32) {
    %c0_i32 = arith.constant 0 : i32
    %c0_i32_0 = arith.constant 0 : i32
    return %arg0, %arg1, %c0_i32 : i32, i32, i32
  }
  func.func @transform_1(%arg0: i32, %arg1: i32, %arg2: i32) -> (i32, i32, i32) {
    %c0_i32 = arith.constant 0 : i32
    %c0_i32_0 = arith.constant 0 : i32
    %c0_i32_1 = arith.constant 0 : i32
    return %arg0, %c0_i32, %c0_i32_0 : i32, i32, i32
  }
  func.func @transform_2(%arg0: i32, %arg1: i32, %arg2: i32) -> (i32, i32, i32) {
    %c0_i32 = arith.constant 0 : i32
    %c0_i32_0 = arith.constant 0 : i32
    %c0_i32_1 = arith.constant 0 : i32
    return %arg0, %c0_i32, %c0_i32_0 : i32, i32, i32
  }
  func.func @transform_3(%arg0: i32, %arg1: i32, %arg2: i32) -> (i32, i32, i32) {
    %c0_i32 = arith.constant 0 : i32
    %c0_i32_0 = arith.constant 0 : i32
    return %arg0, %c0_i32, %arg2 : i32, i32, i32
  }
  func.func @transform_4(%arg0: i32, %arg1: i32, %arg2: i32) -> (i32, i32, i32) {
    %c0_i32 = arith.constant 0 : i32
    %c0_i32_0 = arith.constant 0 : i32
    return %arg0, %c0_i32, %arg2 : i32, i32, i32
  }
  func.func @transform_5(%arg0: i32, %arg1: i32, %arg2: i32) -> (i32, i32, i32) {
    %c0_i32 = arith.constant 0 : i32
    %c0_i32_0 = arith.constant 0 : i32
    return %arg0, %arg2, %c0_i32 : i32, i32, i32
  }
  func.func @transform_6(%arg0: i32, %arg1: i32, %arg2: i32) -> (i32, i32, i32) {
    %c0_i32 = arith.constant 0 : i32
    %c0_i32_0 = arith.constant 0 : i32
    %c0_i32_1 = arith.constant 0 : i32
    return %arg0, %c0_i32, %c0_i32_0 : i32, i32, i32
  }
  func.func @transform_7(%arg0: i32, %arg1: i32, %arg2: i32) -> (i32, i32) {
    %c0_i32 = arith.constant 0 : i32
    return %arg1, %arg0 : i32, i32
  }
}

</mosaic_0001>

<bundles_post_ra>
// kernel: tpu_custom_call.1
= control target key start
LH: loop header
LB: loop body
LE: loop exit
PB: predicated region body
PF: predicated region fallthrough
CT: control target
= control target key end

     0   :  { %s5391_s0 = inlined_call_operand.hbm [shape: f32[1,256,512], index: 0, kind: input, shape index: {}]   ;;  %s5392_s1 = inlined_call_operand.vmem [shape: f32[1,1,128], index: 1, kind: input, shape index: {}]   ;;  %s5393_s2 = inlined_call_operand.vmem [shape: f32[1,1,128], index: 2, kind: input, shape index: {}]   ;;  %s5394_s3 = inlined_call_operand.hbm [shape: bf16[1,512,512], index: 3, kind: input, shape index: {}]   ;;  %s5395_s4 = inlined_call_operand.vmem [shape: f32[1,1,512], index: 4, kind: input, shape index: {}]   ;;  %s5396_s5 = inlined_call_operand.hbm [shape: bf16[1,512,128], index: 5, kind: input, shape index: {}]   ;;  %s5397_s6 = inlined_call_operand.vmem [shape: f32[1,1,128], index: 6, kind: input, shape index: {}]   ;;  %s5398_s7 = inlined_call_operand.hbm [shape: f32[256,128], index: 7, kind: output, shape index: {}]  }
   0x1   :  { %5442 = sst [smem:[#allocation41_spill]] %s5391_s0 }
   0x2   :  { %5443 = sst [smem:[#allocation42_spill]] %s5392_s1 }
   0x3   :  { %5444 = sst [smem:[#allocation43_spill]] %s5393_s2 }
   0x4   :  { %5445 = sst [smem:[#allocation44_spill]] %s5394_s3 }
   0x5   :  { %5446 = sst [smem:[#allocation45_spill]] %s5397_s6 }
   0x6   :  { %5447 = sst [smem:[#allocation46_spill]] %s5398_s7 }
   0x7   :  { %12 = vsyncpa [#allocation4], 0 }
   0x8   :  { %14 = vsyncpa [#allocation4 + $0x1], 0 }
   0x9   :  { %15 = vsyncpa [#allocation7], 0 }
   0xa   :  { %17 = vsyncpa [#allocation7 + $0x1], 0 }
   0xb   :  { %18 = vsyncpa [#allocation5], 0 }
   0xc   :  { %20 = vsyncpa [#allocation5 + $0x1], 0  ;;  %s3775_s24 = smov 0   ;;  %s3777_s25 = smov 0  }
   0xd   :  { %s3779_s26 = smov 0   ;;  %s3781_s27 = smov 0  }
   0xe   :  { %s3783_s28 = smov 0   ;;  %s3785_s29 = smov 0  }
   0xf   :  { %s3787_s30 = smov 0   ;;  %s3789_s8 = smov 0  }
  0x10   :  { %s3791_s9 = smov 0   ;;  %s3793_s10 = smov 0  }
  0x11   :  { %s3795_s11 = smov 0  }
  0x12 LB: > { %5448 = sst [smem:[#allocation13_spill]] %s3700_s29  ;;  %s38_s12 = sadd.s32 1, %s3712_s9  ;;  %s3720_s11 = sphi %s3795_s11, %s26_s11   ;;  %s3716_s10 = sphi %s3793_s10, %s5554_s10   ;;  %s3712_s9 = sphi %s3791_s9, %s5553_s9   ;;  %s3708_s8 = sphi %s3789_s8, %s5544_s8   ;;  %s3704_s30 = sphi %s3787_s30, %s5552_s30   ;;  %s3700_s29 = sphi %s3785_s29, %s5543_s29   ;;  %s3696_s28 = sphi %s3783_s28, %s5551_s28   ;;  %s3692_s27 = sphi %s3781_s27, %s5550_s27   ;;  %s3688_s26 = sphi %s3779_s26, %s5549_s26   ;;  %s3684_s25 = sphi %s3777_s25, %s5548_s25   ;;  %s3680_s24 = sphi %s3775_s24, %s5547_s24  }
  0x13   : > { %5449 = sst [smem:[#allocation14_spill]] %s3708_s8  ;;  %p5403_p0 = scmp.eq.s32.totalorder %s3720_s11, 0 }
  0x14   : > { %5450 = sst [smem:[#allocation15_spill]] %s3716_s10  ;;  %p3832_p1 = scmp.ge.s32.totalorder %s38_s12, 2 }
  0x15   : > { %s134_s14 = sadd.s32 1, %s3688_s26  ;;  %p141_p2 = scmp.ne.s32.totalorder %s3688_s26, %s3684_s25 }
  0x16   : > { %s5556_s12 = smov (%p3832_p1, %s38_s12), 0  ;;  %p5402_p5 = scmp.lt.s32.totalorder %s3720_s11, 4 }
  0x17   : > { %5452 = sst [smem:[#allocation16_spill]] %s5556_s12  ;;  %p143_p4 = por %p141_p2, %p5403_p0 }
  0x18   : > { %s130_s15 = ssub.s32 %s3712_s9, %s5556_s12  ;;  %s323_s16 = sand.u32 1, %s3720_s11  }
  0x19   : > { %p132_p6 = scmp.eq.s32.totalorder %s130_s15, 0  ;;  %s5401_s17 = sand.u32 1, %s3688_s26  }
  0x1a   : > { %s2811_s19 = sshll.u32 %s5401_s17, 9  ;;  %s2914_s20 = sshll.u32 %s3712_s9, 7 }
  0x1b   : > { %s3853_s18 = scalar_select %p132_p6, %s3688_s26, %s134_s14  }
  0x1c   : > { %s5454_s3 = sld [smem:[#allocation44_spill]]  ;;  %s327_s7 = scalar_lea.vmem [#allocation6], %s2811_s19 }
  0x1d   : > { %5453 = sst [smem:[#allocation17_spill]] %s3853_s18  ;;  %s336_s12 = sshll.u32 %s327_s7, 4  ;;  %s3869_s12 = int_to_ptr.vmem [resolvable:$true] %s336_s12 }
  0x1e   : > { %p3865_p7 = pnand %p5402_p5, %p143_p4  ;;  %s3872_s14 = scalar_lea.sflag [#allocation7], %s323_s16 }
  0x20   : > { %p5404_p10 = pneg %p3865_p7 }
  0x22   : > { %s3861_s23 = scalar_lea.hbm %s5454_s3, %s2914_s20  ;;  %s3509_s21 = scalar_lea.hbm %s5454_s3, 16384 }
  0x23   : > { %s3504_s20 = scalar_lea.hbm %s3861_s23, 8192  ;;  %p3510_p13 = scmp.lt.u32.totalorder %s3861_s23, %s5454_s3 }
  0x24   : > { %p3505_p9 = scmp.ne.s32.totalorder %s3861_s23, %s3504_s20  ;;  %p3511_p2 = scmp.lt.u32.totalorder %s3509_s21, %s3504_s20 }
  0x25   : > { %p3513_p6 = scmp.lt.u32.totalorder %s3504_s20, %s3861_s23 }
  0x26   : > { %p3507_p11 = pnand %p5404_p10, %p3505_p9  ;;  %p3512_p4 = por %p3511_p2, %p3510_p13 }
  0x28   : > { %p3508_p12 = pneg %p3507_p11  ;;  %p3514_p5 = por %p3513_p6, %p3512_p4 }
  0x2a   : > { %p3515_p3 = pnand %p3514_p5, %p3508_p12 }
  0x2c   : > { %3518 = shalt.err (!%p3515_p3)
}
  0x2d   : > { %s3519_s16 = scalar_lea.vmem %s3869_s12, 8192  ;;  %s3722_s7 = smov [#allocation6]  }
  0x2e   : > { %p3520_p9 = scmp.ne.s32.totalorder %s3869_s12, %s3519_s16  ;;  %s3524_s19 = sshll.u32 %s3722_s7, 4  ;;  %s3525_s19 = int_to_ptr.vmem [resolvable:$false] %s3524_s19 }
  0x2f   : > { %s3526_s17 = scalar_lea.vmem %s3525_s19, 16384  ;;  %p3527_p8 = scmp.lt.s32.totalorder %s3869_s12, %s3525_s19 }
  0x30   : > { %p3522_p11 = pnand %p3520_p9, %p5404_p10  ;;  %p3528_p13 = scmp.lt.s32.totalorder %s3526_s17, %s3519_s16 }
  0x32   : > { %p3523_p0 = pneg %p3522_p11  ;;  %p3529_p2 = por %p3528_p13, %p3527_p8 }
  0x34   : > { %p3530_p4 = pnand %p3529_p2, %p3523_p0 }
  0x36   : > { %3533 = shalt.err (!%p3530_p4)
}
  0x37   : > { %s3723_s20 = smov 256   ;;  %s3724_s21 = smov 128  }
  0x38   : > { %s3725_s22 = smov 8   ;;  %p379_p0 = scmp.lt.s32.totalorder %s3720_s11, 5 }
  0x39   : > { %3091 = dma.hbm_to_vmem [thread:$0]  (!%p3865_p7), %s3861_s23, 8192, %s3869_s12, %s3872_s14, %s3723_s20, %s3724_s21, %s3725_s22  }
  0x3a   : > { %p5456_p3 = scmp.ge.s32.totalorder %s3720_s11, 1  ;;  %s3908_s7 = sadd.s32 4294967295, %s3720_s11  }
  0x3b   : > { %s2801_s19 = sadd.s32 4294967294, %s3720_s11   ;;  %s41_s17 = sadd.s32 1, %s3716_s10 }
  0x3c   : > { %p3903_p5 = pnand %p5456_p3, %p379_p0  ;;  %s54_s3 = sadd.s32 1, %s3700_s29 }
  0x3d   : > { %s5558_s17 = smov (!%p3832_p1, %s41_s17), %s3716_s10  ;;  %p61_p8 = scmp.ne.s32.totalorder %s3700_s29, %s3696_s28 }
  0x3e   : > { %s5457_s16 = scalar_select %p3903_p5, 1, 0 }
  0x3f   : > { %p67_p12 = scmp.ne.s32.totalorder %s3696_s28, %s3692_s27  ;;  %p43_p6 = scmp.ge.s32.totalorder %s5558_s17, 2 }
  0x40   : > { %p68_p9 = scmp.eq.s32.totalorder %s3908_s7, 0  ;;  %p5458_p11 = scmp.eq.s32.totalorder %s3720_s11, 0 }
  0x41   : > { %p255_p2 = scmp.eq.s32.totalorder %s3908_s7, 3  ;;  %s5560_s17 = smov (%p43_p6, %s5558_s17), 0 }
  0x42   : > { %p3923_p13 = por %p5458_p11, %p61_p8  ;;  %5460 = sst [smem:[#allocation18_spill]] %s5560_s17 }
  0x43   : > { %p3933_p1 = por %p68_p9, %p67_p12  ;;  %p5462_p4 = scmp.ne.s32.totalorder %s3684_s25, %s3680_s24 }
  0x44   : > { %s50_s20 = ssub.s32 %s3716_s10, %s5560_s17  ;;  %p3946_p3 = por %p255_p2, %p61_p8 }
  0x45   : > { %s5461_s13 = scalar_select %p3933_p1, 1, 0 }
  0x46   : > { %p3940_p0 = por %p5462_p4, %p68_p9  ;;  %p52_p11 = scmp.eq.s32.totalorder %s50_s20, 0 }
  0x47   : > { %s5464_s21 = scalar_select %p3946_p3, 1, 0 }
  0x48   : > { %s5463_s23 = scalar_select %p3940_p0, 1, 0 }
  0x49   : > { %p261_p6 = scmp.eq.s32.totalorder %s2801_s19, 3  ;;  %s299_s22 = sand.u32 1, %s3700_s29  }
  0x4a   : > { %s2913_s18 = sshll.u32 %s3716_s10, 13  ;;  %s2807_s24 = sshll.u32 %s299_s22, 9 }
  0x4b   : > { %s3953_s8 = scalar_select %p52_p11, %s3700_s29, %s54_s3  }
  0x4c   : > { %p3958_p10 = por %p261_p6, %p67_p12  ;;  %s5467_s0 = sld [smem:[#allocation41_spill]] }
  0x4d   : > { %5465 = sst [smem:[#allocation19_spill]] %s3953_s8  ;;  %p5468_p8 = scmp.lt.s32.totalorder %s3720_s11, 4 }
  0x4e   : > { %s5466_s6 = scalar_select %p3958_p10, 1, 0 }
  0x4f   : > { %p3971_p9 = pnand %p5468_p8, %p3923_p13  ;;  %s303_s19 = scalar_lea.vmem [#allocation3], %s2807_s24 }
  0x50   : > { %s313_s20 = sshll.u32 %s303_s19, 4  ;;  %s5470_s10 = sand.u32 1, %s3688_s26   ;;  %s3975_s20 = int_to_ptr.vmem [resolvable:$true] %s313_s20 }
  0x51   : > { %s3979_s1 = sshll.u32 %s5470_s10, 7  ;;  %s3981_s2 = scalar_lea.sflag [#allocation4], %s299_s22 }
  0x52   : > { %s3965_s17 = scalar_lea.hbm %s5467_s0, %s2913_s18  ;;  %p3536_p2 = pneg %p3971_p9 }
  0x53   : > { %s3534_s18 = scalar_lea.hbm %s3965_s17, 8192  ;;  %s3539_s24 = scalar_lea.hbm %s5467_s0, 16384 }
  0x54   : > { %p3535_p12 = scmp.ne.s32.totalorder %s3965_s17, %s3534_s18  ;;  %p3540_p11 = scmp.lt.u32.totalorder %s3965_s17, %s5467_s0 }
  0x55   : > { %p3541_p6 = scmp.lt.u32.totalorder %s3539_s24, %s3534_s18  ;;  %p3543_p10 = scmp.lt.u32.totalorder %s3534_s18, %s3965_s17 }
  0x56   : > { %p3537_p13 = pnand %p3536_p2, %p3535_p12 }
  0x57   : > { %p3542_p8 = por %p3541_p6, %p3540_p11 }
  0x58   : > { %p3538_p4 = pneg %p3537_p13 }
  0x59   : > { %p3544_p3 = por %p3543_p10, %p3542_p8 }
  0x5b   : > { %p3545_p0 = pnand %p3544_p3, %p3538_p4 }
  0x5d   : > { %3548 = shalt.err (!%p3545_p0)
}
  0x5e   : > { %s3549_s10 = scalar_lea.vmem %s3975_s20, 8192  ;;  %s3726_s8 = smov [#allocation3]  }
  0x5f   : > { %p3550_p12 = scmp.ne.s32.totalorder %s3975_s20, %s3549_s10  ;;  %s3554_s22 = sshll.u32 %s3726_s8, 4  ;;  %s3555_s22 = int_to_ptr.vmem [resolvable:$false] %s3554_s22 }
  0x60   : > { %s3556_s29 = scalar_lea.vmem %s3555_s22, 16384  ;;  %p3557_p5 = scmp.lt.s32.totalorder %s3975_s20, %s3555_s22 }
  0x61   : > { %p3552_p13 = pnand %p3550_p12, %p3536_p2  ;;  %p3558_p11 = scmp.lt.s32.totalorder %s3556_s29, %s3549_s10 }
  0x63   : > { %p3553_p1 = pneg %p3552_p13  ;;  %p3559_p6 = por %p3558_p11, %p3557_p5 }
  0x65   : > { %p3560_p10 = pnand %p3559_p6, %p3553_p1 }
  0x67   : > { %3563 = shalt.err (!%p3560_p10)
}
  0x68   : > { %s3727_s18 = smov 512   ;;  %s3728_s12 = smov 32  }
  0x69   : > { %3088 = dma.hbm_to_vmem [thread:$0]  (!%p3971_p9), %s3965_s17, 8192, %s3975_s20, %s3981_s2, %s3727_s18, %s3727_s18, %s3728_s12  }
  0x6a   : > { %s2915_s24 = sshll.u32 %s3712_s9, 11  ;;  %s362_s10 = scalar_lea.vmem [#allocation8], %s3979_s1 }
  0x6b   : > { %s4013_s22 = scalar_lea.hbm %s5396_s5, %s2915_s24  ;;  %s371_s29 = sshll.u32 %s362_s10, 4  ;;  %s4016_s29 = int_to_ptr.vmem [resolvable:$true] %s371_s29 }
  0x6c   : > { %s3564_s0 = scalar_lea.hbm %s4013_s22, 2048  ;;  %p5471_p1 = pneg %p3865_p7 }
  0x6d   : > { %p3565_p5 = scmp.ne.s32.totalorder %s4013_s22, %s3564_s0  ;;  %s3569_s20 = scalar_lea.hbm %s5396_s5, 4096 }
  0x6e   : > { %p3570_p9 = scmp.lt.u32.totalorder %s4013_s22, %s5396_s5  ;;  %p3571_p2 = scmp.lt.u32.totalorder %s3569_s20, %s3564_s0 }
  0x6f   : > { %p3567_p0 = pnand %p3565_p5, %p5471_p1  ;;  %p3573_p8 = scmp.lt.u32.totalorder %s3564_s0, %s4013_s22 }
  0x70   : > { %p3572_p4 = por %p3571_p2, %p3570_p9 }
  0x71   : > { %p3568_p3 = pneg %p3567_p0 }
  0x72   : > { %p3574_p12 = por %p3573_p8, %p3572_p4 }
  0x74   : > { %p3575_p13 = pnand %p3574_p12, %p3568_p3 }
  0x76   : > { %3578 = shalt.err (!%p3575_p13)
}
  0x77   : > { %s3579_s1 = scalar_lea.vmem %s4016_s29, 2048  ;;  %p5472_p6 = pmov %p5471_p1 }
  0x78   : > { %p3580_p11 = scmp.ne.s32.totalorder %s4016_s29, %s3579_s1  ;;  %s3729_s12 = smov [#allocation8]  }
  0x79   : > { %s3584_s24 = sshll.u32 %s3729_s12, 4  ;;  %s3585_s24 = int_to_ptr.vmem [resolvable:$false] %s3584_s24 }
  0x7a   : > { %p3582_p10 = pnand %p3580_p11, %p5472_p6  ;;  %s3586_s19 = scalar_lea.vmem %s3585_s24, 4096 }
  0x7b   : > { %p3587_p1 = scmp.lt.s32.totalorder %s4016_s29, %s3585_s24  ;;  %p3588_p0 = scmp.lt.s32.totalorder %s3586_s19, %s3579_s1 }
  0x7c   : > { %p3583_p5 = pneg %p3582_p10 }
  0x7d   : > { %p3589_p9 = por %p3588_p0, %p3587_p1 }
  0x7f   : > { %p3590_p2 = pnand %p3589_p9, %p3583_p5 }
  0x81   : > { %3593 = shalt.err (!%p3590_p2)
}
  0x82   : > { %s3730_s0 = smov 64   ;;  %s3731_s8 = smov 4  }
  0x83   : > { %3094 = dma.hbm_to_vmem [thread:$0]  (!%p3865_p7), %s4013_s22, 2048, %s4016_s29, %s3872_s14, %s3730_s0, %s3730_s0, %s3731_s8  }
  0x84   : > { %p5473_p3 = scmp.ne.s32.totalorder %s5457_s16, 0 }
  0x85   : > { %s4045_s10 = sand.u32 (!%p5473_p3), 1, %s3696_s28   ;;  %p5474_p4 = scmp.ne.s32.totalorder (!%p5473_p3), %s5461_s13, 0 }
  0x86   : > { %383 = sbr.rel (%p5473_p3) target bundleno = 1318 (0x526), region = 48  ;;  %s2818_s17 = sshll.u32 (!%p5473_p3), %s4045_s10, 9 }
  0x87   : > { %s386_s3 = scalar_lea.sflag (!%p5473_p3), [#allocation4], %s4045_s10  ;;  %s4049_s20 = scalar_lea.vmem (!%p5473_p3), [#allocation3], %s2818_s17 }
  0x8d   : > { %3667 = dma.done.wait (%p5474_p4), %s386_s3, 8192  }
  0x8e   : > { %3669 = vsyncadd (%p5474_p4), %s386_s3, 4294959104  ;;  %s394_s15 = sand.u32 1, %s3908_s7   ;;  %s396_s14 = sand.u32 1, %s3684_s25  }
  0x8f   : > { %s2819_s16 = sshll.u32 %s396_s14, 9  ;;  %s395_s22 = scalar_lea.sflag [#allocation7], %s394_s15 }
  0x90   : > { %s4057_s29 = scalar_lea.vmem [#allocation6], %s2819_s16  ;;  %p5475_p7 = scmp.ne.s32.totalorder %s5463_s23, 0 }
  0x92   : > { %3671 = dma.done.wait (%p5475_p7), %s395_s22, 10240  }
  0x93   : > { %3673 = vsyncadd (%p5475_p7), %s395_s22, 4294957056  ;;  %s2820_s2 = sshll.u32 %s396_s14, 7  ;;  %s2821_s18 = sshll.u32 %s4045_s10, 7 }
  0x94   : > { %s2822_s13 = sshll.u32 %s3704_s30, 1  ;;  %s4071_s24 = scalar_lea.vmem [#allocation8], %s2820_s2 }
  0x95   : > { %p476_p8 = scmp.lt.s32.totalorder %s2822_s13, 3  ;;  %s4073_s19 = scalar_lea.vmem [#allocation9], %s2821_s18 }
  0x96   : > { %p2823_p12 = scmp.ne.s32.totalorder %s3704_s30, 0 }
  0x97   : > { %s5562_s13 = smov (!%p476_p8, %s2822_s13), 3 }
  0x98   : > { %s480_s12 = scalar_lea.vmem %s5395_s4, %s5562_s13  ;;  %491 = sbr.rel (%p2823_p12) target bundleno = 662 (0x296), region = 64 }
  0x9f   : > { %v4077_v0 = vld [vmem:[%s4049_s20] sm:$0xff]  ;;  %v4141_v16 = vld [vmem:[%s4049_s20 + $0x8] sm:$0xff]  ;;  %v4205_v32 = vld [vmem:[%s4049_s20 + $0x10] sm:$0xff]  ;;  %s5513_s0 = sld [smem:[#allocation42_spill]]  ;;  %s5514_s3 = sld [smem:[#allocation43_spill]] }
  0xa0   : > { %v4080_v1 = vld [vmem:[%s4049_s20 + $0x40] sm:$0xff]  ;;  %510 = vadd.xlane.f32.xlu0 %v4077_v0  ;;  %v4144_v17 = vld [vmem:[%s4049_s20 + $0x28] sm:$0xff]  ;;  %v4208_v33 = vld [vmem:[%s4049_s20 + $0x30] sm:$0xff]  ;;  %s5524_s14 = sld [smem:[#allocation45_spill]] }
  0xa1   : > { %514 = vadd.xlane.f32.xlu1 %v4080_v1  ;;  %v4085_v2 = vld [vmem:[%s4049_s20 + $0x20] sm:$0xff]  ;;  %v4149_v18 = vld [vmem:[%s4049_s20 + $0x48] sm:$0xff]  ;;  %v4213_v34 = vld [vmem:[%s4049_s20 + $0x50] sm:$0xff] }
  0xa2   : > { %v4088_v3 = vld [vmem:[%s4049_s20 + $0x60] sm:$0xff]  ;;  %v4152_v19 = vld [vmem:[%s4049_s20 + $0x68] sm:$0xff]  ;;  %v4216_v35 = vld [vmem:[%s4049_s20 + $0x70] sm:$0xff] }
  0xa3   : > { %v4093_v4 = vld [vmem:[%s4049_s20 + $0x80] sm:$0xff]  ;;  %v4157_v20 = vld [vmem:[%s4049_s20 + $0x88] sm:$0xff]  ;;  %v4221_v36 = vld [vmem:[%s4049_s20 + $0x90] sm:$0xff] }
  0xa4   : > { %512 = vadd.xlane.f32.xlu0 %v4085_v2  ;;  %v4096_v5 = vld [vmem:[%s4049_s20 + $0xa0] sm:$0xff]  ;;  %v4160_v21 = vld [vmem:[%s4049_s20 + $0xa8] sm:$0xff]  ;;  %v4224_v37 = vld [vmem:[%s4049_s20 + $0xb0] sm:$0xff] }
  0xa5   : > { %516 = vadd.xlane.f32.xlu1 %v4088_v3  ;;  %v4101_v6 = vld [vmem:[%s4049_s20 + $0xc0] sm:$0xff]  ;;  %v4165_v22 = vld [vmem:[%s4049_s20 + $0xc8] sm:$0xff]  ;;  %v4229_v38 = vld [vmem:[%s4049_s20 + $0xd0] sm:$0xff] }
  0xa6   : > { %v4104_v7 = vld [vmem:[%s4049_s20 + $0xe0] sm:$0xff]  ;;  %v4168_v23 = vld [vmem:[%s4049_s20 + $0xe8] sm:$0xff]  ;;  %v4232_v39 = vld [vmem:[%s4049_s20 + $0xf0] sm:$0xff] }
  0xa7   : > { %v4109_v8 = vld [vmem:[%s4049_s20 + $0x100] sm:$0xff]  ;;  %v4173_v24 = vld [vmem:[%s4049_s20 + $0x108] sm:$0xff]  ;;  %v4237_v40 = vld [vmem:[%s4049_s20 + $0x110] sm:$0xff] }
  0xa8   : > { %518 = vadd.xlane.f32.xlu0 %v4093_v4  ;;  %v4112_v9 = vld [vmem:[%s4049_s20 + $0x120] sm:$0xff]  ;;  %v4176_v25 = vld [vmem:[%s4049_s20 + $0x128] sm:$0xff]  ;;  %v4240_v41 = vld [vmem:[%s4049_s20 + $0x130] sm:$0xff] }
  0xa9   : > { %520 = vadd.xlane.f32.xlu1 %v4096_v5  ;;  %v4117_v10 = vld [vmem:[%s4049_s20 + $0x140] sm:$0xff]  ;;  %v4181_v26 = vld [vmem:[%s4049_s20 + $0x148] sm:$0xff]  ;;  %v4245_v42 = vld [vmem:[%s4049_s20 + $0x150] sm:$0xff] }
  0xaa   : > { %v4120_v11 = vld [vmem:[%s4049_s20 + $0x160] sm:$0xff]  ;;  %v4184_v27 = vld [vmem:[%s4049_s20 + $0x168] sm:$0xff]  ;;  %v4248_v43 = vld [vmem:[%s4049_s20 + $0x170] sm:$0xff] }
  0xab   : > { %v4125_v12 = vld [vmem:[%s4049_s20 + $0x180] sm:$0xff]  ;;  %v4189_v28 = vld [vmem:[%s4049_s20 + $0x188] sm:$0xff]  ;;  %v4253_v44 = vld [vmem:[%s4049_s20 + $0x190] sm:$0xff] }
  0xac   : > { %522 = vadd.xlane.f32.xlu0 %v4101_v6  ;;  %v4128_v13 = vld [vmem:[%s4049_s20 + $0x1a0] sm:$0xff]  ;;  %v4192_v29 = vld [vmem:[%s4049_s20 + $0x1a8] sm:$0xff]  ;;  %v4256_v45 = vld [vmem:[%s4049_s20 + $0x1b0] sm:$0xff] }
  0xad   : > { %524 = vadd.xlane.f32.xlu1 %v4104_v7  ;;  %v4133_v14 = vld [vmem:[%s4049_s20 + $0x1c0] sm:$0xff]  ;;  %v4197_v30 = vld [vmem:[%s4049_s20 + $0x1c8] sm:$0xff]  ;;  %v4261_v46 = vld [vmem:[%s4049_s20 + $0x1d0] sm:$0xff] }
  0xae   : > { %v4136_v15 = vld [vmem:[%s4049_s20 + $0x1e0] sm:$0xff]  ;;  %v4200_v31 = vld [vmem:[%s4049_s20 + $0x1e8] sm:$0xff]  ;;  %v4264_v47 = vld [vmem:[%s4049_s20 + $0x1f0] sm:$0xff] }
  0xaf   : > { %v4269_v48 = vld [vmem:[%s4049_s20 + $0x18] sm:$0xff] }
  0xb0   : > { %526 = vadd.xlane.f32.xlu0 %v4109_v8  ;;  %v4272_v49 = vld [vmem:[%s4049_s20 + $0x38] sm:$0xff] }
  0xb1   : > { %528 = vadd.xlane.f32.xlu1 %v4112_v9  ;;  %v4277_v50 = vld [vmem:[%s4049_s20 + $0x58] sm:$0xff] }
  0xb2   : > { %v4280_v51 = vld [vmem:[%s4049_s20 + $0x78] sm:$0xff] }
  0xb3   : > { %5476 = vst [vmem:[#allocation20_spill] sm:$0xff] %v4280_v51  ;;  %v4285_v52 = vld [vmem:[%s4049_s20 + $0x98] sm:$0xff] }
  0xb4   : > { %530 = vadd.xlane.f32.xlu0 %v4117_v10  ;;  %5477 = vst [vmem:[#allocation21_spill] sm:$0xff] %v4285_v52  ;;  %v4288_v53 = vld [vmem:[%s4049_s20 + $0xb8] sm:$0xff] }
  0xb5   : > { %532 = vadd.xlane.f32.xlu1 %v4120_v11  ;;  %5478 = vst [vmem:[#allocation22_spill] sm:$0xff] %v4288_v53  ;;  %v4293_v54 = vld [vmem:[%s4049_s20 + $0xd8] sm:$0xff] }
  0xb6   : > { %5479 = vst [vmem:[#allocation23_spill] sm:$0xff] %v4293_v54  ;;  %v4296_v55 = vld [vmem:[%s4049_s20 + $0xf8] sm:$0xff] }
  0xb7   : > { %5480 = vst [vmem:[#allocation24_spill] sm:$0xff] %v4296_v55  ;;  %v4301_v56 = vld [vmem:[%s4049_s20 + $0x118] sm:$0xff] }
  0xb8   : > { %534 = vadd.xlane.f32.xlu0 %v4125_v12  ;;  %5481 = vst [vmem:[#allocation25_spill] sm:$0xff] %v4301_v56  ;;  %v4304_v57 = vld [vmem:[%s4049_s20 + $0x138] sm:$0xff] }
  0xb9   : > { %536 = vadd.xlane.f32.xlu1 %v4128_v13  ;;  %5482 = vst [vmem:[#allocation26_spill] sm:$0xff] %v4304_v57  ;;  %v4309_v58 = vld [vmem:[%s4049_s20 + $0x158] sm:$0xff] }
  0xba   : > { %v4312_v59 = vld [vmem:[%s4049_s20 + $0x178] sm:$0xff] }
  0xbb   : > { %5483 = vst [vmem:[#allocation27_spill] sm:$0xff] %v4312_v59 }
  0xbc   : > { %538 = vadd.xlane.f32.xlu0 %v4133_v14 }
  0xbd   : > { %540 = vadd.xlane.f32.xlu1 %v4136_v15 }
  0xc0   : > { %763 = vadd.xlane.f32.xlu0 %v4141_v16 }
  0xc1   : > { %765 = vadd.xlane.f32.xlu1 %v4144_v17 }
  0xc4   : > { %767 = vadd.xlane.f32.xlu0 %v4149_v18 }
  0xc5   : > { %769 = vadd.xlane.f32.xlu1 %v4152_v19 }
  0xc8   : > { %771 = vadd.xlane.f32.xlu0 %v4157_v20 }
  0xc9   : > { %773 = vadd.xlane.f32.xlu1 %v4160_v21 }
  0xcc   : > { %775 = vadd.xlane.f32.xlu0 %v4165_v22 }
  0xcd   : > { %777 = vadd.xlane.f32.xlu1 %v4168_v23 }
  0xd0   : > { %779 = vadd.xlane.f32.xlu0 %v4173_v24 }
  0xd1   : > { %781 = vadd.xlane.f32.xlu1 %v4176_v25 }
  0xd4   : > { %783 = vadd.xlane.f32.xlu0 %v4181_v26 }
  0xd5   : > { %785 = vadd.xlane.f32.xlu1 %v4184_v27 }
  0xd8   : > { %787 = vadd.xlane.f32.xlu0 %v4189_v28 }
  0xd9   : > { %789 = vadd.xlane.f32.xlu1 %v4192_v29 }
  0xdc   : > { %791 = vadd.xlane.f32.xlu0 %v4197_v30 }
  0xdd   : > { %793 = vadd.xlane.f32.xlu1 %v4200_v31 }
  0xe0   : > { %1003 = vadd.xlane.f32.xlu0 %v4205_v32 }
  0xe1   : > { %1005 = vadd.xlane.f32.xlu1 %v4208_v33 }
  0xe4   : > { %1007 = vadd.xlane.f32.xlu0 %v4213_v34 }
  0xe5   : > { %1009 = vadd.xlane.f32.xlu1 %v4216_v35 }
  0xe8   : > { %1011 = vadd.xlane.f32.xlu0 %v4221_v36 }
  0xe9   : > { %1013 = vadd.xlane.f32.xlu1 %v4224_v37 }
  0xec   : > { %1015 = vadd.xlane.f32.xlu0 %v4229_v38 }
  0xed   : > { %1017 = vadd.xlane.f32.xlu1 %v4232_v39 }
  0xf0   : > { %1019 = vadd.xlane.f32.xlu0 %v4237_v40 }
  0xf1   : > { %1021 = vadd.xlane.f32.xlu1 %v4240_v41 }
  0xf4   : > { %1023 = vadd.xlane.f32.xlu0 %v4245_v42 }
  0xf5   : > { %1025 = vadd.xlane.f32.xlu1 %v4248_v43 }
  0xf8   : > { %1027 = vadd.xlane.f32.xlu0 %v4253_v44 }
  0xf9   : > { %1029 = vadd.xlane.f32.xlu1 %v4256_v45 }
  0xfc   : > { %1031 = vadd.xlane.f32.xlu0 %v4261_v46 }
  0xfd   : > { %1033 = vadd.xlane.f32.xlu1 %v4264_v47 }
 0x100   : > { %1243 = vadd.xlane.f32.xlu0 %v4269_v48 }
 0x101   : > { %1245 = vadd.xlane.f32.xlu1 %v4272_v49 }
 0x104   : > { %1247 = vadd.xlane.f32.xlu0 %v4277_v50 }
 0x105   : > { %1249 = vadd.xlane.f32.xlu1 %v4280_v51 }
 0x108   : > { %1251 = vadd.xlane.f32.xlu0 %v4285_v52 }
 0x109   : > { %1253 = vadd.xlane.f32.xlu1 %v4288_v53 }
 0x10c   : > { %1255 = vadd.xlane.f32.xlu0 %v4293_v54 }
 0x10d   : > { %1257 = vadd.xlane.f32.xlu1 %v4296_v55 }
 0x110   : > { %1259 = vadd.xlane.f32.xlu0 %v4301_v56 }
 0x111   : > { %1261 = vadd.xlane.f32.xlu1 %v4304_v57 }
 0x114   : > { %1263 = vadd.xlane.f32.xlu0 %v4309_v58 }
 0x115   : > { %1265 = vadd.xlane.f32.xlu1 %v4312_v59 }
 0x12d   : > { %v511_v60 = vpop.xlane.xlu0 %510 }
 0x12e   : > { %v515_v61 = vpop.xlane.xlu1 %514  ;;  %v543_v62 = vmul.f32 0.0078125, %v511_v60 }
 0x12f   : > { %v545_v63 = vmul.f32 0.0078125, %v515_v61 }
 0x130   : > { %v4317_v55 = vsub.f32 %v4077_v0, %v543_v62 }
 0x131   : > { %v4320_v54 = vsub.f32 %v4080_v1, %v545_v63  ;;  %v513_v56 = vpop.xlane.xlu0 %512 }
 0x132   : > { %v517_v57 = vpop.xlane.xlu1 %516  ;;  %v544_v53 = vmul.f32 0.0078125, %v513_v56  ;;  %v575_v52 = vmul.f32 %v4317_v55, %v4317_v55 }
 0x133   : > { %5484 = vst [vmem:[#allocation28_spill] sm:$0xff] %v4320_v54  ;;  %v546_v51 = vmul.f32 0.0078125, %v517_v57  ;;  %v577_v59 = vmul.f32 %v4320_v54, %v4320_v54 }
 0x134   : > { %591 = vadd.xlane.f32.xlu0 %v575_v52  ;;  %v4327_v60 = vsub.f32 %v4085_v2, %v544_v53 }
 0x135   : > { %v4330_v0 = vsub.f32 %v4088_v3, %v546_v51  ;;  %v519_v61 = vpop.xlane.xlu0 %518 }
 0x136   : > { %v521_v1 = vpop.xlane.xlu1 %520  ;;  %v547_v62 = vmul.f32 0.0078125, %v519_v61  ;;  %v576_v56 = vmul.f32 %v4327_v60, %v4327_v60 }
 0x137   : > { %v548_v63 = vmul.f32 0.0078125, %v521_v1  ;;  %v578_v52 = vmul.f32 %v4330_v0, %v4330_v0 }
 0x138   : > { %595 = vadd.xlane.f32.xlu0 %v577_v59  ;;  %593 = vadd.xlane.f32.xlu1 %v576_v56  ;;  %v4337_v57 = vsub.f32 %v4093_v4, %v547_v62 }
 0x139   : > { %v4340_v2 = vsub.f32 %v4096_v5, %v548_v63  ;;  %v523_v3 = vpop.xlane.xlu0 %522 }
 0x13a   : > { %v525_v51 = vpop.xlane.xlu1 %524  ;;  %v549_v53 = vmul.f32 0.0078125, %v523_v3  ;;  %v579_v61 = vmul.f32 %v4337_v57, %v4337_v57 }
 0x13b   : > { %v550_v54 = vmul.f32 0.0078125, %v525_v51  ;;  %v580_v59 = vmul.f32 %v4340_v2, %v4340_v2 }
 0x13c   : > { %597 = vadd.xlane.f32.xlu1 %v578_v52  ;;  %599 = vadd.xlane.f32.xlu0 %v579_v61  ;;  %v4347_v1 = vsub.f32 %v4101_v6, %v549_v53 }
 0x13d   : > { %v4350_v4 = vsub.f32 %v4104_v7, %v550_v54  ;;  %v527_v5 = vpop.xlane.xlu0 %526 }
 0x13e   : > { %v529_v62 = vpop.xlane.xlu1 %528  ;;  %v551_v56 = vmul.f32 0.0078125, %v527_v5  ;;  %v581_v63 = vmul.f32 %v4347_v1, %v4347_v1 }
 0x13f   : > { %v552_v3 = vmul.f32 0.0078125, %v529_v62  ;;  %v582_v52 = vmul.f32 %v4350_v4, %v4350_v4 }
 0x140   : > { %601 = vadd.xlane.f32.xlu1 %v580_v59  ;;  %603 = vadd.xlane.f32.xlu0 %v581_v63  ;;  %v4357_v51 = vsub.f32 %v4109_v8, %v551_v56 }
 0x141   : > { %v4360_v6 = vsub.f32 %v4112_v9, %v552_v3  ;;  %v531_v7 = vpop.xlane.xlu0 %530 }
 0x142   : > { %v533_v54 = vpop.xlane.xlu1 %532  ;;  %v553_v53 = vmul.f32 0.0078125, %v531_v7  ;;  %v583_v61 = vmul.f32 %v4357_v51, %v4357_v51 }
 0x143   : > { %v554_v5 = vmul.f32 0.0078125, %v533_v54  ;;  %v584_v59 = vmul.f32 %v4360_v6, %v4360_v6 }
 0x144   : > { %605 = vadd.xlane.f32.xlu1 %v582_v52  ;;  %607 = vadd.xlane.f32.xlu0 %v583_v61  ;;  %v4367_v62 = vsub.f32 %v4117_v10, %v553_v53 }
 0x145   : > { %v4370_v8 = vsub.f32 %v4120_v11, %v554_v5  ;;  %v535_v9 = vpop.xlane.xlu0 %534 }
 0x146   : > { %v537_v56 = vpop.xlane.xlu1 %536  ;;  %v555_v63 = vmul.f32 0.0078125, %v535_v9  ;;  %v585_v3 = vmul.f32 %v4367_v62, %v4367_v62 }
 0x147   : > { %v556_v7 = vmul.f32 0.0078125, %v537_v56  ;;  %v586_v52 = vmul.f32 %v4370_v8, %v4370_v8 }
 0x148   : > { %609 = vadd.xlane.f32.xlu1 %v584_v59  ;;  %611 = vadd.xlane.f32.xlu0 %v585_v3  ;;  %v4377_v54 = vsub.f32 %v4125_v12, %v555_v63 }
 0x149   : > { %v4380_v10 = vsub.f32 %v4128_v13, %v556_v7  ;;  %v539_v11 = vpop.xlane.xlu0 %538 }
 0x14a   : > { %5485 = vst [vmem:[#allocation29_spill] sm:$0xff] %v4377_v54  ;;  %v541_v53 = vpop.xlane.xlu1 %540  ;;  %v557_v61 = vmul.f32 0.0078125, %v539_v11  ;;  %v587_v5 = vmul.f32 %v4377_v54, %v4377_v54  ;;  %v4397_v11 = vld [vmem:[%s4049_s20 + $0x198] sm:$0xff] }
 0x14b   : > { %5486 = vst [vmem:[#allocation30_spill] sm:$0xff] %v4380_v10  ;;  %v558_v9 = vmul.f32 0.0078125, %v541_v53  ;;  %v588_v59 = vmul.f32 %v4380_v10, %v4380_v10 }
 0x14c   : > { %613 = vadd.xlane.f32.xlu1 %v586_v52  ;;  %615 = vadd.xlane.f32.xlu0 %v587_v5  ;;  %v4387_v56 = vsub.f32 %v4133_v14, %v557_v61 }
 0x14d   : > { %v4390_v12 = vsub.f32 %v4136_v15, %v558_v9  ;;  %v764_v13 = vpop.xlane.xlu0 %763  ;;  %v4404_v9 = vld [vmem:[%s4049_s20 + $0x1b8] sm:$0xff] }
 0x14e   : > { %5487 = vst [vmem:[#allocation31_spill] sm:$0xff] %v4387_v56  ;;  %v766_v63 = vpop.xlane.xlu1 %765  ;;  %v589_v3 = vmul.f32 %v4387_v56, %v4387_v56  ;;  %v795_v52 = vmul.f32 0.0078125, %v764_v13 }
 0x14f   : > { %5488 = vst [vmem:[#allocation32_spill] sm:$0xff] %v4390_v12  ;;  %v590_v7 = vmul.f32 %v4390_v12, %v4390_v12  ;;  %v796_v61 = vmul.f32 0.0078125, %v766_v63 }
 0x150   : > { %617 = vadd.xlane.f32.xlu1 %v588_v59  ;;  %619 = vadd.xlane.f32.xlu0 %v589_v3  ;;  %v4401_v5 = vsub.f32 %v4141_v16, %v795_v52  ;;  %v4407_v59 = vld [vmem:[%s4049_s20 + $0x1d8] sm:$0xff] }
 0x151   : > { %v768_v14 = vpop.xlane.xlu0 %767  ;;  %5490 = vst [vmem:[#allocation34_spill] sm:$0xff] %v4407_v59  ;;  %v4410_v56 = vsub.f32 %v4144_v17, %v796_v61  ;;  %v4420_v52 = vld [vmem:[%s4049_s20 + $0x1f8] sm:$0xff] }
 0x152   : > { %v770_v53 = vpop.xlane.xlu1 %769  ;;  %v797_v15 = vmul.f32 0.0078125, %v768_v14  ;;  %5489 = vst [vmem:[#allocation33_spill] sm:$0xff] %v4401_v5  ;;  %v827_v63 = vmul.f32 %v4401_v5, %v4401_v5 }
 0x153   : > { %v798_v13 = vmul.f32 0.0078125, %v770_v53  ;;  %5491 = vst [vmem:[#allocation35_spill] sm:$0xff] %v4410_v56  ;;  %v828_v53 = vmul.f32 %v4410_v56, %v4410_v56 }
 0x154   : > { %621 = vadd.xlane.f32.xlu1 %v590_v7  ;;  %1267 = vadd.xlane.f32.xlu0 %v4397_v11  ;;  %v4417_v16 = vsub.f32 %v4149_v18, %v797_v15 }
 0x155   : > { %v772_v3 = vpop.xlane.xlu0 %771  ;;  %v4425_v17 = vsub.f32 %v4152_v19, %v798_v13 }
 0x156   : > { %v774_v12 = vpop.xlane.xlu1 %773  ;;  %v799_v7 = vmul.f32 0.0078125, %v772_v3  ;;  %5492 = vst [vmem:[#allocation36_spill] sm:$0xff] %v4417_v16  ;;  %v829_v61 = vmul.f32 %v4417_v16, %v4417_v16 }
 0x157   : > { %v800_v3 = vmul.f32 0.0078125, %v774_v12 }
 0x158   : > { %1269 = vadd.xlane.f32.xlu1 %v4404_v9  ;;  %1271 = vadd.xlane.f32.xlu0 %v4407_v59  ;;  %v4431_v18 = vsub.f32 %v4157_v20, %v799_v7  ;;  %v830_v59 = vmul.f32 %v4425_v17, %v4425_v17 }
 0x159   : > { %v776_v14 = vpop.xlane.xlu0 %775 }
 0x15a   : > { %v778_v10 = vpop.xlane.xlu1 %777  ;;  %v801_v5 = vmul.f32 0.0078125, %v776_v14  ;;  %v831_v19 = vmul.f32 %v4431_v18, %v4431_v18 }
 0x15b   : > { %v802_v56 = vmul.f32 0.0078125, %v778_v10 }
 0x15c   : > { %1273 = vadd.xlane.f32.xlu1 %v4420_v52  ;;  %843 = vadd.xlane.f32.xlu0 %v827_v63  ;;  %v4438_v63 = vsub.f32 %v4160_v21, %v800_v3  ;;  %v4441_v12 = vsub.f32 %v4165_v22, %v801_v5 }
 0x15d   : > { %v780_v15 = vpop.xlane.xlu0 %779  ;;  %v4444_v16 = vsub.f32 %v4168_v23, %v802_v56 }
 0x15e   : > { %v782_v54 = vpop.xlane.xlu1 %781  ;;  %v803_v13 = vmul.f32 0.0078125, %v780_v15  ;;  %v832_v10 = vmul.f32 %v4438_v63, %v4438_v63 }
 0x15f   : > { %v804_v14 = vmul.f32 0.0078125, %v782_v54  ;;  %v834_v54 = vmul.f32 %v4444_v16, %v4444_v16 }
 0x160   : > { %845 = vadd.xlane.f32.xlu1 %v828_v53  ;;  %847 = vadd.xlane.f32.xlu0 %v829_v61  ;;  %v833_v53 = vmul.f32 %v4441_v12, %v4441_v12  ;;  %v4451_v21 = vsub.f32 %v4173_v24, %v803_v13 }
 0x161   : > { %v784_v20 = vpop.xlane.xlu0 %783  ;;  %v4456_v23 = vsub.f32 %v4176_v25, %v804_v14 }
 0x162   : > { %v786_v7 = vpop.xlane.xlu1 %785  ;;  %v805_v61 = vmul.f32 0.0078125, %v784_v20  ;;  %v835_v56 = vmul.f32 %v4451_v21, %v4451_v21 }
 0x163   : > { %v836_v13 = vmul.f32 %v4456_v23, %v4456_v23 }
 0x164   : > { %849 = vadd.xlane.f32.xlu1 %v830_v59  ;;  %851 = vadd.xlane.f32.xlu0 %v831_v19  ;;  %v806_v59 = vmul.f32 0.0078125, %v786_v7  ;;  %v4461_v15 = vsub.f32 %v4181_v26, %v805_v61 }
 0x165   : > { %v788_v22 = vpop.xlane.xlu0 %787 }
 0x166   : > { %v790_v5 = vpop.xlane.xlu1 %789  ;;  %v807_v3 = vmul.f32 0.0078125, %v788_v22  ;;  %v837_v25 = vmul.f32 %v4461_v15, %v4461_v15 }
 0x167   : > { %v808_v20 = vmul.f32 0.0078125, %v790_v5 }
 0x168   : > { %853 = vadd.xlane.f32.xlu1 %v832_v10  ;;  %855 = vadd.xlane.f32.xlu0 %v833_v53  ;;  %v4468_v10 = vsub.f32 %v4184_v27, %v806_v59  ;;  %v4471_v7 = vsub.f32 %v4189_v28, %v807_v3 }
 0x169   : > { %v792_v24 = vpop.xlane.xlu0 %791  ;;  %v4474_v22 = vsub.f32 %v4192_v29, %v808_v20 }
 0x16a   : > { %v794_v19 = vpop.xlane.xlu1 %793  ;;  %v809_v14 = vmul.f32 0.0078125, %v792_v24  ;;  %v839_v27 = vmul.f32 %v4471_v7, %v4471_v7 }
 0x16b   : > { %v810_v61 = vmul.f32 0.0078125, %v794_v19  ;;  %v840_v29 = vmul.f32 %v4474_v22, %v4474_v22 }
 0x16c   : > { %857 = vadd.xlane.f32.xlu1 %v834_v54  ;;  %859 = vadd.xlane.f32.xlu0 %v835_v56  ;;  %v4477_v5 = vsub.f32 %v4197_v30, %v809_v14  ;;  %v838_v54 = vmul.f32 %v4468_v10, %v4468_v10 }
 0x16d   : > { %v1004_v26 = vpop.xlane.xlu0 %1003  ;;  %v4484_v3 = vsub.f32 %v4200_v31, %v810_v61 }
 0x16e   : > { %v1006_v53 = vpop.xlane.xlu1 %1005  ;;  %v1035_v56 = vmul.f32 0.0078125, %v1004_v26  ;;  %v841_v24 = vmul.f32 %v4477_v5, %v4477_v5 }
 0x16f   : > { %v1036_v19 = vmul.f32 0.0078125, %v1006_v53  ;;  %v842_v14 = vmul.f32 %v4484_v3, %v4484_v3 }
 0x170   : > { %861 = vadd.xlane.f32.xlu1 %v836_v13  ;;  %863 = vadd.xlane.f32.xlu0 %v837_v25  ;;  %v4489_v30 = vsub.f32 %v4205_v32, %v1035_v56 }
 0x171   : > { %v1008_v28 = vpop.xlane.xlu0 %1007  ;;  %v4496_v26 = vsub.f32 %v4208_v33, %v1036_v19 }
 0x172   : > { %v1010_v59 = vpop.xlane.xlu1 %1009  ;;  %v1037_v13 = vmul.f32 0.0078125, %v1008_v28  ;;  %v1067_v32 = vmul.f32 %v4489_v30, %v4489_v30 }
 0x173   : > { %v1038_v31 = vmul.f32 0.0078125, %v1010_v59  ;;  %v1068_v33 = vmul.f32 %v4496_v26, %v4496_v26 }
 0x174   : > { %865 = vadd.xlane.f32.xlu1 %v838_v54  ;;  %867 = vadd.xlane.f32.xlu0 %v839_v27  ;;  %v4499_v61 = vsub.f32 %v4213_v34, %v1037_v13 }
 0x175   : > { %v1012_v20 = vpop.xlane.xlu0 %1011  ;;  %v4504_v56 = vsub.f32 %v4216_v35, %v1038_v31 }
 0x176   : > { %v1014_v25 = vpop.xlane.xlu1 %1013  ;;  %v1039_v54 = vmul.f32 0.0078125, %v1012_v20  ;;  %v1069_v34 = vmul.f32 %v4499_v61, %v4499_v61 }
 0x177   : > { %v1040_v28 = vmul.f32 0.0078125, %v1014_v25  ;;  %v1070_v35 = vmul.f32 %v4504_v56, %v4504_v56 }
 0x178   : > { %869 = vadd.xlane.f32.xlu1 %v840_v29  ;;  %871 = vadd.xlane.f32.xlu0 %v841_v24  ;;  %v4507_v59 = vsub.f32 %v4221_v36, %v1039_v54 }
 0x179   : > { %v1016_v53 = vpop.xlane.xlu0 %1015  ;;  %v4514_v13 = vsub.f32 %v4224_v37, %v1040_v28 }
 0x17a   : > { %v1018_v27 = vpop.xlane.xlu1 %1017  ;;  %v1041_v29 = vmul.f32 0.0078125, %v1016_v53  ;;  %v1071_v20 = vmul.f32 %v4507_v59, %v4507_v59 }
 0x17b   : > { %v1042_v25 = vmul.f32 0.0078125, %v1018_v27  ;;  %v1072_v54 = vmul.f32 %v4514_v13, %v4514_v13 }
 0x17c   : > { %873 = vadd.xlane.f32.xlu1 %v842_v14  ;;  %1083 = vadd.xlane.f32.xlu0 %v1067_v32  ;;  %v4519_v36 = vsub.f32 %v4229_v38, %v1041_v29 }
 0x17d   : > { %v1020_v24 = vpop.xlane.xlu0 %1019  ;;  %v4526_v53 = vsub.f32 %v4232_v39, %v1042_v25 }
 0x17e   : > { %v1022_v19 = vpop.xlane.xlu1 %1021  ;;  %v1043_v14 = vmul.f32 0.0078125, %v1020_v24  ;;  %v1073_v38 = vmul.f32 %v4519_v36, %v4519_v36 }
 0x17f   : > { %v1044_v37 = vmul.f32 0.0078125, %v1022_v19  ;;  %v1074_v39 = vmul.f32 %v4526_v53, %v4526_v53 }
 0x180   : > { %1085 = vadd.xlane.f32.xlu1 %v1068_v33  ;;  %1087 = vadd.xlane.f32.xlu0 %v1069_v34  ;;  %v4529_v28 = vsub.f32 %v4237_v40, %v1043_v14 }
 0x181   : > { %v1024_v31 = vpop.xlane.xlu0 %1023  ;;  %v4534_v29 = vsub.f32 %v4240_v41, %v1044_v37 }
 0x182   : > { %v1026_v32 = vpop.xlane.xlu1 %1025  ;;  %v1045_v33 = vmul.f32 0.0078125, %v1024_v31  ;;  %v1075_v40 = vmul.f32 %v4529_v28, %v4529_v28 }
 0x183   : > { %v1046_v24 = vmul.f32 0.0078125, %v1026_v32  ;;  %v1076_v41 = vmul.f32 %v4534_v29, %v4534_v29 }
 0x184   : > { %1089 = vadd.xlane.f32.xlu1 %v1070_v35  ;;  %1091 = vadd.xlane.f32.xlu0 %v1071_v20  ;;  %v4537_v19 = vsub.f32 %v4245_v42, %v1045_v33 }
 0x185   : > { %v1028_v27 = vpop.xlane.xlu0 %1027  ;;  %v4544_v14 = vsub.f32 %v4248_v43, %v1046_v24 }
 0x186   : > { %v1030_v34 = vpop.xlane.xlu1 %1029  ;;  %v1047_v35 = vmul.f32 0.0078125, %v1028_v27  ;;  %v1077_v31 = vmul.f32 %v4537_v19, %v4537_v19 }
 0x187   : > { %v1048_v32 = vmul.f32 0.0078125, %v1030_v34  ;;  %v1078_v33 = vmul.f32 %v4544_v14, %v4544_v14 }
 0x188   : > { %1093 = vadd.xlane.f32.xlu1 %v1072_v54  ;;  %1095 = vadd.xlane.f32.xlu0 %v1073_v38  ;;  %v4549_v42 = vsub.f32 %v4253_v44, %v1047_v35 }
 0x189   : > { %v1032_v20 = vpop.xlane.xlu0 %1031  ;;  %v4556_v27 = vsub.f32 %v4256_v45, %v1048_v32 }
 0x18a   : > { %v1034_v25 = vpop.xlane.xlu1 %1033  ;;  %v1049_v54 = vmul.f32 0.0078125, %v1032_v20  ;;  %v1079_v44 = vmul.f32 %v4549_v42, %v4549_v42 }
 0x18b   : > { %v1050_v43 = vmul.f32 0.0078125, %v1034_v25  ;;  %v1080_v45 = vmul.f32 %v4556_v27, %v4556_v27 }
 0x18c   : > { %1097 = vadd.xlane.f32.xlu1 %v1074_v39  ;;  %1099 = vadd.xlane.f32.xlu0 %v1075_v40  ;;  %v4559_v24 = vsub.f32 %v4261_v46, %v1049_v54 }
 0x18d   : > { %v1244_v37 = vpop.xlane.xlu0 %1243  ;;  %v4564_v35 = vsub.f32 %v4264_v47, %v1050_v43 }
 0x18e   : > { %v1246_v38 = vpop.xlane.xlu1 %1245  ;;  %5493 = vst [vmem:[#allocation37_spill] sm:$0xff] %v4559_v24  ;;  %v1275_v39 = vmul.f32 0.0078125, %v1244_v37  ;;  %v1081_v46 = vmul.f32 %v4559_v24, %v4559_v24 }
 0x18f   : > { %5494 = vst [vmem:[#allocation38_spill] sm:$0xff] %v4564_v35  ;;  %v1276_v20 = vmul.f32 0.0078125, %v1246_v38  ;;  %v1082_v47 = vmul.f32 %v4564_v35, %v4564_v35 }
 0x190   : > { %1101 = vadd.xlane.f32.xlu1 %v1076_v41  ;;  %1103 = vadd.xlane.f32.xlu0 %v1077_v31  ;;  %v4567_v25 = vsub.f32 %v4269_v48, %v1275_v39 }
 0x191   : > { %v1248_v34 = vpop.xlane.xlu0 %1247  ;;  %v4574_v54 = vsub.f32 %v4272_v49, %v1276_v20 }
 0x192   : > { %v1250_v40 = vpop.xlane.xlu1 %1249  ;;  %5495 = vst [vmem:[#allocation39_spill] sm:$0xff] %v4567_v25  ;;  %v1277_v41 = vmul.f32 0.0078125, %v1248_v34  ;;  %v1307_v37 = vmul.f32 %v4567_v25, %v4567_v25  ;;  %v5496_v34 = vld [vmem:[#allocation20_spill] sm:$0xff] }
 0x193   : > { %v1278_v38 = vmul.f32 0.0078125, %v1250_v40  ;;  %v1308_v39 = vmul.f32 %v4574_v54, %v4574_v54 }
 0x194   : > { %1105 = vadd.xlane.f32.xlu1 %v1078_v33  ;;  %1107 = vadd.xlane.f32.xlu0 %v1079_v44  ;;  %v4579_v48 = vsub.f32 %v4277_v50, %v1277_v41 }
 0x195   : > { %v1252_v31 = vpop.xlane.xlu0 %1251  ;;  %v4586_v20 = vsub.f32 %v5496_v34, %v1278_v38 }
 0x196   : > { %v1254_v32 = vpop.xlane.xlu1 %1253  ;;  %v1279_v33 = vmul.f32 0.0078125, %v1252_v31  ;;  %v1309_v50 = vmul.f32 %v4579_v48, %v4579_v48  ;;  %v5500_v31 = vld [vmem:[#allocation22_spill] sm:$0xff] }
 0x197   : > { %v1280_v49 = vmul.f32 0.0078125, %v1254_v32  ;;  %5497 = vst [vmem:[#allocation20_spill] sm:$0xff] %v4586_v20  ;;  %v5502_v32 = vld [vmem:[#allocation23_spill] sm:$0xff] }
 0x198   : > { %1109 = vadd.xlane.f32.xlu1 %v1080_v45  ;;  %1111 = vadd.xlane.f32.xlu0 %v1081_v46  ;;  %v5498_v45 = vld [vmem:[#allocation21_spill] sm:$0xff] }
 0x199   : > { %v1256_v43 = vpop.xlane.xlu0 %1255  ;;  %v4589_v46 = vsub.f32 %v5498_v45, %v1279_v33  ;;  %v4594_v25 = vsub.f32 %v5500_v31, %v1280_v49 }
 0x19a   : > { %v1258_v44 = vpop.xlane.xlu1 %1257  ;;  %v1281_v41 = vmul.f32 0.0078125, %v1256_v43  ;;  %v5504_v43 = vld [vmem:[#allocation24_spill] sm:$0xff] }
 0x19b   : > { %5499 = vst [vmem:[#allocation21_spill] sm:$0xff] %v4589_v46  ;;  %5501 = vst [vmem:[#allocation22_spill] sm:$0xff] %v4594_v25  ;;  %v1282_v35 = vmul.f32 0.0078125, %v1258_v44  ;;  %v1311_v38 = vmul.f32 %v4589_v46, %v4589_v46  ;;  %v1312_v44 = vmul.f32 %v4594_v25, %v4594_v25 }
 0x19c   : > { %1113 = vadd.xlane.f32.xlu1 %v1082_v47  ;;  %1323 = vadd.xlane.f32.xlu0 %v1307_v37  ;;  %v4597_v47 = vsub.f32 %v5502_v32, %v1281_v41  ;;  %v1310_v37 = vmul.f32 %v4586_v20, %v4586_v20 }
 0x19d   : > { %v1260_v40 = vpop.xlane.xlu0 %1259  ;;  %v4604_v45 = vsub.f32 %v5504_v43, %v1282_v35  ;;  %v5508_v35 = vld [vmem:[#allocation26_spill] sm:$0xff] }
 0x19e   : > { %v1262_v24 = vpop.xlane.xlu1 %1261  ;;  %5503 = vst [vmem:[#allocation23_spill] sm:$0xff] %v4597_v47  ;;  %v1283_v33 = vmul.f32 0.0078125, %v1260_v40 }
 0x19f   : > { %5505 = vst [vmem:[#allocation24_spill] sm:$0xff] %v4604_v45  ;;  %v1284_v41 = vmul.f32 0.0078125, %v1262_v24  ;;  %v1314_v40 = vmul.f32 %v4604_v45, %v4604_v45  ;;  %v5511_v24 = vld [vmem:[#allocation27_spill] sm:$0xff] }
 0x1a0   : > { %1325 = vadd.xlane.f32.xlu1 %v1308_v39  ;;  %1327 = vadd.xlane.f32.xlu0 %v1309_v50  ;;  %v5506_v39 = vld [vmem:[#allocation25_spill] sm:$0xff]  ;;  %v1313_v50 = vmul.f32 %v4597_v47, %v4597_v47 }
 0x1a1   : > { %v1264_v34 = vpop.xlane.xlu0 %1263  ;;  %v4609_v49 = vsub.f32 %v5506_v39, %v1283_v33  ;;  %v4616_v43 = vsub.f32 %v5508_v35, %v1284_v41 }
 0x1a2   : > { %v1285_v31 = vmul.f32 0.0078125, %v1264_v34  ;;  %v1266_v32 = vpop.xlane.xlu1 %1265 }
 0x1a3   : > { %5507 = vst [vmem:[#allocation25_spill] sm:$0xff] %v4609_v49  ;;  %5509 = vst [vmem:[#allocation26_spill] sm:$0xff] %v4616_v43  ;;  %v1286_v33 = vmul.f32 0.0078125, %v1266_v32  ;;  %v1316_v39 = vmul.f32 %v4616_v43, %v4616_v43 }
 0x1a4   : > { %1329 = vadd.xlane.f32.xlu1 %v1310_v37  ;;  %1331 = vadd.xlane.f32.xlu0 %v1311_v38  ;;  %v4619_v37 = vsub.f32 %v4309_v58, %v1285_v31  ;;  %v1315_v38 = vmul.f32 %v4609_v49, %v4609_v49 }
 0x1a5   : > { %v4624_v34 = vsub.f32 %v5511_v24, %v1286_v33 }
 0x1a6   : > { %5510 = vst [vmem:[#allocation40_spill] sm:$0xff] %v4619_v37 }
 0x1a7   : > { %5512 = vst [vmem:[#allocation27_spill] sm:$0xff] %v4624_v34  ;;  %v1318_v58 = vmul.f32 %v4624_v34, %v4624_v34 }
 0x1a8   : > { %1333 = vadd.xlane.f32.xlu1 %v1312_v44  ;;  %1335 = vadd.xlane.f32.xlu0 %v1313_v50  ;;  %v1317_v44 = vmul.f32 %v4619_v37, %v4619_v37 }
 0x1ac   : > { %1337 = vadd.xlane.f32.xlu1 %v1314_v40  ;;  %1339 = vadd.xlane.f32.xlu0 %v1315_v38 }
 0x1b0   : > { %1341 = vadd.xlane.f32.xlu1 %v1316_v39  ;;  %1343 = vadd.xlane.f32.xlu0 %v1317_v44 }
 0x1b4   : > { %1345 = vadd.xlane.f32.xlu1 %v1318_v58 }
 0x1c1   : > { %v592_v50 = vpop.xlane.xlu0 %591 }
 0x1c2   : > { %v623_v41 = vmul.f32 0.0078125, %v592_v50 }
 0x1c4   : > { %v639_v31 = vadd.f32 1e-06, %v623_v41 }
 0x1c5   : > { %v594_v32 = vpop.xlane.xlu1 %593  ;;  %v596_v40 = vpop.xlane.xlu0 %595 }
 0x1c6   : > { %3198 = vrsqrt.f32 %v639_v31  ;;  %v624_v35 = vmul.f32 0.0078125, %v594_v32  ;;  %v625_v38 = vmul.f32 0.0078125, %v596_v40 }
 0x1c8   : > { %v640_v33 = vadd.f32 1e-06, %v624_v35  ;;  %v641_v24 = vadd.f32 1e-06, %v625_v38 }
 0x1c9   : > { %v598_v43 = vpop.xlane.xlu1 %597  ;;  %v600_v49 = vpop.xlane.xlu0 %599 }
 0x1ca   : > { %3200 = vrsqrt.f32 %v640_v33  ;;  %v626_v37 = vmul.f32 0.0078125, %v598_v43  ;;  %v627_v39 = vmul.f32 0.0078125, %v600_v49  ;;  %v4636_v49 = vld [vmem:[%s5513_s0] ss:$0 sm:$0xff] }
 0x1cb   : > { %3202 = vrsqrt.f32 %v641_v24 }
 0x1cc   : > { %v642_v44 = vadd.f32 1e-06, %v626_v37  ;;  %v643_v45 = vadd.f32 1e-06, %v627_v39 }
 0x1cd   : > { %v602_v34 = vpop.xlane.xlu1 %601  ;;  %v604_v58 = vpop.xlane.xlu0 %603 }
 0x1ce   : > { %3204 = vrsqrt.f32 %v642_v44  ;;  %v628_v50 = vmul.f32 0.0078125, %v602_v34  ;;  %v629_v41 = vmul.f32 0.0078125, %v604_v58  ;;  %v4643_v58 = vld [vmem:[%s5514_s3] ss:$0 sm:$0xff] }
 0x1cf   : > { %3206 = vrsqrt.f32 %v643_v45 }
 0x1d0   : > { %v3199_v47 = vpop.eup %3198  ;;  %v644_v31 = vadd.f32 1e-06, %v628_v50  ;;  %v645_v32 = vadd.f32 1e-06, %v629_v41  ;;  %v5515_v50 = vld [vmem:[#allocation28_spill] sm:$0xff] }
 0x1d1   : > { %v671_v40 = vmul.f32 %v3199_v47, %v4317_v55  ;;  %v606_v35 = vpop.xlane.xlu1 %605  ;;  %v608_v38 = vpop.xlane.xlu0 %607 }
 0x1d2   : > { %3208 = vrsqrt.f32 %v644_v31  ;;  %v630_v43 = vmul.f32 0.0078125, %v606_v35  ;;  %v631_v37 = vmul.f32 0.0078125, %v608_v38 }
 0x1d3   : > { %3210 = vrsqrt.f32 %v645_v32  ;;  %v693_v39 = vmul.f32 %v4636_v49, %v671_v40 }
 0x1d4   : > { %v3201_v33 = vpop.eup %3200  ;;  %v646_v34 = vadd.f32 1e-06, %v630_v43  ;;  %v647_v24 = vadd.f32 1e-06, %v631_v37 }
 0x1d5   : > { %v3203_v45 = vpop.eup %3202  ;;  %v672_v44 = vmul.f32 %v3201_v33, %v4327_v60  ;;  %v610_v55 = vpop.xlane.xlu1 %609  ;;  %v715_v60 = vadd.f32 %v4643_v58, %v693_v39 }
 0x1d6   : > { %v612_v47 = vpop.xlane.xlu0 %611  ;;  %v673_v41 = vmul.f32 %v3203_v45, %v5515_v50  ;;  %3212 = vrsqrt.f32 %v646_v34  ;;  %v632_v31 = vmul.f32 0.0078125, %v610_v55 }
 0x1d7   : > { %v633_v32 = vmul.f32 0.0078125, %v612_v47  ;;  %v694_v35 = vmul.f32 %v4636_v49, %v672_v44  ;;  %3214 = vrsqrt.f32 %v647_v24 }
 0x1d8   : > { %v3205_v38 = vpop.eup %3204  ;;  %v648_v43 = vadd.f32 1e-06, %v632_v31  ;;  %v695_v25 = vmul.f32 %v4636_v49, %v673_v41 }
 0x1d9   : > { %v649_v40 = vadd.f32 1e-06, %v633_v32  ;;  %v3207_v37 = vpop.eup %3206  ;;  %v716_v33 = vadd.f32 %v4643_v58, %v694_v35  ;;  %v674_v46 = vmul.f32 %v3205_v38, %v4330_v0  ;;  %v614_v20 = vpop.xlane.xlu1 %613 }
 0x1da   : > { %v616_v45 = vpop.xlane.xlu0 %615  ;;  %v675_v34 = vmul.f32 %v3207_v37, %v4337_v57  ;;  %3216 = vrsqrt.f32 %v648_v43  ;;  %v634_v55 = vmul.f32 0.0078125, %v614_v20  ;;  %v717_v41 = vadd.f32 %v4643_v58, %v695_v25 }
 0x1db   : > { %v731_v44 = vpack.c.bf16 %v716_v33, %v715_v60  ;;  %v696_v24 = vmul.f32 %v4636_v49, %v674_v46  ;;  %3218 = vrsqrt.f32 %v649_v40  ;;  %v635_v47 = vmul.f32 0.0078125, %v616_v45 }
 0x1dc   : > { %v3209_v50 = vpop.eup %3208  ;;  %v697_v39 = vmul.f32 %v4636_v49, %v675_v34  ;;  %v650_v31 = vadd.f32 1e-06, %v634_v55 }
 0x1dd   : > { %v3211_v32 = vpop.eup %3210  ;;  %739 = vst [vmem:[#allocation2] sm:$0xff] %v731_v44  ;;  %v718_v0 = vadd.f32 %v4643_v58, %v696_v24  ;;  %v676_v35 = vmul.f32 %v3209_v50, %v4340_v2  ;;  %v651_v57 = vadd.f32 1e-06, %v635_v47  ;;  %v618_v38 = vpop.xlane.xlu1 %617 }
 0x1de   : > { %v620_v20 = vpop.xlane.xlu0 %619  ;;  %v677_v43 = vmul.f32 %v3211_v32, %v4347_v1  ;;  %3220 = vrsqrt.f32 %v650_v31  ;;  %v636_v46 = vmul.f32 0.0078125, %v618_v38  ;;  %v719_v45 = vadd.f32 %v4643_v58, %v697_v39 }
 0x1df   : > { %v732_v40 = vpack.c.bf16 %v718_v0, %v717_v41  ;;  %v698_v37 = vmul.f32 %v4636_v49, %v676_v35  ;;  %3222 = vrsqrt.f32 %v651_v57  ;;  %v637_v60 = vmul.f32 0.0078125, %v620_v20 }
 0x1e0   : > { %v3213_v33 = vpop.eup %3212  ;;  %v652_v25 = vadd.f32 1e-06, %v636_v46  ;;  %v699_v55 = vmul.f32 %v4636_v49, %v677_v43 }
 0x1e1   : > { %v3215_v34 = vpop.eup %3214  ;;  %740 = vst [vmem:[#allocation2 + $0x20] sm:$0xff] %v732_v40  ;;  %v720_v2 = vadd.f32 %v4643_v58, %v698_v37  ;;  %v678_v44 = vmul.f32 %v3213_v33, %v4350_v4  ;;  %v653_v1 = vadd.f32 1e-06, %v637_v60  ;;  %v622_v24 = vpop.xlane.xlu1 %621 }
 0x1e2   : > { %v1268_v47 = vpop.xlane.xlu0 %1267  ;;  %v679_v50 = vmul.f32 %v3215_v34, %v4357_v51  ;;  %3224 = vrsqrt.f32 %v652_v25  ;;  %v638_v31 = vmul.f32 0.0078125, %v622_v24  ;;  %v721_v4 = vadd.f32 %v4643_v58, %v699_v55  ;;  %v5516_v24 = vld [vmem:[#allocation34_spill] sm:$0xff] }
 0x1e3   : > { %v733_v32 = vpack.c.bf16 %v720_v2, %v719_v45  ;;  %v700_v41 = vmul.f32 %v4636_v49, %v678_v44  ;;  %3226 = vrsqrt.f32 %v653_v1  ;;  %v1287_v39 = vmul.f32 0.0078125, %v1268_v47 }
 0x1e4   : > { %v3217_v0 = vpop.eup %3216  ;;  %v701_v35 = vmul.f32 %v4636_v49, %v679_v50  ;;  %v654_v57 = vadd.f32 1e-06, %v638_v31 }
 0x1e5   : > { %v3219_v38 = vpop.eup %3218  ;;  %741 = vst [vmem:[#allocation2 + $0x40] sm:$0xff] %v733_v32  ;;  %v722_v20 = vadd.f32 %v4643_v58, %v700_v41  ;;  %v680_v43 = vmul.f32 %v3217_v0, %v4360_v6  ;;  %v4670_v51 = vsub.f32 %v4397_v11, %v1287_v39  ;;  %v1270_v46 = vpop.xlane.xlu1 %1269  ;;  %v5517_v32 = vld [vmem:[#allocation29_spill] sm:$0xff] }
 0x1e6   : > { %v1272_v40 = vpop.xlane.xlu0 %1271  ;;  %v681_v37 = vmul.f32 %v3219_v38, %v4367_v62  ;;  %3228 = vrsqrt.f32 %v654_v57  ;;  %v1288_v60 = vmul.f32 0.0078125, %v1270_v46  ;;  %v723_v55 = vadd.f32 %v4643_v58, %v701_v35 }
 0x1e7   : > { %v734_v33 = vpack.c.bf16 %v722_v20, %v721_v4  ;;  %v702_v45 = vmul.f32 %v4636_v49, %v680_v43  ;;  %v1289_v25 = vmul.f32 0.0078125, %v1272_v40  ;;  %v1319_v34 = vmul.f32 %v4670_v51, %v4670_v51 }
 0x1e8   : > { %v3221_v2 = vpop.eup %3220  ;;  %v4678_v6 = vsub.f32 %v4404_v9, %v1288_v60  ;;  %v703_v62 = vmul.f32 %v4636_v49, %v681_v37  ;;  %v5518_v60 = vld [vmem:[#allocation30_spill] sm:$0xff] }
 0x1e9   : > { %v3223_v11 = vpop.eup %3222  ;;  %742 = vst [vmem:[#allocation2 + $0x60] sm:$0xff] %v734_v33  ;;  %v724_v44 = vadd.f32 %v4643_v58, %v702_v45  ;;  %v682_v1 = vmul.f32 %v3221_v2, %v4370_v8  ;;  %v4684_v47 = vsub.f32 %v5516_v24, %v1289_v25  ;;  %1347 = vadd.xlane.f32.xlu0 %v1319_v34  ;;  %v1274_v50 = vpop.xlane.xlu1 %1273  ;;  %v5519_v34 = vld [vmem:[#allocation31_spill] sm:$0xff] }
 0x1ea   : > { %v844_v31 = vpop.xlane.xlu0 %843  ;;  %v683_v41 = vmul.f32 %v3223_v11, %v5517_v32  ;;  %v1290_v39 = vmul.f32 0.0078125, %v1274_v50  ;;  %v1320_v57 = vmul.f32 %v4678_v6, %v4678_v6  ;;  %v725_v40 = vadd.f32 %v4643_v58, %v703_v62 }
 0x1eb   : > { %v875_v0 = vmul.f32 0.0078125, %v844_v31  ;;  %v735_v9 = vpack.c.bf16 %v724_v44, %v723_v55  ;;  %v704_v35 = vmul.f32 %v4636_v49, %v682_v1  ;;  %v1321_v38 = vmul.f32 %v4684_v47, %v4684_v47 }
 0x1ec   : > { %v3225_v8 = vpop.eup %3224  ;;  %v705_v4 = vmul.f32 %v4636_v49, %v683_v41  ;;  %v4694_v20 = vsub.f32 %v4420_v52, %v1290_v39  ;;  %1349 = vadd.xlane.f32.xlu1 %v1320_v57  ;;  %v5520_v41 = vld [vmem:[#allocation32_spill] sm:$0xff] }
 0x1ed   : > { %v891_v43 = vadd.f32 1e-06, %v875_v0  ;;  %v3227_v46 = vpop.eup %3226  ;;  %743 = vst [vmem:[#allocation2 + $0x80] sm:$0xff] %v735_v9  ;;  %v726_v37 = vadd.f32 %v4643_v58, %v704_v35  ;;  %v684_v33 = vmul.f32 %v3225_v8, %v5518_v60  ;;  %1351 = vadd.xlane.f32.xlu0 %v1321_v38  ;;  %v846_v45 = vpop.xlane.xlu1 %845 }
 0x1ee   : > { %v848_v25 = vpop.xlane.xlu0 %847  ;;  %v685_v2 = vmul.f32 %v3227_v46, %v5519_v34  ;;  %v876_v55 = vmul.f32 0.0078125, %v846_v45  ;;  %v1322_v1 = vmul.f32 %v4694_v20, %v4694_v20  ;;  %v727_v24 = vadd.f32 %v4643_v58, %v705_v4 }
 0x1ef   : > { %3230 = vrsqrt.f32 %v891_v43  ;;  %v736_v11 = vpack.c.bf16 %v726_v37, %v725_v40  ;;  %v706_v52 = vmul.f32 %v4636_v49, %v684_v33  ;;  %v877_v44 = vmul.f32 0.0078125, %v848_v25 }
 0x1f0   : > { %v3229_v62 = vpop.eup %3228  ;;  %v892_v50 = vadd.f32 1e-06, %v876_v55  ;;  %v707_v32 = vmul.f32 %v4636_v49, %v685_v2  ;;  %1353 = vadd.xlane.f32.xlu1 %v1322_v1 }
 0x1f1   : > { %744 = vst [vmem:[#allocation2 + $0xa0] sm:$0xff] %v736_v11  ;;  %v728_v31 = vadd.f32 %v4643_v58, %v706_v52  ;;  %v686_v39 = vmul.f32 %v3229_v62, %v5520_v41  ;;  %v893_v0 = vadd.f32 1e-06, %v877_v44  ;;  %v850_v9 = vpop.xlane.xlu1 %849  ;;  %v5521_v52 = vld [vmem:[#allocation33_spill] sm:$0xff] }
 0x1f2   : > { %v852_v35 = vpop.xlane.xlu0 %851  ;;  %3232 = vrsqrt.f32 %v892_v50  ;;  %v878_v57 = vmul.f32 0.0078125, %v850_v9  ;;  %v729_v40 = vadd.f32 %v4643_v58, %v707_v32  ;;  %v5522_v9 = vld [vmem:[#allocation35_spill] sm:$0xff] }
 0x1f3   : > { %v879_v38 = vmul.f32 0.0078125, %v852_v35  ;;  %v737_v8 = vpack.c.bf16 %v728_v31, %v727_v24  ;;  %v708_v43 = vmul.f32 %v4636_v49, %v686_v39  ;;  %3234 = vrsqrt.f32 %v893_v0 }
 0x1f4   : > { %v894_v4 = vadd.f32 1e-06, %v878_v57 }
 0x1f5   : > { %v895_v46 = vadd.f32 1e-06, %v879_v38  ;;  %745 = vst [vmem:[#allocation2 + $0xc0] sm:$0xff] %v737_v8  ;;  %v730_v37 = vadd.f32 %v4643_v58, %v708_v43  ;;  %v854_v60 = vpop.xlane.xlu1 %853  ;;  %v5523_v8 = vld [vmem:[#allocation36_spill] sm:$0xff] }
 0x1f6   : > { %v856_v33 = vpop.xlane.xlu0 %855  ;;  %3236 = vrsqrt.f32 %v894_v4  ;;  %v880_v45 = vmul.f32 0.0078125, %v854_v60 }
 0x1f7   : > { %v881_v25 = vmul.f32 0.0078125, %v856_v33  ;;  %v738_v34 = vpack.c.bf16 %v730_v37, %v729_v40  ;;  %3238 = vrsqrt.f32 %v895_v46 }
 0x1f8   : > { %v896_v55 = vadd.f32 1e-06, %v880_v45 }
 0x1f9   : > { %v3231_v2 = vpop.eup %3230  ;;  %v897_v11 = vadd.f32 1e-06, %v881_v25  ;;  %746 = vst [vmem:[#allocation2 + $0xe0] sm:$0xff] %v738_v34  ;;  %v858_v1 = vpop.xlane.xlu1 %857 }
 0x1fa   : > { %v923_v44 = vmul.f32 %v3231_v2, %v5521_v52  ;;  %v860_v62 = vpop.xlane.xlu0 %859  ;;  %3240 = vrsqrt.f32 %v896_v55  ;;  %v882_v24 = vmul.f32 0.0078125, %v858_v1 }
 0x1fb   : > { %v883_v50 = vmul.f32 0.0078125, %v860_v62  ;;  %3242 = vrsqrt.f32 %v897_v11 }
 0x1fc   : > { %v3233_v31 = vpop.eup %3232  ;;  %v898_v32 = vadd.f32 1e-06, %v882_v24  ;;  %v939_v0 = vmul.f32 %v4636_v49, %v923_v44 }
 0x1fd   : > { %v899_v41 = vadd.f32 1e-06, %v883_v50  ;;  %v3235_v39 = vpop.eup %3234  ;;  %v924_v35 = vmul.f32 %v3233_v31, %v5522_v9  ;;  %v862_v57 = vpop.xlane.xlu1 %861 }
 0x1fe   : > { %v864_v38 = vpop.xlane.xlu0 %863  ;;  %v925_v43 = vmul.f32 %v3235_v39, %v5523_v8  ;;  %3244 = vrsqrt.f32 %v898_v32  ;;  %v884_v4 = vmul.f32 0.0078125, %v862_v57  ;;  %v955_v25 = vadd.f32 %v4643_v58, %v939_v0 }
 0x1ff   : > { %v885_v46 = vmul.f32 0.0078125, %v864_v38  ;;  %v940_v40 = vmul.f32 %v4636_v49, %v924_v35  ;;  %3246 = vrsqrt.f32 %v899_v41 }
 0x200   : > { %v3237_v37 = vpop.eup %3236  ;;  %v900_v60 = vadd.f32 1e-06, %v884_v4  ;;  %v941_v2 = vmul.f32 %v4636_v49, %v925_v43 }
 0x201   : > { %v901_v33 = vadd.f32 1e-06, %v885_v46  ;;  %v3239_v45 = vpop.eup %3238  ;;  %v956_v34 = vadd.f32 %v4643_v58, %v940_v40  ;;  %v926_v55 = vmul.f32 %v3237_v37, %v4425_v17  ;;  %v866_v11 = vpop.xlane.xlu1 %865 }
 0x202   : > { %v868_v52 = vpop.xlane.xlu0 %867  ;;  %v927_v44 = vmul.f32 %v3239_v45, %v4431_v18  ;;  %3248 = vrsqrt.f32 %v900_v60  ;;  %v886_v1 = vmul.f32 0.0078125, %v866_v11  ;;  %v957_v0 = vadd.f32 %v4643_v58, %v941_v2 }
 0x203   : > { %v971_v62 = vpack.c.bf16 %v956_v34, %v955_v25  ;;  %v942_v24 = vmul.f32 %v4636_v49, %v926_v55  ;;  %3250 = vrsqrt.f32 %v901_v33  ;;  %v887_v50 = vmul.f32 0.0078125, %v868_v52 }
 0x204   : > { %v3241_v31 = vpop.eup %3240  ;;  %v943_v32 = vmul.f32 %v4636_v49, %v927_v44  ;;  %v902_v41 = vadd.f32 1e-06, %v886_v1 }
 0x205   : > { %v3243_v39 = vpop.eup %3242  ;;  %979 = vst [vmem:[#allocation2 + $0x8] sm:$0xff] %v971_v62  ;;  %v958_v17 = vadd.f32 %v4643_v58, %v942_v24  ;;  %v928_v9 = vmul.f32 %v3241_v31, %v4438_v63  ;;  %v903_v18 = vadd.f32 1e-06, %v887_v50  ;;  %v870_v35 = vpop.xlane.xlu1 %869 }
 0x206   : > { %v872_v57 = vpop.xlane.xlu0 %871  ;;  %v929_v38 = vmul.f32 %v3243_v39, %v4441_v12  ;;  %3252 = vrsqrt.f32 %v902_v41  ;;  %v888_v8 = vmul.f32 0.0078125, %v870_v35  ;;  %v959_v37 = vadd.f32 %v4643_v58, %v943_v32 }
 0x207   : > { %v972_v43 = vpack.c.bf16 %v958_v17, %v957_v0  ;;  %v944_v4 = vmul.f32 %v4636_v49, %v928_v9  ;;  %3254 = vrsqrt.f32 %v903_v18  ;;  %v889_v46 = vmul.f32 0.0078125, %v872_v57 }
 0x208   : > { %v3245_v40 = vpop.eup %3244  ;;  %v904_v60 = vadd.f32 1e-06, %v888_v8  ;;  %v945_v45 = vmul.f32 %v4636_v49, %v929_v38 }
 0x209   : > { %v3247_v33 = vpop.eup %3246  ;;  %980 = vst [vmem:[#allocation2 + $0x28] sm:$0xff] %v972_v43  ;;  %v960_v63 = vadd.f32 %v4643_v58, %v944_v4  ;;  %v930_v25 = vmul.f32 %v3245_v40, %v4444_v16  ;;  %v905_v12 = vadd.f32 1e-06, %v889_v46  ;;  %v874_v34 = vpop.xlane.xlu1 %873 }
 0x20a   : > { %v1084_v2 = vpop.xlane.xlu0 %1083  ;;  %v931_v55 = vmul.f32 %v3247_v33, %v4451_v21  ;;  %3256 = vrsqrt.f32 %v904_v60  ;;  %v890_v11 = vmul.f32 0.0078125, %v874_v34  ;;  %v961_v16 = vadd.f32 %v4643_v58, %v945_v45 }
 0x20b   : > { %v973_v52 = vpack.c.bf16 %v960_v63, %v959_v37  ;;  %v946_v44 = vmul.f32 %v4636_v49, %v930_v25  ;;  %3258 = vrsqrt.f32 %v905_v12  ;;  %v1115_v1 = vmul.f32 0.0078125, %v1084_v2 }
 0x20c   : > { %v3249_v62 = vpop.eup %3248  ;;  %v947_v24 = vmul.f32 %v4636_v49, %v931_v55  ;;  %v906_v50 = vadd.f32 1e-06, %v890_v11 }
 0x20d   : > { %v3251_v31 = vpop.eup %3250  ;;  %981 = vst [vmem:[#allocation2 + $0x48] sm:$0xff] %v973_v52  ;;  %v962_v32 = vadd.f32 %v4643_v58, %v946_v44  ;;  %v932_v41 = vmul.f32 %v3249_v62, %v4456_v23  ;;  %v1131_v21 = vadd.f32 1e-06, %v1115_v1  ;;  %v1086_v39 = vpop.xlane.xlu1 %1085 }
 0x20e   : > { %v1088_v0 = vpop.xlane.xlu0 %1087  ;;  %v933_v17 = vmul.f32 %v3251_v31, %v4461_v15  ;;  %3260 = vrsqrt.f32 %v906_v50  ;;  %v1116_v9 = vmul.f32 0.0078125, %v1086_v39  ;;  %v963_v8 = vadd.f32 %v4643_v58, %v947_v24  ;;  %v2826_v31 = vld [vmem:[%s5524_s14] ss:$0 sm:$0xff] }
 0x20f   : > { %v974_v18 = vpack.c.bf16 %v962_v32, %v961_v16  ;;  %v948_v35 = vmul.f32 %v4636_v49, %v932_v41  ;;  %3262 = vrsqrt.f32 %v1131_v21  ;;  %v1117_v57 = vmul.f32 0.0078125, %v1088_v0  ;;  %1474 = vst [vmem:[%s4073_s19] sm:$0xff] %v2826_v31  ;;  %1475 = vst [vmem:[%s4073_s19 + $0x8] sm:$0xff] %v2826_v31 }
 0x210   : > { %v3253_v38 = vpop.eup %3252  ;;  %v1132_v43 = vadd.f32 1e-06, %v1116_v9  ;;  %v949_v46 = vmul.f32 %v4636_v49, %v933_v17  ;;  %1476 = vst [vmem:[%s4073_s19 + $0x10] sm:$0xff] %v2826_v31  ;;  %1477 = vst [vmem:[%s4073_s19 + $0x18] sm:$0xff] %v2826_v31 }
 0x211   : > { %v3255_v4 = vpop.eup %3254  ;;  %982 = vst [vmem:[#allocation2 + $0x68] sm:$0xff] %v974_v18  ;;  %v964_v23 = vadd.f32 %v4643_v58, %v948_v35  ;;  %v934_v40 = vmul.f32 %v3253_v38, %v4468_v10  ;;  %v1133_v15 = vadd.f32 1e-06, %v1117_v57  ;;  %v1090_v37 = vpop.xlane.xlu1 %1089  ;;  %1478 = vst [vmem:[%s4073_s19 + $0x20] sm:$0xff] %v2826_v31 }
 0x212   : > { %v1092_v60 = vpop.xlane.xlu0 %1091  ;;  %v935_v33 = vmul.f32 %v3255_v4, %v4471_v7  ;;  %3264 = vrsqrt.f32 %v1132_v43  ;;  %v1118_v63 = vmul.f32 0.0078125, %v1090_v37  ;;  %v965_v10 = vadd.f32 %v4643_v58, %v949_v46  ;;  %1479 = vst [vmem:[%s4073_s19 + $0x28] sm:$0xff] %v2826_v31  ;;  %1480 = vst [vmem:[%s4073_s19 + $0x30] sm:$0xff] %v2826_v31 }
 0x213   : > { %v975_v45 = vpack.c.bf16 %v964_v23, %v963_v8  ;;  %v950_v25 = vmul.f32 %v4636_v49, %v934_v40  ;;  %3266 = vrsqrt.f32 %v1133_v15  ;;  %v1119_v12 = vmul.f32 0.0078125, %v1092_v60  ;;  %1481 = vst [vmem:[%s4073_s19 + $0x38] sm:$0xff] %v2826_v31  ;;  %1482 = vst [vmem:[%s4073_s19 + $0x40] sm:$0xff] %v2826_v31 }
 0x214   : > { %v3257_v34 = vpop.eup %3256  ;;  %v951_v2 = vmul.f32 %v4636_v49, %v935_v33  ;;  %v1134_v55 = vadd.f32 1e-06, %v1118_v63  ;;  %1483 = vst [vmem:[%s4073_s19 + $0x48] sm:$0xff] %v2826_v31  ;;  %1484 = vst [vmem:[%s4073_s19 + $0x50] sm:$0xff] %v2826_v31 }
 0x215   : > { %v3259_v11 = vpop.eup %3258  ;;  %983 = vst [vmem:[#allocation2 + $0x88] sm:$0xff] %v975_v45  ;;  %v966_v7 = vadd.f32 %v4643_v58, %v950_v25  ;;  %v936_v52 = vmul.f32 %v3257_v34, %v4474_v22  ;;  %v1135_v44 = vadd.f32 1e-06, %v1119_v12  ;;  %v1094_v1 = vpop.xlane.xlu1 %1093  ;;  %1485 = vst [vmem:[%s4073_s19 + $0x58] sm:$0xff] %v2826_v31 }
 0x216   : > { %v1096_v62 = vpop.xlane.xlu0 %1095  ;;  %v937_v24 = vmul.f32 %v3259_v11, %v4477_v5  ;;  %3268 = vrsqrt.f32 %v1134_v55  ;;  %v1120_v50 = vmul.f32 0.0078125, %v1094_v1  ;;  %1486 = vst [vmem:[%s4073_s19 + $0x60] sm:$0xff] %v2826_v31  ;;  %1487 = vst [vmem:[%s4073_s19 + $0x68] sm:$0xff] %v2826_v31  ;;  %v967_v41 = vadd.f32 %v4643_v58, %v951_v2 }
 0x217   : > { %v976_v22 = vpack.c.bf16 %v966_v7, %v965_v10  ;;  %v952_v16 = vmul.f32 %v4636_v49, %v936_v52  ;;  %3270 = vrsqrt.f32 %v1135_v44  ;;  %v1121_v32 = vmul.f32 0.0078125, %v1096_v62  ;;  %1488 = vst [vmem:[%s4073_s19 + $0x70] sm:$0xff] %v2826_v31  ;;  %1489 = vst [vmem:[%s4073_s19 + $0x78] sm:$0xff] %v2826_v31 }
 0x218   : > { %v3261_v5 = vpop.eup %3260  ;;  %v1136_v21 = vadd.f32 1e-06, %v1120_v50  ;;  %v953_v17 = vmul.f32 %v4636_v49, %v937_v24 }
 0x219   : > { %v3263_v39 = vpop.eup %3262  ;;  %984 = vst [vmem:[#allocation2 + $0xa8] sm:$0xff] %v976_v22  ;;  %v968_v0 = vadd.f32 %v4643_v58, %v952_v16  ;;  %v938_v9 = vmul.f32 %v3261_v5, %v4484_v3  ;;  %v1137_v18 = vadd.f32 1e-06, %v1121_v32  ;;  %v1098_v35 = vpop.xlane.xlu1 %1097 }
 0x21a   : > { %v1100_v57 = vpop.xlane.xlu0 %1099  ;;  %v1163_v38 = vmul.f32 %v3263_v39, %v4489_v30  ;;  %3272 = vrsqrt.f32 %v1136_v21  ;;  %v1122_v8 = vmul.f32 0.0078125, %v1098_v35  ;;  %v969_v3 = vadd.f32 %v4643_v58, %v953_v17 }
 0x21b   : > { %v977_v43 = vpack.c.bf16 %v968_v0, %v967_v41  ;;  %v954_v4 = vmul.f32 %v4636_v49, %v938_v9  ;;  %3274 = vrsqrt.f32 %v1137_v18  ;;  %v1123_v23 = vmul.f32 0.0078125, %v1100_v57 }
 0x21c   : > { %v3265_v46 = vpop.eup %3264  ;;  %v1179_v40 = vmul.f32 %v4636_v49, %v1163_v38  ;;  %v1138_v15 = vadd.f32 1e-06, %v1122_v8 }
 0x21d   : > { %v3267_v37 = vpop.eup %3266  ;;  %985 = vst [vmem:[#allocation2 + $0xc8] sm:$0xff] %v977_v43  ;;  %v970_v60 = vadd.f32 %v4643_v58, %v954_v4  ;;  %v1164_v33 = vmul.f32 %v3265_v46, %v4496_v26  ;;  %v1139_v30 = vadd.f32 1e-06, %v1123_v23  ;;  %v1102_v63 = vpop.xlane.xlu1 %1101 }
 0x21e   : > { %v1104_v45 = vpop.xlane.xlu0 %1103  ;;  %v1165_v25 = vmul.f32 %v3267_v37, %v4499_v61  ;;  %3276 = vrsqrt.f32 %v1138_v15  ;;  %v1124_v12 = vmul.f32 0.0078125, %v1102_v63  ;;  %v1195_v10 = vadd.f32 %v4643_v58, %v1179_v40 }
 0x21f   : > { %v978_v34 = vpack.c.bf16 %v970_v60, %v969_v3  ;;  %v1180_v2 = vmul.f32 %v4636_v49, %v1164_v33  ;;  %3278 = vrsqrt.f32 %v1139_v30  ;;  %v1125_v55 = vmul.f32 0.0078125, %v1104_v45 }
 0x220   : > { %v3269_v11 = vpop.eup %3268  ;;  %v1140_v7 = vadd.f32 1e-06, %v1124_v12  ;;  %v1181_v44 = vmul.f32 %v4636_v49, %v1165_v25 }
 0x221   : > { %v3271_v52 = vpop.eup %3270  ;;  %986 = vst [vmem:[#allocation2 + $0xe8] sm:$0xff] %v978_v34  ;;  %v1196_v26 = vadd.f32 %v4643_v58, %v1180_v2  ;;  %v1166_v1 = vmul.f32 %v3269_v11, %v4504_v56  ;;  %v1141_v61 = vadd.f32 1e-06, %v1125_v55  ;;  %v1106_v62 = vpop.xlane.xlu1 %1105 }
 0x222   : > { %v1108_v24 = vpop.xlane.xlu0 %1107  ;;  %v1167_v50 = vmul.f32 %v3271_v52, %v4507_v59  ;;  %3280 = vrsqrt.f32 %v1140_v7  ;;  %v1126_v31 = vmul.f32 0.0078125, %v1106_v62  ;;  %v1197_v56 = vadd.f32 %v4643_v58, %v1181_v44 }
 0x223   : > { %v1211_v22 = vpack.c.bf16 %v1196_v26, %v1195_v10  ;;  %v1182_v16 = vmul.f32 %v4636_v49, %v1166_v1  ;;  %3282 = vrsqrt.f32 %v1141_v61  ;;  %v1127_v32 = vmul.f32 0.0078125, %v1108_v24 }
 0x224   : > { %v3273_v5 = vpop.eup %3272  ;;  %v1183_v41 = vmul.f32 %v4636_v49, %v1167_v50  ;;  %v1142_v21 = vadd.f32 1e-06, %v1126_v31 }
 0x225   : > { %v3275_v39 = vpop.eup %3274  ;;  %1219 = vst [vmem:[#allocation2 + $0x10] sm:$0xff] %v1211_v22  ;;  %v1198_v0 = vadd.f32 %v4643_v58, %v1182_v16  ;;  %v1168_v17 = vmul.f32 %v3273_v5, %v4514_v13  ;;  %v1143_v59 = vadd.f32 1e-06, %v1127_v32  ;;  %v1110_v9 = vpop.xlane.xlu1 %1109 }
 0x226   : > { %v1112_v18 = vpop.xlane.xlu0 %1111  ;;  %v1169_v35 = vmul.f32 %v3275_v39, %v4519_v36  ;;  %3284 = vrsqrt.f32 %v1142_v21  ;;  %v1128_v57 = vmul.f32 0.0078125, %v1110_v9  ;;  %v1199_v23 = vadd.f32 %v4643_v58, %v1183_v41 }
 0x227   : > { %v1212_v38 = vpack.c.bf16 %v1198_v0, %v1197_v56  ;;  %v1184_v8 = vmul.f32 %v4636_v49, %v1168_v17  ;;  %3286 = vrsqrt.f32 %v1143_v59  ;;  %v1129_v43 = vmul.f32 0.0078125, %v1112_v18 }
 0x228   : > { %v3277_v4 = vpop.eup %3276  ;;  %v1144_v46 = vadd.f32 1e-06, %v1128_v57  ;;  %v1185_v15 = vmul.f32 %v4636_v49, %v1169_v35 }
 0x229   : > { %v3279_v40 = vpop.eup %3278  ;;  %1220 = vst [vmem:[#allocation2 + $0x30] sm:$0xff] %v1212_v38  ;;  %v1200_v13 = vadd.f32 %v4643_v58, %v1184_v8  ;;  %v1170_v37 = vmul.f32 %v3277_v4, %v4526_v53  ;;  %v1145_v36 = vadd.f32 1e-06, %v1129_v43  ;;  %v1114_v3 = vpop.xlane.xlu1 %1113  ;;  %v5525_v4 = vld [vmem:[#allocation37_spill] sm:$0xff] }
 0x22a   : > { %v1324_v60 = vpop.xlane.xlu0 %1323  ;;  %v1171_v33 = vmul.f32 %v3279_v40, %v4529_v28  ;;  %3288 = vrsqrt.f32 %v1144_v46  ;;  %v1130_v30 = vmul.f32 0.0078125, %v1114_v3  ;;  %v1201_v53 = vadd.f32 %v4643_v58, %v1185_v15 }
 0x22b   : > { %v1213_v63 = vpack.c.bf16 %v1200_v13, %v1199_v23  ;;  %v1186_v45 = vmul.f32 %v4636_v49, %v1170_v37  ;;  %3290 = vrsqrt.f32 %v1145_v36  ;;  %v1355_v25 = vmul.f32 0.0078125, %v1324_v60 }
 0x22c   : > { %v3281_v12 = vpop.eup %3280  ;;  %v1187_v34 = vmul.f32 %v4636_v49, %v1171_v33  ;;  %v1146_v2 = vadd.f32 1e-06, %v1130_v30  ;;  %v5526_v30 = vld [vmem:[#allocation38_spill] sm:$0xff] }
 0x22d   : > { %v3283_v55 = vpop.eup %3282  ;;  %1221 = vst [vmem:[#allocation2 + $0x50] sm:$0xff] %v1213_v63  ;;  %v1202_v11 = vadd.f32 %v4643_v58, %v1186_v45  ;;  %v1172_v10 = vmul.f32 %v3281_v12, %v4534_v29  ;;  %v1371_v28 = vadd.f32 1e-06, %v1355_v25  ;;  %v1326_v7 = vpop.xlane.xlu1 %1325 }
 0x22e   : > { %v1328_v52 = vpop.xlane.xlu0 %1327  ;;  %v1173_v26 = vmul.f32 %v3283_v55, %v4537_v19  ;;  %3292 = vrsqrt.f32 %v1146_v2  ;;  %v1356_v44 = vmul.f32 0.0078125, %v1326_v7  ;;  %v1203_v50 = vadd.f32 %v4643_v58, %v1187_v34  ;;  %v5527_v34 = vld [vmem:[#allocation39_spill] sm:$0xff] }
 0x22f   : > { %v1214_v1 = vpack.c.bf16 %v1202_v11, %v1201_v53  ;;  %v1188_v61 = vmul.f32 %v4636_v49, %v1172_v10  ;;  %3294 = vrsqrt.f32 %v1371_v28  ;;  %v1357_v62 = vmul.f32 0.0078125, %v1328_v52 }
 0x230   : > { %v3285_v24 = vpop.eup %3284  ;;  %v1372_v31 = vadd.f32 1e-06, %v1356_v44  ;;  %v1189_v16 = vmul.f32 %v4636_v49, %v1173_v26 }
 0x231   : > { %v3287_v22 = vpop.eup %3286  ;;  %1222 = vst [vmem:[#allocation2 + $0x70] sm:$0xff] %v1214_v1  ;;  %v1204_v29 = vadd.f32 %v4643_v58, %v1188_v61  ;;  %v1174_v32 = vmul.f32 %v3285_v24, %v4544_v14  ;;  %v1373_v19 = vadd.f32 1e-06, %v1357_v62  ;;  %v1330_v5 = vpop.xlane.xlu1 %1329 }
 0x232   : > { %v1332_v41 = vpop.xlane.xlu0 %1331  ;;  %v1175_v21 = vmul.f32 %v3287_v22, %v4549_v42  ;;  %3296 = vrsqrt.f32 %v1372_v31  ;;  %v1358_v39 = vmul.f32 0.0078125, %v1330_v5  ;;  %v1205_v14 = vadd.f32 %v4643_v58, %v1189_v16 }
 0x233   : > { %v1215_v56 = vpack.c.bf16 %v1204_v29, %v1203_v50  ;;  %v1190_v0 = vmul.f32 %v4636_v49, %v1174_v32  ;;  %3298 = vrsqrt.f32 %v1373_v19  ;;  %v1359_v17 = vmul.f32 0.0078125, %v1332_v41 }
 0x234   : > { %v3289_v59 = vpop.eup %3288  ;;  %v1191_v9 = vmul.f32 %v4636_v49, %v1175_v21  ;;  %v1374_v18 = vadd.f32 1e-06, %v1358_v39 }
 0x235   : > { %v3291_v35 = vpop.eup %3290  ;;  %1223 = vst [vmem:[#allocation2 + $0x90] sm:$0xff] %v1215_v56  ;;  %v1206_v57 = vadd.f32 %v4643_v58, %v1190_v0  ;;  %v1176_v38 = vmul.f32 %v3289_v59, %v4556_v27  ;;  %v1375_v42 = vadd.f32 1e-06, %v1359_v17  ;;  %v1334_v8 = vpop.xlane.xlu1 %1333  ;;  %v5528_v56 = vld [vmem:[#allocation20_spill] sm:$0xff]  ;;  %v5529_v59 = vld [vmem:[#allocation21_spill] sm:$0xff] }
 0x236   : > { %v1336_v43 = vpop.xlane.xlu0 %1335  ;;  %v1177_v23 = vmul.f32 %v3291_v35, %v5525_v4  ;;  %3300 = vrsqrt.f32 %v1374_v18  ;;  %v1360_v46 = vmul.f32 0.0078125, %v1334_v8  ;;  %v1207_v36 = vadd.f32 %v4643_v58, %v1191_v9 }
 0x237   : > { %v1216_v40 = vpack.c.bf16 %v1206_v57, %v1205_v14  ;;  %v1192_v13 = vmul.f32 %v4636_v49, %v1176_v38  ;;  %3302 = vrsqrt.f32 %v1375_v42  ;;  %v1361_v15 = vmul.f32 0.0078125, %v1336_v43 }
 0x238   : > { %v3293_v37 = vpop.eup %3292  ;;  %v1376_v3 = vadd.f32 1e-06, %v1360_v46  ;;  %v1193_v33 = vmul.f32 %v4636_v49, %v1177_v23  ;;  %v5530_v23 = vld [vmem:[#allocation22_spill] sm:$0xff] }
 0x239   : > { %v3295_v60 = vpop.eup %3294  ;;  %1224 = vst [vmem:[#allocation2 + $0xb0] sm:$0xff] %v1216_v40  ;;  %v1208_v27 = vadd.f32 %v4643_v58, %v1192_v13  ;;  %v1178_v63 = vmul.f32 %v3293_v37, %v5526_v30  ;;  %v1377_v45 = vadd.f32 1e-06, %v1361_v15  ;;  %v1338_v25 = vpop.xlane.xlu1 %1337  ;;  %v5531_v40 = vld [vmem:[#allocation23_spill] sm:$0xff]  ;;  %v4844_v37 = vld [vmem:[%s5513_s0] ss:$0 sm:$0xff] }
 0x23a   : > { %v1340_v12 = vpop.xlane.xlu0 %1339  ;;  %v1403_v2 = vmul.f32 %v3295_v60, %v5527_v34  ;;  %3304 = vrsqrt.f32 %v1376_v3  ;;  %v1362_v55 = vmul.f32 0.0078125, %v1338_v25  ;;  %v1209_v44 = vadd.f32 %v4643_v58, %v1193_v33  ;;  %v5532_v30 = vld [vmem:[#allocation24_spill] sm:$0xff] }
 0x23b   : > { %v1217_v53 = vpack.c.bf16 %v1208_v27, %v1207_v36  ;;  %v1194_v11 = vmul.f32 %v4636_v49, %v1178_v63  ;;  %3306 = vrsqrt.f32 %v1377_v45  ;;  %v1363_v10 = vmul.f32 0.0078125, %v1340_v12  ;;  %v5533_v45 = vld [vmem:[#allocation25_spill] sm:$0xff] }
 0x23c   : > { %v3297_v28 = vpop.eup %3296  ;;  %v1419_v7 = vmul.f32 %v4636_v49, %v1403_v2  ;;  %v1378_v52 = vadd.f32 1e-06, %v1362_v55 }
 0x23d   : > { %v3299_v26 = vpop.eup %3298  ;;  %1225 = vst [vmem:[#allocation2 + $0xd0] sm:$0xff] %v1217_v53  ;;  %v1210_v1 = vadd.f32 %v4643_v58, %v1194_v11  ;;  %v1404_v61 = vmul.f32 %v3297_v28, %v4574_v54  ;;  %v1379_v62 = vadd.f32 1e-06, %v1363_v10  ;;  %v1342_v24 = vpop.xlane.xlu1 %1341  ;;  %v3327_v53 = vld [vmem:[%s5514_s3] ss:$0 sm:$0xff]  ;;  %v5534_v28 = vld [vmem:[#allocation26_spill] sm:$0xff] }
 0x23e   : > { %v1344_v50 = vpop.xlane.xlu0 %1343  ;;  %v1405_v31 = vmul.f32 %v3299_v26, %v4579_v48  ;;  %3308 = vrsqrt.f32 %v1378_v52  ;;  %v1364_v22 = vmul.f32 0.0078125, %v1342_v24  ;;  %v1435_v5 = vadd.f32 %v4643_v58, %v1419_v7  ;;  %v5535_v52 = vld [vmem:[#allocation40_spill] sm:$0xff] }
 0x23f   : > { %v1218_v29 = vpack.c.bf16 %v1210_v1, %v1209_v44  ;;  %v1420_v16 = vmul.f32 %v4636_v49, %v1404_v61  ;;  %3310 = vrsqrt.f32 %v1379_v62  ;;  %v1365_v32 = vmul.f32 0.0078125, %v1344_v50 }
 0x240   : > { %v3301_v19 = vpop.eup %3300  ;;  %v1380_v41 = vadd.f32 1e-06, %v1364_v22  ;;  %v1421_v39 = vmul.f32 %v4636_v49, %v1405_v31  ;;  %v5536_v31 = vld [vmem:[#allocation27_spill] sm:$0xff] }
 0x241   : > { %v3303_v21 = vpop.eup %3302  ;;  %1226 = vst [vmem:[#allocation2 + $0xf0] sm:$0xff] %v1218_v29  ;;  %v1436_v54 = vadd.f32 %v4643_v58, %v1420_v16  ;;  %v1406_v0 = vmul.f32 %v3301_v19, %v5528_v56  ;;  %v1381_v48 = vadd.f32 1e-06, %v1365_v32  ;;  %v1346_v17 = vpop.xlane.xlu1 %1345 }
 0x242   : > { %v1407_v9 = vmul.f32 %v3303_v21, %v5529_v59  ;;  %3312 = vrsqrt.f32 %v1380_v41  ;;  %v1366_v18 = vmul.f32 0.0078125, %v1346_v17  ;;  %v1437_v8 = vadd.f32 %v4643_v58, %v1421_v39 }
 0x243   : > { %v1451_v35 = vpack.c.bf16 %v1436_v54, %v1435_v5  ;;  %v1422_v14 = vmul.f32 %v4636_v49, %v1406_v0  ;;  %3314 = vrsqrt.f32 %v1381_v48 }
 0x244   : > { %v3305_v57 = vpop.eup %3304  ;;  %v1382_v38 = vadd.f32 1e-06, %v1366_v18  ;;  %v1423_v4 = vmul.f32 %v4636_v49, %v1407_v9 }
 0x245   : > { %v3307_v42 = vpop.eup %3306  ;;  %1459 = vst [vmem:[#allocation2 + $0x18] sm:$0xff] %v1451_v35  ;;  %v1438_v43 = vadd.f32 %v4643_v58, %v1422_v14  ;;  %v1408_v46 = vmul.f32 %v3305_v57, %v5530_v23 }
 0x246   : > { %v1409_v13 = vmul.f32 %v3307_v42, %v5531_v40  ;;  %3316 = vrsqrt.f32 %v1382_v38  ;;  %v1439_v27 = vadd.f32 %v4643_v58, %v1423_v4 }
 0x247   : > { %v1452_v15 = vpack.c.bf16 %v1438_v43, %v1437_v8  ;;  %v1424_v36 = vmul.f32 %v4844_v37, %v1408_v46 }
 0x248   : > { %v3309_v3 = vpop.eup %3308  ;;  %v1425_v33 = vmul.f32 %v4844_v37, %v1409_v13 }
 0x249   : > { %v3311_v60 = vpop.eup %3310  ;;  %1460 = vst [vmem:[#allocation2 + $0x38] sm:$0xff] %v1452_v15  ;;  %v1440_v49 = vadd.f32 %v4643_v58, %v1424_v36  ;;  %v1410_v63 = vmul.f32 %v3309_v3, %v5532_v30 }
 0x24a   : > { %v1411_v25 = vmul.f32 %v3311_v60, %v5533_v45  ;;  %v1441_v11 = vadd.f32 %v3327_v53, %v1425_v33 }
 0x24b   : > { %v1453_v12 = vpack.c.bf16 %v1440_v49, %v1439_v27  ;;  %v1426_v34 = vmul.f32 %v4844_v37, %v1410_v63 }
 0x24c   : > { %v3313_v2 = vpop.eup %3312  ;;  %v1427_v58 = vmul.f32 %v4844_v37, %v1411_v25 }
 0x24d   : > { %v3315_v55 = vpop.eup %3314  ;;  %1461 = vst [vmem:[#allocation2 + $0x58] sm:$0xff] %v1453_v12  ;;  %v1442_v10 = vadd.f32 %v3327_v53, %v1426_v34  ;;  %v1412_v7 = vmul.f32 %v3313_v2, %v5534_v28 }
 0x24e   : > { %v1413_v26 = vmul.f32 %v3315_v55, %v5535_v52  ;;  %v1443_v62 = vadd.f32 %v3327_v53, %v1427_v58 }
 0x24f   : > { %v1454_v44 = vpack.c.bf16 %v1442_v10, %v1441_v11  ;;  %v1428_v1 = vmul.f32 %v4844_v37, %v1412_v7 }
 0x250   : > { %v3317_v61 = vpop.eup %3316  ;;  %v1429_v50 = vmul.f32 %v4844_v37, %v1413_v26 }
 0x251   : > { %1462 = vst [vmem:[#allocation2 + $0x78] sm:$0xff] %v1454_v44  ;;  %v1444_v24 = vadd.f32 %v3327_v53, %v1428_v1  ;;  %v1414_v22 = vmul.f32 %v3317_v61, %v5536_v31 }
 0x252   : > { %v1445_v32 = vadd.f32 %v3327_v53, %v1429_v50 }
 0x253   : > { %v1455_v29 = vpack.c.bf16 %v1444_v24, %v1443_v62  ;;  %v1430_v16 = vmul.f32 %v4844_v37, %v1414_v22 }
 0x255   : > { %1463 = vst [vmem:[#allocation2 + $0x98] sm:$0xff] %v1455_v29  ;;  %v1446_v19 = vadd.f32 %v3327_v53, %v1430_v16 }
 0x257   : > { %v1456_v5 = vpack.c.bf16 %v1446_v19, %v1445_v32 }
 0x259   : > { %1464 = vst [vmem:[#allocation2 + $0xb8] sm:$0xff] %v1456_v5 }
 0x276   : > { %v1348_v41 = vpop.xlane.xlu0 %1347 }
 0x277   : > { %v1367_v21 = vmul.f32 0.0078125, %v1348_v41 }
 0x279   : > { %v1383_v54 = vadd.f32 1e-06, %v1367_v21  ;;  %v1350_v39 = vpop.xlane.xlu1 %1349 }
 0x27a   : > { %v1352_v56 = vpop.xlane.xlu0 %1351  ;;  %v1368_v0 = vmul.f32 0.0078125, %v1350_v39 }
 0x27b   : > { %3318 = vrsqrt.f32 %v1383_v54  ;;  %v1369_v48 = vmul.f32 0.0078125, %v1352_v56 }
 0x27c   : > { %v1384_v17 = vadd.f32 1e-06, %v1368_v0 }
 0x27d   : > { %v1385_v59 = vadd.f32 1e-06, %v1369_v48  ;;  %v1354_v9 = vpop.xlane.xlu1 %1353 }
 0x27e   : > { %3320 = vrsqrt.f32 %v1384_v17  ;;  %v1370_v18 = vmul.f32 0.0078125, %v1354_v9 }
 0x27f   : > { %3322 = vrsqrt.f32 %v1385_v59 }
 0x280   : > { %v1386_v35 = vadd.f32 1e-06, %v1370_v18 }
 0x282   : > { %3324 = vrsqrt.f32 %v1386_v35 }
 0x285   : > { %v3319_v14 = vpop.eup %3318 }
 0x286   : > { %v1415_v57 = vmul.f32 %v3319_v14, %v4670_v51 }
 0x288   : > { %v3321_v38 = vpop.eup %3320  ;;  %v1431_v8 = vmul.f32 %v4844_v37, %v1415_v57 }
 0x289   : > { %v3323_v42 = vpop.eup %3322  ;;  %v1416_v43 = vmul.f32 %v3321_v38, %v4678_v6 }
 0x28a   : > { %v1417_v4 = vmul.f32 %v3323_v42, %v4684_v47  ;;  %v1447_v40 = vadd.f32 %v3327_v53, %v1431_v8 }
 0x28b   : > { %v1432_v23 = vmul.f32 %v4844_v37, %v1416_v43 }
 0x28c   : > { %v3325_v46 = vpop.eup %3324  ;;  %v1433_v15 = vmul.f32 %v4844_v37, %v1417_v4 }
 0x28d   : > { %v1448_v13 = vadd.f32 %v3327_v53, %v1432_v23  ;;  %v1418_v36 = vmul.f32 %v3325_v46, %v4694_v20 }
 0x28e   : > { %v1449_v60 = vadd.f32 %v3327_v53, %v1433_v15 }
 0x28f   : > { %v1457_v3 = vpack.c.bf16 %v1448_v13, %v1447_v40  ;;  %v1434_v51 = vmul.f32 %v4844_v37, %v1418_v36 }
 0x291   : > { %1465 = vst [vmem:[#allocation2 + $0xd8] sm:$0xff] %v1457_v3  ;;  %v1450_v27 = vadd.f32 %v3327_v53, %v1434_v51 }
 0x293   : > { %v1458_v49 = vpack.c.bf16 %v1450_v27, %v1449_v60 }
 0x295   : > { %1466 = vst [vmem:[#allocation2 + $0xf8] sm:$0xff] %v1458_v49 }
 0x296 PF: > { %v3328_v6 = vld [vmem:[%s4057_s29 + $0x4] ss:$8 sps:$4 sm:$0xff]   ;;  %v3330_v47 = vld [vmem:[%s4057_s29] ss:$8 sps:$4 sm:$0xff]   ;;  %v3331_v20 = vld [vmem:[%s4057_s29 + $0x14] ss:$8 sps:$4 sm:$0xff]  }
 0x297   : > { %1918 = vmatprep.subr.bf16.mxu0 %v3328_v6  ;;  %v3333_v37 = vld [vmem:[%s4057_s29 + $0x10] ss:$8 sps:$4 sm:$0xff]   ;;  %v3334_v33 = vld [vmem:[%s4057_s29 + $0x24] ss:$8 sps:$4 sm:$0xff]   ;;  %v3336_v30 = vld [vmem:[%s4057_s29 + $0x20] ss:$8 sps:$4 sm:$0xff]  }
 0x298   : > { %1919 = vmatpush1.bf16.msra.mxu0 %v3330_v47  ;;  %v3337_v63 = vld [vmem:[%s4057_s29 + $0x34] ss:$8 sps:$4 sm:$0xff]   ;;  %v3339_v45 = vld [vmem:[%s4057_s29 + $0x30] ss:$8 sps:$4 sm:$0xff]   ;;  %v3340_v25 = vld [vmem:[%s4057_s29 + $0x44] ss:$8 sps:$4 sm:$0xff]  }
 0x299   : > { %1920 = vmatprep.subr.bf16.mxu0 %v3331_v20  ;;  %v4881_v12 = vld [vmem:[%s4057_s29 + $0x104] ss:$8 sps:$4 sm:$0xff]   ;;  %v4884_v34 = vld [vmem:[%s4057_s29 + $0x100] ss:$8 sps:$4 sm:$0xff]   ;;  %v4890_v55 = vld [vmem:[%s4057_s29 + $0x114] ss:$8 sps:$4 sm:$0xff]  }
 0x29a   : > { %v3342_v2 = vld [vmem:[%s4057_s29 + $0x40] ss:$8 sps:$4 sm:$0xff]   ;;  %2981 = vmatprep.subr.bf16.mxu1 %v4881_v12  ;;  %v4893_v53 = vld [vmem:[%s4057_s29 + $0x110] ss:$8 sps:$4 sm:$0xff]   ;;  %v3343_v11 = vld [vmem:[%s4057_s29 + $0x54] ss:$8 sps:$4 sm:$0xff]  }
 0x29b   : > { %2997 = vmatpush1.bf16.msra.mxu1 %v4884_v34  ;;  %v3345_v10 = vld [vmem:[%s4057_s29 + $0x50] ss:$8 sps:$4 sm:$0xff]   ;;  %v4899_v58 = vld [vmem:[%s4057_s29 + $0x124] ss:$8 sps:$4 sm:$0xff]   ;;  %v4904_v7 = vld [vmem:[%s4057_s29 + $0x120] ss:$8 sps:$4 sm:$0xff]  }
 0x29c   : > { %1921 = vmatpush1.bf16.msra.mxu0 %v3333_v37  ;;  %2982 = vmatprep.subr.bf16.mxu1 %v4890_v55  ;;  %v3346_v28 = vld [vmem:[%s4057_s29 + $0x64] ss:$8 sps:$4 sm:$0xff]   ;;  %v4908_v52 = vld [vmem:[%s4057_s29 + $0x134] ss:$8 sps:$4 sm:$0xff]   ;;  %v3348_v26 = vld [vmem:[%s4057_s29 + $0x60] ss:$8 sps:$4 sm:$0xff]  }
 0x29d   : > { %1922 = vmatprep.subr.bf16.mxu0 %v3334_v33  ;;  %v3349_v44 = vld [vmem:[%s4057_s29 + $0x74] ss:$8 sps:$4 sm:$0xff]   ;;  %v4914_v1 = vld [vmem:[%s4057_s29 + $0x130] ss:$8 sps:$4 sm:$0xff]   ;;  %v4918_v61 = vld [vmem:[%s4057_s29 + $0x144] ss:$8 sps:$4 sm:$0xff]  }
 0x29e   : > { %v3351_v62 = vld [vmem:[%s4057_s29 + $0x70] ss:$8 sps:$4 sm:$0xff]   ;;  %v3352_v24 = vld [vmem:[%s4057_s29 + $0x84] ss:$8 sps:$4 sm:$0xff]   ;;  %v4924_v50 = vld [vmem:[%s4057_s29 + $0x140] ss:$8 sps:$4 sm:$0xff]  }
 0x29f   : > { %2998 = vmatpush1.bf16.msra.mxu1 %v4893_v53  ;;  %v4928_v31 = vld [vmem:[%s4057_s29 + $0x154] ss:$8 sps:$4 sm:$0xff]   ;;  %v3354_v22 = vld [vmem:[%s4057_s29 + $0x80] ss:$8 sps:$4 sm:$0xff]   ;;  %v4933_v29 = vld [vmem:[%s4057_s29 + $0x150] ss:$8 sps:$4 sm:$0xff]  }
 0x2a0   : > { %1923 = vmatpush1.bf16.msra.mxu0 %v3336_v30  ;;  %2983 = vmatprep.subr.bf16.mxu1 %v4899_v58  ;;  %v1491_v16 = vld [vmem:[#allocation2 + $0x8] sm:$0xff]  ;;  %v3358_v32 = vld [vmem:[%s4057_s29 + $0x94] ss:$8 sps:$4 sm:$0xff]   ;;  %v3360_v5 = vld [vmem:[%s4057_s29 + $0x90] ss:$8 sps:$4 sm:$0xff]   ;;  %s5537_s13 = sld [smem:[#allocation14_spill]] }
 0x2a1   : > { %1924 = vmatprep.subr.bf16.mxu0 %v3337_v63  ;;  %v4938_v19 = vld [vmem:[%s4057_s29 + $0x164] ss:$8 sps:$4 sm:$0xff]   ;;  %1950 = vmatprep.mubr.bf16.mxu0 %v1491_v16  ;;  %v4944_v21 = vld [vmem:[%s4057_s29 + $0x160] ss:$8 sps:$4 sm:$0xff]   ;;  %v4948_v54 = vld [vmem:[%s4057_s29 + $0x174] ss:$8 sps:$4 sm:$0xff]  }
 0x2a2   : > { %v3364_v41 = vld [vmem:[%s4057_s29 + $0xa4] ss:$8 sps:$4 sm:$0xff]   ;;  %v3366_v39 = vld [vmem:[%s4057_s29 + $0xa0] ss:$8 sps:$4 sm:$0xff]   ;;  %v4953_v56 = vld [vmem:[%s4057_s29 + $0x170] ss:$8 sps:$4 sm:$0xff]  }
 0x2a3   : > { %2999 = vmatpush1.bf16.msra.mxu1 %v4904_v7  ;;  %v3370_v0 = vld [vmem:[%s4057_s29 + $0xb4] ss:$8 sps:$4 sm:$0xff]   ;;  %v4958_v48 = vld [vmem:[%s4057_s29 + $0x184] ss:$8 sps:$4 sm:$0xff]   ;;  %v3372_v17 = vld [vmem:[%s4057_s29 + $0xb0] ss:$8 sps:$4 sm:$0xff]  }
 0x2a4   : > { %1925 = vmatpush1.bf16.msra.mxu0 %v3339_v45  ;;  %2984 = vmatprep.subr.bf16.mxu1 %v4908_v52  ;;  %v3376_v59 = vld [vmem:[%s4057_s29 + $0xc4] ss:$8 sps:$4 sm:$0xff]   ;;  %v4964_v9 = vld [vmem:[%s4057_s29 + $0x180] ss:$8 sps:$4 sm:$0xff]   ;;  %v4968_v18 = vld [vmem:[%s4057_s29 + $0x194] ss:$8 sps:$4 sm:$0xff]  }
 0x2a5   : > { %1926 = vmatprep.subr.bf16.mxu0 %v3340_v25  ;;  %v1509_v35 = vld [vmem:[#allocation2 + $0x98] sm:$0xff]  ;;  %v3378_v14 = vld [vmem:[%s4057_s29 + $0xc0] ss:$8 sps:$4 sm:$0xff]   ;;  %v4978_v42 = vld [vmem:[%s4057_s29 + $0x1a4] ss:$8 sps:$4 sm:$0xff]   ;;  %s5538_s23 = sld [smem:[#allocation46_spill]] }
 0x2a6   : > { %v4973_v57 = vld [vmem:[%s4057_s29 + $0x190] ss:$8 sps:$4 sm:$0xff]   ;;  %v3382_v38 = vld [vmem:[%s4057_s29 + $0xd4] ss:$8 sps:$4 sm:$0xff]   ;;  %2103 = vmatprep.mubr.bf16.mxu1 %v1509_v35  ;;  %v4983_v43 = vld [vmem:[%s4057_s29 + $0x1a0] ss:$8 sps:$4 sm:$0xff]  }
 0x2a7   : > { %3000 = vmatpush1.bf16.msra.mxu1 %v4914_v1  ;;  %v3384_v8 = vld [vmem:[%s4057_s29 + $0xd0] ss:$8 sps:$4 sm:$0xff]   ;;  %v3388_v4 = vld [vmem:[%s4057_s29 + $0xe4] ss:$8 sps:$4 sm:$0xff]   ;;  %v4988_v23 = vld [vmem:[%s4057_s29 + $0x1b4] ss:$8 sps:$4 sm:$0xff]  }
 0x2a8   : > { %1927 = vmatpush1.bf16.msra.mxu0 %v3342_v2  ;;  %2985 = vmatprep.subr.bf16.mxu1 %v4918_v61  ;;  %v3390_v46 = vld [vmem:[%s4057_s29 + $0xe0] ss:$8 sps:$4 sm:$0xff]   ;;  %v4992_v40 = vld [vmem:[%s4057_s29 + $0x1b0] ss:$8 sps:$4 sm:$0xff]   ;;  %v3394_v13 = vld [vmem:[%s4057_s29 + $0xf4] ss:$8 sps:$4 sm:$0xff]  }
 0x2a9   : > { %1928 = vmatprep.subr.bf16.mxu0 %v3343_v11  ;;  %v4996_v15 = vld [vmem:[%s4057_s29 + $0x1c4] ss:$8 sps:$4 sm:$0xff]   ;;  %v3396_v36 = vld [vmem:[%s4057_s29 + $0xf0] ss:$8 sps:$4 sm:$0xff]   ;;  %v5002_v3 = vld [vmem:[%s4057_s29 + $0x1c0] ss:$8 sps:$4 sm:$0xff]  }
 0x2aa   : > { %v5005_v51 = vld [vmem:[%s4057_s29 + $0x1d4] ss:$8 sps:$4 sm:$0xff]   ;;  %v1490_v60 = vld [vmem:[#allocation2] sm:$0xff]  ;;  %v1495_v27 = vld [vmem:[#allocation2 + $0x28] sm:$0xff]  ;;  %s2916_s1 = sshll.u32 %s5537_s13, 11  ;;  %s2594_s17 = scalar_lea.sflag [#allocation5], %s4045_s10 }
 0x2ab   : > { %3001 = vmatpush1.bf16.msra.mxu1 %v4924_v50  ;;  %v5013_v49 = vld [vmem:[%s4057_s29 + $0x1d0] ss:$8 sps:$4 sm:$0xff]   ;;  %v5016_v6 = vld [vmem:[%s4057_s29 + $0x1e4] ss:$8 sps:$4 sm:$0xff]   ;;  %v5022_v47 = vld [vmem:[%s4057_s29 + $0x1e0] ss:$8 sps:$4 sm:$0xff]   ;;  %s5324_s8 = scalar_lea.hbm %s5538_s23, %s2916_s1 }
 0x2ac   : > { %1929 = vmatpush1.bf16.msra.mxu0 %v3345_v10  ;;  %2986 = vmatprep.subr.bf16.mxu1 %v4928_v31  ;;  %v5026_v20 = vld [vmem:[%s4057_s29 + $0x1f4] ss:$8 sps:$4 sm:$0xff]   ;;  %v1494_v37 = vld [vmem:[#allocation2 + $0x20] sm:$0xff]  ;;  %v1499_v33 = vld [vmem:[#allocation2 + $0x48] sm:$0xff]  ;;  %p5539_p11 = scmp.ne.s32.totalorder %s5464_s21, 0  ;;  %s3732_s15 = smov [#allocation9]  }
 0x2ad   : > { %1930 = vmatprep.subr.bf16.mxu0 %v3346_v28  ;;  %v5032_v30 = vld [vmem:[%s4057_s29 + $0x1f0] ss:$8 sps:$4 sm:$0xff]   ;;  %v1498_v25 = vld [vmem:[#allocation2 + $0x40] sm:$0xff]  ;;  %v1511_v28 = vld [vmem:[#allocation2 + $0xa8] sm:$0xff]  ;;  %s3598_s14 = sshll.u32 %s3732_s15, 4  ;;  %s3599_s14 = int_to_ptr.vmem [resolvable:$false] %s3598_s14 }
 0x2ae   : > { %v1508_v63 = vld [vmem:[#allocation2 + $0x90] sm:$0xff]  ;;  %v1513_v45 = vld [vmem:[#allocation2 + $0xb8] sm:$0xff]  ;;  %s3600_s16 = scalar_lea.vmem %s3599_s14, 4096 }
 0x2af   : > { %3002 = vmatpush1.bf16.msra.mxu1 %v4933_v29  ;;  %v1517_v2 = vld [vmem:[#allocation2 + $0xd8] sm:$0xff]  ;;  %v1516_v11 = vld [vmem:[#allocation2 + $0xd0] sm:$0xff] }
 0x2b0   : > { %1931 = vmatpush1.bf16.msra.mxu0 %v3348_v26  ;;  %2987 = vmatprep.subr.bf16.mxu1 %v4938_v19  ;;  %v1521_v10 = vld [vmem:[#allocation2 + $0xf8] sm:$0xff]  ;;  %v1515_v26 = vld [vmem:[#allocation2 + $0xc8] sm:$0xff]  ;;  %v3437_v35 = vld [vmem:[%s4071_s24 + $0x30] sm:$0xff]  }
 0x2b1   : > { %1932 = vmatprep.subr.bf16.mxu0 %v3349_v44  ;;  %v1514_v44 = vld [vmem:[#allocation2 + $0xc0] sm:$0xff]  ;;  %v1505_v16 = vld [vmem:[#allocation2 + $0x78] sm:$0xff] }
 0x2b3   : > { %3003 = vmatpush1.bf16.msra.mxu1 %v4944_v21 }
 0x2b4   : > { %1933 = vmatpush1.bf16.msra.mxu0 %v3351_v62  ;;  %2988 = vmatprep.subr.bf16.mxu1 %v4948_v54  ;;  %v1493_v62 = vld [vmem:[#allocation2 + $0x18] sm:$0xff] }
 0x2b5   : > { %1934 = vmatprep.subr.bf16.mxu0 %v3352_v24  ;;  %v1492_v24 = vld [vmem:[#allocation2 + $0x10] sm:$0xff] }
 0x2b7   : > { %3004 = vmatpush1.bf16.msra.mxu1 %v4953_v56 }
 0x2b8   : > { %1935 = vmatpush1.bf16.msra.mxu0 %v3354_v22  ;;  %2989 = vmatprep.subr.bf16.mxu1 %v4958_v48  ;;  %v1501_v22 = vld [vmem:[#allocation2 + $0x58] sm:$0xff] }
 0x2b9   : > { %1936 = vmatprep.subr.bf16.mxu0 %v3358_v32  ;;  %v1504_v32 = vld [vmem:[#allocation2 + $0x70] sm:$0xff] }
 0x2bb   : > { %3005 = vmatpush1.bf16.msra.mxu1 %v4964_v9 }
 0x2bc   : > { %1937 = vmatpush1.bf16.msra.mxu0 %v3360_v5  ;;  %2990 = vmatprep.subr.bf16.mxu1 %v4968_v18  ;;  %v3425_v5 = vld [vmem:[%s4071_s24] sm:$0xff]  }
 0x2bd   : > { %1938 = vmatprep.subr.bf16.mxu0 %v3364_v41  ;;  %v3426_v41 = vld [vmem:[%s4071_s24 + $0x48] sm:$0xff]  }
 0x2bf   : > { %3006 = vmatpush1.bf16.msra.mxu1 %v4973_v57 }
 0x2c0   : > { %1939 = vmatpush1.bf16.msra.mxu0 %v3366_v39  ;;  %2991 = vmatprep.subr.bf16.mxu1 %v4978_v42  ;;  %v3429_v39 = vld [vmem:[%s4071_s24 + $0x10] sm:$0xff]  }
 0x2c1   : > { %1940 = vmatprep.subr.bf16.mxu0 %v3370_v0  ;;  %v3431_v0 = vld [vmem:[%s4071_s24 + $0x18] sm:$0xff]  }
 0x2c3   : > { %3007 = vmatpush1.bf16.msra.mxu1 %v4983_v43 }
 0x2c4   : > { %1941 = vmatpush1.bf16.msra.mxu0 %v3372_v17  ;;  %2992 = vmatprep.subr.bf16.mxu1 %v4988_v23  ;;  %v3433_v17 = vld [vmem:[%s4071_s24 + $0x20] sm:$0xff]  }
 0x2c5   : > { %1942 = vmatprep.subr.bf16.mxu0 %v3376_v59  ;;  %v3434_v59 = vld [vmem:[%s4071_s24 + $0x68] sm:$0xff]  }
 0x2c7   : > { %3008 = vmatpush1.bf16.msra.mxu1 %v4992_v40 }
 0x2c8   : > { %1943 = vmatpush1.bf16.msra.mxu0 %v3378_v14  ;;  %2993 = vmatprep.subr.bf16.mxu1 %v4996_v15  ;;  %v3438_v14 = vld [vmem:[%s4071_s24 + $0x78] sm:$0xff]  }
 0x2c9   : > { %1944 = vmatprep.subr.bf16.mxu0 %v3382_v38 }
 0x2cb   : > { %3009 = vmatpush1.bf16.msra.mxu1 %v5002_v3 }
 0x2cc   : > { %1945 = vmatpush1.bf16.msra.mxu0 %v3384_v8  ;;  %2994 = vmatprep.subr.bf16.mxu1 %v5005_v51 }
 0x2cd   : > { %1946 = vmatprep.subr.bf16.mxu0 %v3388_v4  ;;  %v1588_v4 = vlaneseq }
 0x2cf   : > { %3010 = vmatpush1.bf16.msra.mxu1 %v5013_v49 }
 0x2d0   : > { %1947 = vmatpush1.bf16.msra.mxu0 %v3390_v46  ;;  %2995 = vmatprep.subr.bf16.mxu1 %v5016_v6 }
 0x2d1   : > { %1948 = vmatprep.subr.bf16.mxu0 %v3394_v13 }
 0x2d3   : > { %3011 = vmatpush1.bf16.msra.mxu1 %v5022_v47 }
 0x2d4   : > { %1949 = vmatpush1.bf16.msra.mxu0 %v3396_v36  ;;  %2996 = vmatprep.subr.bf16.mxu1 %v5026_v20 }
 0x2d5   : > { %2031 = vmatprep.subr.bf16.mxu0 %v4881_v12  ;;  %v1503_v12 = vld [vmem:[#allocation2 + $0x68] sm:$0xff] }
 0x2d7   : > { %1951 = vmatmul.mubr.bf16.vlgmr.msra.gmra.mrb[0].mxu0 %v1490_v60  ;;  %3012 = vmatpush1.bf16.msra.mxu1 %v5032_v30 }
 0x2d8   : > { %2032 = vmatpush1.bf16.msra.mxu0 %v4884_v34  ;;  %1960 = vmatprep.mubr.bf16.mxu0 %v1495_v27  ;;  %v1512_v34 = vld [vmem:[#allocation2 + $0xb0] sm:$0xff] }
 0x2d9   : > { %2033 = vmatprep.subr.bf16.mxu0 %v4890_v55  ;;  %v1502_v55 = vld [vmem:[#allocation2 + $0x60] sm:$0xff] }
 0x2da   : > { %2104 = vmatmul.mubr.bf16.vlgmr.msra.gmra.mrb[0].mxu1 %v1508_v63 }
 0x2db   : > { %2113 = vmatprep.mubr.bf16.mxu1 %v1513_v45 }
 0x2dc   : > { %2034 = vmatpush1.bf16.msra.mxu0 %v4893_v53  ;;  %v1507_v53 = vld [vmem:[#allocation2 + $0x88] sm:$0xff] }
 0x2dd   : > { %2035 = vmatprep.subr.bf16.mxu0 %v4899_v58  ;;  %v1506_v58 = vld [vmem:[#allocation2 + $0x80] sm:$0xff] }
 0x2df   : > { %1961 = vmatmul.mubr.bf16.gmra.mrb[4].mxu0 %v1494_v37 }
 0x2e0   : > { %2036 = vmatpush1.bf16.msra.mxu0 %v4904_v7  ;;  %1970 = vmatprep.mubr.bf16.mxu0 %v1499_v33  ;;  %v1520_v7 = vld [vmem:[#allocation2 + $0xf0] sm:$0xff] }
 0x2e1   : > { %2037 = vmatprep.subr.bf16.mxu0 %v4908_v52  ;;  %v1510_v52 = vld [vmem:[#allocation2 + $0xa0] sm:$0xff] }
 0x2e2   : > { %2114 = vmatmul.mubr.bf16.gmra.mrb[4].mxu1 %v1512_v34 }
 0x2e3   : > { %2123 = vmatprep.mubr.bf16.mxu1 %v1517_v2 }
 0x2e4   : > { %2038 = vmatpush1.bf16.msra.mxu0 %v4914_v1  ;;  %v1519_v1 = vld [vmem:[#allocation2 + $0xe8] sm:$0xff] }
 0x2e5   : > { %2039 = vmatprep.subr.bf16.mxu0 %v4918_v61  ;;  %v1518_v61 = vld [vmem:[#allocation2 + $0xe0] sm:$0xff] }
 0x2e7   : > { %1971 = vmatmul.mubr.bf16.gmra.mrb[8].mxu0 %v1498_v25 }
 0x2e8   : > { %2040 = vmatpush1.bf16.msra.mxu0 %v4924_v50  ;;  %1980 = vmatprep.mubr.bf16.mxu0 %v1503_v12  ;;  %v1497_v50 = vld [vmem:[#allocation2 + $0x38] sm:$0xff] }
 0x2e9   : > { %2041 = vmatprep.subr.bf16.mxu0 %v4928_v31  ;;  %v1496_v31 = vld [vmem:[#allocation2 + $0x30] sm:$0xff] }
 0x2ea   : > { %2124 = vmatmul.mubr.bf16.gmra.mrb[8].mxu1 %v1516_v11 }
 0x2eb   : > { %2133 = vmatprep.mubr.bf16.mxu1 %v1521_v10 }
 0x2ec   : > { %2042 = vmatpush1.bf16.msra.mxu0 %v4933_v29  ;;  %v1500_v29 = vld [vmem:[#allocation2 + $0x50] sm:$0xff] }
 0x2ed   : > { %2043 = vmatprep.subr.bf16.mxu0 %v4938_v19  ;;  %v3424_v19 = vld [vmem:[%s4071_s24 + $0x40] sm:$0xff]  }
 0x2ee   : > { %2917 = vmatprep.subr.bf16.mxu1 %v3424_v19 }
 0x2ef   : > { %1981 = vmatmul.mubr.bf16.gmra.mrb[12].mxu0 %v1502_v55  ;;  %2918 = vmatpush3.bf16.msra.mxu1 %v3425_v5 }
 0x2f0   : > { %2044 = vmatpush1.bf16.msra.mxu0 %v4944_v21  ;;  %1990 = vmatprep.mubr.bf16.mxu0 %v1507_v53  ;;  %v3427_v21 = vld [vmem:[%s4071_s24 + $0x8] sm:$0xff]  }
 0x2f1   : > { %2045 = vmatprep.subr.bf16.mxu0 %v4948_v54  ;;  %2919 = vmatprep.subr.bf16.mxu1 %v3426_v41  ;;  %v3428_v54 = vld [vmem:[%s4071_s24 + $0x50] sm:$0xff]  }
 0x2f2   : > { %2134 = vmatmul.mubr.bf16.gmra.mrb[12].mxu1 %v1520_v7 }
 0x2f3   : > { %2920 = vmatpush3.bf16.msra.mxu1 %v3427_v21 }
 0x2f4   : > { %2046 = vmatpush1.bf16.msra.mxu0 %v4953_v56  ;;  %2921 = vmatprep.subr.bf16.mxu1 %v3428_v54  ;;  %v3430_v56 = vld [vmem:[%s4071_s24 + $0x58] sm:$0xff]  }
 0x2f5   : > { %2047 = vmatprep.subr.bf16.mxu0 %v4958_v48  ;;  %v3432_v48 = vld [vmem:[%s4071_s24 + $0x60] sm:$0xff]  }
 0x2f7   : > { %1991 = vmatmul.mubr.bf16.gmra.mrb[16].mxu0 %v1506_v58  ;;  %2922 = vmatpush3.bf16.msra.mxu1 %v3429_v39 }
 0x2f8   : > { %2048 = vmatpush1.bf16.msra.mxu0 %v4964_v9  ;;  %2000 = vmatprep.mubr.bf16.mxu0 %v1511_v28  ;;  %v3435_v9 = vld [vmem:[%s4071_s24 + $0x28] sm:$0xff]  }
 0x2f9   : > { %2049 = vmatprep.subr.bf16.mxu0 %v4968_v18  ;;  %2923 = vmatprep.subr.bf16.mxu1 %v3430_v56  ;;  %v3436_v18 = vld [vmem:[%s4071_s24 + $0x70] sm:$0xff]  }
 0x2fb   : > { %2924 = vmatpush3.bf16.msra.mxu1 %v3431_v0 }
 0x2fc   : > { %2050 = vmatpush1.bf16.msra.mxu0 %v4973_v57  ;;  %2925 = vmatprep.subr.bf16.mxu1 %v3432_v48  ;;  %v3439_v57 = vld [vmem:[%s4071_s24 + $0x38] sm:$0xff]  }
 0x2fd   : > { %2051 = vmatprep.subr.bf16.mxu0 %v4978_v42 }
 0x2ff   : > { %2001 = vmatmul.mubr.bf16.gmra.mrb[20].mxu0 %v1510_v52  ;;  %2926 = vmatpush3.bf16.msra.mxu1 %v3433_v17 }
 0x300   : > { %2052 = vmatpush1.bf16.msra.mxu0 %v4983_v43  ;;  %2010 = vmatprep.mubr.bf16.mxu0 %v1515_v26 }
 0x301   : > { %2053 = vmatprep.subr.bf16.mxu0 %v4988_v23  ;;  %2927 = vmatprep.subr.bf16.mxu1 %v3434_v59  ;;  %v1589_v23 = vshrl.u32 %v1588_v4, 7 }
 0x303   : > { %2928 = vmatpush3.bf16.msra.mxu1 %v3435_v9  ;;  %v1590_v36 = vsub.s32 0, %v1589_v23 }
 0x304   : > { %2054 = vmatpush1.bf16.msra.mxu0 %v4992_v40  ;;  %2929 = vmatprep.subr.bf16.mxu1 %v3436_v18 }
 0x305   : > { %2055 = vmatprep.subr.bf16.mxu0 %v4996_v15 }
 0x307   : > { %2011 = vmatmul.mubr.bf16.gmra.mrb[24].mxu0 %v1514_v44  ;;  %2930 = vmatpush3.bf16.msra.mxu1 %v3437_v35 }
 0x308   : > { %2056 = vmatpush1.bf16.msra.mxu0 %v5002_v3  ;;  %2020 = vmatprep.mubr.bf16.mxu0 %v1519_v1  ;;  %v1586_v3 = vld [vmem:[%s480_s12] sm:$0x3]  ;;  %s2608_s12 = sshll.u32 %s4073_s19, 4  ;;  %s5326_s12 = int_to_ptr.vmem [resolvable:$true] %s2608_s12 }
 0x309   : > { %2057 = vmatprep.subr.bf16.mxu0 %v5005_v51  ;;  %2931 = vmatprep.subr.bf16.mxu1 %v3438_v14  ;;  %v1594_v51 = vsub.s32 1, %v1589_v23  ;;  %v5084_v60 = vrot.slane %v1586_v3, %v1590_v36  ;;  %s3594_s20 = scalar_lea.vmem %s5326_s12, 2048  ;;  %p3601_p5 = scmp.lt.s32.totalorder %s5326_s12, %s3599_s14 }
 0x30a   : > { %p3595_p13 = scmp.ne.s32.totalorder %s5326_s12, %s3594_s20  ;;  %p3602_p1 = scmp.lt.s32.totalorder %s3600_s16, %s3594_s20 }
 0x30b   : > { %2932 = vmatpush3.bf16.msra.mxu1 %v3439_v57 }
 0x30c   : > { %2058 = vmatpush1.bf16.msra.mxu0 %v5013_v49  ;;  %v5086_v49 = vrot.slane %v1586_v3, %v1594_v51  ;;  %p3596_p6 = pnand %p3595_p13, %p5539_p11  ;;  %p3603_p0 = por %p3602_p1, %p3601_p5 }
 0x30d   : > { %2059 = vmatprep.subr.bf16.mxu0 %v5016_v6 }
 0x30e   : > { %p3597_p10 = pneg %p3596_p6 }
 0x30f   : > { %2021 = vmatmul.mubr.bf16.gmra.mrb[28].mxu0 %v1518_v61 }
 0x310   : > { %2060 = vmatpush1.bf16.msra.mxu0 %v5022_v47  ;;  %2063 = vmatprep.mubr.bf16.mxu0 %v1493_v62  ;;  %p3604_p9 = pnand %p3603_p0, %p3597_p10 }
 0x311   : > { %2061 = vmatprep.subr.bf16.mxu0 %v5026_v20 }
 0x314   : > { %2062 = vmatpush1.bf16.msra.mxu0 %v5032_v30 }
 0x317   : > { %2064 = vmatmul.mubr.bf16.vlgmr.msra.gmra.mrb[0].mxu0 %v1492_v24 }
 0x318   : > { %2073 = vmatprep.mubr.bf16.mxu0 %v1497_v50 }
 0x31f   : > { %2074 = vmatmul.mubr.bf16.gmra.mrb[4].mxu0 %v1496_v31 }
 0x320   : > { %2083 = vmatprep.mubr.bf16.mxu0 %v1501_v22 }
 0x327   : > { %2084 = vmatmul.mubr.bf16.gmra.mrb[8].mxu0 %v1500_v29 }
 0x328   : > { %2093 = vmatprep.mubr.bf16.mxu0 %v1505_v16 }
 0x32f   : > { %2094 = vmatmul.mubr.bf16.gmra.mrb[12].mxu0 %v1504_v32 }
 0x3ad   : > { %v2105_v38 = vpop.f32.mrb[0].mxu1 }
 0x3ae   : > { %v2107_v42 = vpop.f32.mrb[1].mxu1 }
 0x3af   : > { %v2109_v8 = vpop.f32.mrb[2].mxu1 }
 0x3b0   : > { %v2111_v43 = vpop.f32.mrb[3].mxu1 }
 0x3b5   : > { %v2115_v46 = vpop.f32.mrb[4].mxu1 }
 0x3b6   : > { %v2117_v40 = vpop.f32.mrb[5].mxu1 }
 0x3b7   : > { %v2119_v13 = vpop.f32.mrb[6].mxu1 }
 0x3b8   : > { %v2121_v15 = vpop.f32.mrb[7].mxu1 }
 0x3bd   : > { %v2125_v27 = vpop.f32.mrb[8].mxu1 }
 0x3be   : > { %v5088_v6 = vpop.f32.mrb[9].mxu1 }
 0x3bf   : > { %v5090_v47 = vpop.f32.mrb[10].mxu1 }
 0x3c0   : > { %v5092_v37 = vpop.f32.mrb[11].mxu1 }
 0x3c5   : > { %v5098_v10 = vpop.f32.mrb[12].mxu1 }
 0x3c6   : > { %v5100_v7 = vpop.f32.mrb[13].mxu1 }
 0x3c7   : > { %v5102_v26 = vpop.f32.mrb[14].mxu1 }
 0x3c8   : > { %v5104_v61 = vpop.f32.mrb[15].mxu1 }
 0x3ca   : > { %v1992_v20 = vpop.f32.mrb[16].mxu0 }
 0x3cb   : > { %v1993_v33 = vadd.f32 %v1992_v20, %v5084_v60  ;;  %v1994_v30 = vpop.f32.mrb[17].mxu0 }
 0x3cc   : > { %v1995_v63 = vadd.f32 %v1994_v30, %v5086_v49  ;;  %v1996_v45 = vpop.f32.mrb[18].mxu0 }
 0x3cd   : > { %v1997_v25 = vadd.f32 %v1996_v45, %v5084_v60  ;;  %v2106_v12 = vadd.f32 %v2105_v38, %v1993_v33  ;;  %v1998_v34 = vpop.f32.mrb[19].mxu0 }
 0x3ce   : > { %v1999_v2 = vadd.f32 %v1998_v34, %v5086_v49  ;;  %v2108_v55 = vadd.f32 %v2107_v42, %v1995_v63 }
 0x3cf   : > { %v2192_v53 = vmul.f32 0.70710677, %v2106_v12  ;;  %v2110_v11 = vadd.f32 %v2109_v8, %v1997_v25  ;;  %v2160_v38 = vmul.f32 0.5, %v2106_v12 }
 0x3d0   : > { %v2193_v58 = vmul.f32 0.70710677, %v2108_v55  ;;  %v2112_v28 = vadd.f32 %v2111_v43, %v1999_v2  ;;  %v2161_v36 = vmul.f32 0.5, %v2108_v55 }
 0x3d1   : > { %3440 = verf.f32 %v2192_v53  ;;  %v2194_v52 = vmul.f32 0.70710677, %v2110_v11 }
 0x3d2   : > { %3442 = verf.f32 %v2193_v58  ;;  %v2195_v44 = vmul.f32 0.70710677, %v2112_v28  ;;  %v2002_v1 = vpop.f32.mrb[20].mxu0  ;;  %v2163_v3 = vmul.f32 0.5, %v2112_v28 }
 0x3d3   : > { %3444 = verf.f32 %v2194_v52  ;;  %v2003_v62 = vadd.f32 %v2002_v1, %v5084_v60  ;;  %v2004_v24 = vpop.f32.mrb[21].mxu0 }
 0x3d4   : > { %3446 = verf.f32 %v2195_v44  ;;  %v2005_v50 = vadd.f32 %v2004_v24, %v5086_v49  ;;  %v2006_v31 = vpop.f32.mrb[22].mxu0 }
 0x3d5   : > { %v2007_v22 = vadd.f32 %v2006_v31, %v5084_v60  ;;  %v2116_v29 = vadd.f32 %v2115_v46, %v2003_v62  ;;  %v2008_v16 = vpop.f32.mrb[23].mxu0  ;;  %v2162_v46 = vmul.f32 0.5, %v2110_v11 }
 0x3d6   : > { %v2009_v32 = vadd.f32 %v2008_v16, %v5086_v49  ;;  %v5110_v19 = vadd.f32 %v2117_v40, %v2005_v50 }
 0x3d7   : > { %v2196_v5 = vmul.f32 0.70710677, %v2116_v29  ;;  %v2120_v41 = vadd.f32 %v2119_v13, %v2007_v22  ;;  %v2164_v52 = vmul.f32 0.5, %v2116_v29 }
 0x3d8   : > { %v2197_v21 = vmul.f32 0.70710677, %v5110_v19  ;;  %v5113_v54 = vadd.f32 %v2121_v15, %v2009_v32 }
 0x3d9   : > { %3448 = verf.f32 %v2196_v5  ;;  %v2198_v39 = vmul.f32 0.70710677, %v2120_v41  ;;  %v2166_v32 = vmul.f32 0.5, %v2120_v41 }
 0x3da   : > { %3450 = verf.f32 %v2197_v21  ;;  %v2199_v56 = vmul.f32 0.70710677, %v5113_v54  ;;  %v2012_v0 = vpop.f32.mrb[24].mxu0 }
 0x3db   : > { %v3441_v48 = vpop.eup %3440  ;;  %3452 = verf.f32 %v2198_v39  ;;  %v2013_v17 = vadd.f32 %v2012_v0, %v5084_v60  ;;  %v2014_v59 = vpop.f32.mrb[25].mxu0  ;;  %v2165_v39 = vmul.f32 0.5, %v5110_v19 }
 0x3dc   : > { %v3443_v9 = vpop.eup %3442  ;;  %v2256_v18 = vadd.f32 1.0, %v3441_v48  ;;  %3454 = verf.f32 %v2199_v56  ;;  %v2015_v35 = vadd.f32 %v2014_v59, %v5086_v49  ;;  %v2016_v14 = vpop.f32.mrb[26].mxu0  ;;  %v2167_v56 = vmul.f32 0.5, %v5113_v54 }
 0x3dd   : > { %v3445_v57 = vpop.eup %3444  ;;  %v2257_v42 = vadd.f32 1.0, %v3443_v9  ;;  %v2017_v8 = vadd.f32 %v2016_v14, %v5084_v60  ;;  %v5119_v43 = vadd.f32 %v2125_v27, %v2013_v17  ;;  %v2018_v4 = vpop.f32.mrb[27].mxu0 }
 0x3de   : > { %v3447_v23 = vpop.eup %3446  ;;  %v2258_v40 = vadd.f32 1.0, %v3445_v57  ;;  %v2019_v13 = vadd.f32 %v2018_v4, %v5086_v49  ;;  %v5123_v15 = vadd.f32 %v5088_v6, %v2015_v35  ;;  %v5126_v33 = vmul.f32 %v2256_v18, %v2160_v38 }
 0x3df   : > { %v2259_v51 = vadd.f32 1.0, %v3447_v23  ;;  %v2200_v20 = vmul.f32 0.70710677, %v5119_v43  ;;  %v5132_v63 = vadd.f32 %v5090_v47, %v2017_v8  ;;  %v5134_v45 = vmul.f32 %v2257_v42, %v2161_v36 }
 0x3e0   : > { %v5128_v30 = vmul.f32 %v2258_v40, %v2162_v46  ;;  %v2201_v27 = vmul.f32 0.70710677, %v5123_v15  ;;  %v5139_v6 = vadd.f32 %v5092_v37, %v2019_v13  ;;  %v2168_v23 = vmul.f32 0.5, %v5119_v43 }
 0x3e1   : > { %v5136_v25 = vmul.f32 %v2259_v51, %v2163_v3  ;;  %3456 = verf.f32 %v2200_v20  ;;  %v2202_v12 = vmul.f32 0.70710677, %v5132_v63  ;;  %v2169_v3 = vmul.f32 0.5, %v5123_v15 }
 0x3e2   : > { %3458 = verf.f32 %v2201_v27  ;;  %v2022_v34 = vpop.f32.mrb[28].mxu0  ;;  %v2312_v2 = vpack.c.bf16 %v5128_v30, %v5126_v33  ;;  %v2203_v53 = vmul.f32 0.70710677, %v5139_v6 }
 0x3e3   : > { %v3449_v55 = vpop.eup %3448  ;;  %v2023_v47 = vadd.f32 %v2022_v34, %v5084_v60  ;;  %v2024_v11 = vpop.f32.mrb[29].mxu0  ;;  %v2313_v58 = vpack.c.bf16 %v5136_v25, %v5134_v45  ;;  %3460 = verf.f32 %v2202_v12  ;;  %v2170_v34 = vmul.f32 0.5, %v5132_v63  ;;  %v2545_v45 = vld [vmem:[%s4073_s19] sm:$0xff] }
 0x3e4   : > { %v3451_v28 = vpop.eup %3450  ;;  %v2260_v37 = vadd.f32 1.0, %v3449_v55  ;;  %v2025_v44 = vadd.f32 %v2024_v11, %v5086_v49  ;;  %v2026_v1 = vpop.f32.mrb[30].mxu0  ;;  %3462 = verf.f32 %v2203_v53  ;;  %v2171_v53 = vmul.f32 0.5, %v5139_v6 }
 0x3e5   : > { %v3453_v62 = vpop.eup %3452  ;;  %v2261_v24 = vadd.f32 1.0, %v3451_v28  ;;  %v2027_v50 = vadd.f32 %v2026_v1, %v5084_v60  ;;  %v5151_v31 = vadd.f32 %v5098_v10, %v2023_v47  ;;  %v2028_v22 = vpop.f32.mrb[31].mxu0 }
 0x3e6   : > { %v3455_v16 = vpop.eup %3454  ;;  %v2262_v5 = vadd.f32 1.0, %v3453_v62  ;;  %v2029_v21 = vadd.f32 %v2028_v22, %v5086_v49  ;;  %v5155_v29 = vadd.f32 %v5100_v7, %v2025_v44  ;;  %v5160_v17 = vmul.f32 %v2260_v37, %v2164_v52 }
 0x3e7   : > { %v2263_v0 = vadd.f32 1.0, %v3455_v16  ;;  %v2204_v48 = vmul.f32 0.70710677, %v5151_v31  ;;  %v5166_v41 = vadd.f32 %v5102_v26, %v2027_v50  ;;  %v5168_v9 = vmul.f32 %v2261_v24, %v2165_v39 }
 0x3e8   : > { %v5162_v10 = vmul.f32 %v2262_v5, %v2166_v32  ;;  %v2205_v59 = vmul.f32 0.70710677, %v5155_v29  ;;  %v2142_v19 = vadd.f32 %v5104_v61, %v2029_v21 }
 0x3e9   : > { %v5170_v7 = vmul.f32 %v2263_v0, %v2167_v56  ;;  %3464 = verf.f32 %v2204_v48  ;;  %v2206_v54 = vmul.f32 0.70710677, %v5166_v41  ;;  %v2172_v48 = vmul.f32 0.5, %v5151_v31 }
 0x3ea   : > { %3466 = verf.f32 %v2205_v59  ;;  %v2065_v18 = vpop.f32.mrb[0].mxu0  ;;  %v2314_v35 = vpack.c.bf16 %v5162_v10, %v5160_v17  ;;  %v2207_v57 = vmul.f32 0.70710677, %v2142_v19  ;;  %v2546_v17 = vld [vmem:[%s4073_s19 + $0x8] sm:$0xff] }
 0x3eb   : > { %v3457_v14 = vpop.eup %3456  ;;  %v5177_v38 = vadd.f32 %v2065_v18, %v5084_v60  ;;  %v2067_v26 = vpop.f32.mrb[1].mxu0  ;;  %v2315_v42 = vpack.c.bf16 %v5170_v7, %v5168_v9  ;;  %3468 = verf.f32 %v2206_v54 }
 0x3ec   : > { %v3459_v8 = vpop.eup %3458  ;;  %v5182_v61 = vadd.f32 %v2067_v26, %v5086_v49  ;;  %v2069_v4 = vpop.f32.mrb[2].mxu0  ;;  %v2264_v46 = vadd.f32 1.0, %v3457_v14  ;;  %3470 = verf.f32 %v2207_v57  ;;  %v2173_v57 = vmul.f32 0.5, %v5155_v29 }
 0x3ed   : > { %v2176_v40 = vmul.f32 0.70710677, %v5177_v38  ;;  %v2071_v13 = vpop.f32.mrb[3].mxu0  ;;  %v3461_v36 = vpop.eup %3460  ;;  %v2265_v51 = vadd.f32 1.0, %v3459_v8  ;;  %v5189_v27 = vadd.f32 %v2069_v4, %v5084_v60  ;;  %v2174_v26 = vmul.f32 0.5, %v5166_v41 }
 0x3ee   : > { %v2177_v20 = vmul.f32 0.70710677, %v5182_v61  ;;  %v3463_v12 = vpop.eup %3462  ;;  %v2266_v55 = vadd.f32 1.0, %v3461_v36  ;;  %v5193_v43 = vadd.f32 %v2071_v13, %v5086_v49  ;;  %v5197_v11 = vmul.f32 %v2264_v46, %v2168_v23 }
 0x3ef   : > { %3472 = verf.f32 %v2176_v40  ;;  %v2267_v47 = vadd.f32 1.0, %v3463_v12  ;;  %v2178_v15 = vmul.f32 0.70710677, %v5189_v27  ;;  %v5202_v37 = vmul.f32 %v2265_v51, %v2169_v3 }
 0x3f0   : > { %3474 = verf.f32 %v2177_v20  ;;  %v5199_v28 = vmul.f32 %v2266_v55, %v2170_v34  ;;  %v2179_v52 = vmul.f32 0.70710677, %v5193_v43  ;;  %v2175_v4 = vmul.f32 0.5, %v2142_v19 }
 0x3f1   : > { %v5204_v63 = vmul.f32 %v2267_v47, %v2171_v53  ;;  %3476 = verf.f32 %v2178_v15  ;;  %v2144_v53 = vmul.f32 0.5, %v5177_v38 }
 0x3f2   : > { %v2075_v44 = vpop.f32.mrb[4].mxu0  ;;  %3478 = verf.f32 %v2179_v52  ;;  %v2316_v24 = vpack.c.bf16 %v5199_v28, %v5197_v11  ;;  %v2547_v11 = vld [vmem:[%s4073_s19 + $0x10] sm:$0xff] }
 0x3f3   : > { %v3465_v1 = vpop.eup %3464  ;;  %v5207_v6 = vadd.f32 %v2075_v44, %v5084_v60  ;;  %v2077_v62 = vpop.f32.mrb[5].mxu0  ;;  %v2317_v32 = vpack.c.bf16 %v5204_v63, %v5202_v37 }
 0x3f4   : > { %v3467_v50 = vpop.eup %3466  ;;  %v5212_v22 = vadd.f32 %v2077_v62, %v5086_v49  ;;  %v2079_v16 = vpop.f32.mrb[6].mxu0  ;;  %v2268_v5 = vadd.f32 1.0, %v3465_v1  ;;  %v2145_v62 = vmul.f32 0.5, %v5182_v61 }
 0x3f5   : > { %v2180_v21 = vmul.f32 0.70710677, %v5207_v6  ;;  %v5218_v39 = vadd.f32 %v2079_v16, %v5084_v60  ;;  %v2081_v56 = vpop.f32.mrb[7].mxu0  ;;  %v3469_v0 = vpop.eup %3468  ;;  %v2269_v59 = vadd.f32 1.0, %v3467_v50  ;;  %v2146_v50 = vmul.f32 0.5, %v5189_v27 }
 0x3f6   : > { %v2181_v54 = vmul.f32 0.70710677, %v5212_v22  ;;  %v5223_v18 = vadd.f32 %v2081_v56, %v5086_v49  ;;  %v3471_v14 = vpop.eup %3470  ;;  %v2270_v8 = vadd.f32 1.0, %v3469_v0  ;;  %v5228_v31 = vmul.f32 %v2268_v5, %v2172_v48 }
 0x3f7   : > { %3480 = verf.f32 %v2180_v21  ;;  %v2271_v23 = vadd.f32 1.0, %v3471_v14  ;;  %v2182_v46 = vmul.f32 0.70710677, %v5218_v39  ;;  %v5233_v51 = vmul.f32 %v2269_v59, %v2173_v57 }
 0x3f8   : > { %3482 = verf.f32 %v2181_v54  ;;  %v5230_v13 = vmul.f32 %v2270_v8, %v2174_v26  ;;  %v2183_v36 = vmul.f32 0.70710677, %v5223_v18  ;;  %v2147_v56 = vmul.f32 0.5, %v5193_v43 }
 0x3f9   : > { %v3473_v40 = vpop.eup %3472  ;;  %v5235_v29 = vmul.f32 %v2271_v23, %v2175_v4  ;;  %3484 = verf.f32 %v2182_v46 }
 0x3fa   : > { %v3475_v3 = vpop.eup %3474  ;;  %v2085_v41 = vpop.f32.mrb[8].mxu0  ;;  %v2240_v20 = vadd.f32 1.0, %v3473_v40  ;;  %3486 = verf.f32 %v2183_v36  ;;  %v2318_v34 = vpack.c.bf16 %v5230_v13, %v5228_v31 }
 0x3fb   : > { %v5238_v19 = vadd.f32 %v2085_v41, %v5084_v60  ;;  %v2087_v12 = vpop.f32.mrb[9].mxu0  ;;  %v3477_v55 = vpop.eup %3476  ;;  %v2241_v47 = vadd.f32 1.0, %v3475_v3  ;;  %v2319_v44 = vpack.c.bf16 %v5235_v29, %v5233_v51 }
 0x3fc   : > { %v5244_v15 = vadd.f32 %v2087_v12, %v5086_v49  ;;  %v2089_v52 = vpop.f32.mrb[10].mxu0  ;;  %v3479_v1 = vpop.eup %3478  ;;  %v2242_v16 = vadd.f32 1.0, %v3477_v55  ;;  %v2272_v59 = vmul.f32 %v2240_v20, %v2144_v53  ;;  %v2148_v20 = vmul.f32 0.5, %v5207_v6 }
 0x3fd   : > { %v2184_v5 = vmul.f32 0.70710677, %v5238_v19  ;;  %v2091_v21 = vpop.f32.mrb[11].mxu0  ;;  %v2243_v38 = vadd.f32 1.0, %v3479_v1  ;;  %v3023_v48 = vadd.f32 %v2089_v52, %v5084_v60  ;;  %v2273_v57 = vmul.f32 %v2241_v47, %v2145_v62 }
 0x3fe   : > { %v2185_v0 = vmul.f32 0.70710677, %v5244_v15  ;;  %v2274_v54 = vmul.f32 %v2242_v16, %v2146_v50  ;;  %v3024_v14 = vadd.f32 %v2091_v21, %v5086_v49  ;;  %v2149_v52 = vmul.f32 0.5, %v5212_v22 }
 0x3ff   : > { %3488 = verf.f32 %v2184_v5  ;;  %v2275_v61 = vmul.f32 %v2243_v38, %v2147_v56  ;;  %v2186_v27 = vmul.f32 0.70710677, %v3023_v48  ;;  %v2150_v1 = vmul.f32 0.5, %v5218_v39 }
 0x400   : > { %3490 = verf.f32 %v2185_v0  ;;  %v2304_v8 = vpack.c.bf16 %v2274_v54, %v2272_v59  ;;  %v2187_v4 = vmul.f32 0.70710677, %v3024_v14  ;;  %v2151_v5 = vmul.f32 0.5, %v5223_v18 }
 0x401   : > { %v3481_v26 = vpop.eup %3480  ;;  %3492 = verf.f32 %v2186_v27  ;;  %v2305_v46 = vpack.c.bf16 %v2275_v61, %v2273_v57 }
 0x402   : > { %v3483_v23 = vpop.eup %3482  ;;  %v2095_v43 = vpop.f32.mrb[12].mxu0  ;;  %v2244_v40 = vadd.f32 1.0, %v3481_v26  ;;  %3494 = verf.f32 %v2187_v4 }
 0x403   : > { %v3025_v36 = vadd.f32 %v2095_v43, %v5084_v60  ;;  %v2097_v3 = vpop.f32.mrb[13].mxu0  ;;  %v3485_v41 = vpop.eup %3484  ;;  %v2245_v12 = vadd.f32 1.0, %v3483_v23  ;;  %2480 = vmatprep.mubr.bf16.mxu1 %v2305_v46  ;;  %v2152_v43 = vmul.f32 0.5, %v5238_v19  ;;  %v2154_v46 = vmul.f32 0.5, %v3023_v48 }
 0x404   : > { %v3026_v55 = vadd.f32 %v2097_v3, %v5086_v49  ;;  %v2099_v53 = vpop.f32.mrb[14].mxu0  ;;  %v3487_v47 = vpop.eup %3486  ;;  %v2246_v62 = vadd.f32 1.0, %v3485_v41  ;;  %2481 = vmatmul.mubr.bf16.vlgmr.msra.gmra.mrb[16].mxu1 %v2304_v8  ;;  %v2276_v38 = vmul.f32 %v2244_v40, %v2148_v20  ;;  %v2153_v40 = vmul.f32 0.5, %v5244_v15 }
 0x405   : > { %v2188_v50 = vmul.f32 0.70710677, %v3025_v36  ;;  %v2101_v16 = vpop.f32.mrb[15].mxu0  ;;  %v2247_v21 = vadd.f32 1.0, %v3487_v47  ;;  %v3027_v6 = vadd.f32 %v2099_v53, %v5084_v60  ;;  %v2277_v54 = vmul.f32 %v2245_v12, %v2149_v52 }
 0x406   : > { %v2189_v56 = vmul.f32 0.70710677, %v3026_v55  ;;  %v2278_v0 = vmul.f32 %v2246_v62, %v2150_v1  ;;  %v3028_v59 = vadd.f32 %v2101_v16, %v5086_v49  ;;  %v2155_v3 = vmul.f32 0.5, %v3024_v14 }
 0x407   : > { %3496 = verf.f32 %v2188_v50  ;;  %v2279_v57 = vmul.f32 %v2247_v21, %v2151_v5  ;;  %v2190_v22 = vmul.f32 0.70710677, %v3027_v6  ;;  %v2156_v48 = vmul.f32 0.5, %v3025_v36 }
 0x408   : > { %3498 = verf.f32 %v2189_v56  ;;  %v2191_v61 = vmul.f32 0.70710677, %v3028_v59  ;;  %v2306_v27 = vpack.c.bf16 %v2278_v0, %v2276_v38  ;;  %v2158_v56 = vmul.f32 0.5, %v3027_v6  ;;  %v2550_v6 = vld [vmem:[%s4073_s19 + $0x28] sm:$0xff] }
 0x409   : > { %v3489_v39 = vpop.eup %3488  ;;  %3500 = verf.f32 %v2190_v22  ;;  %v2307_v8 = vpack.c.bf16 %v2279_v57, %v2277_v54  ;;  %v2157_v15 = vmul.f32 0.5, %v3026_v55  ;;  %v2159_v14 = vmul.f32 0.5, %v3028_v59 }
 0x40a   : > { %v3491_v26 = vpop.eup %3490  ;;  %v2248_v18 = vadd.f32 1.0, %v3489_v39  ;;  %3502 = verf.f32 %v2191_v61 }
 0x40b   : > { %v3493_v4 = vpop.eup %3492  ;;  %v2249_v23 = vadd.f32 1.0, %v3491_v26  ;;  %2488 = vmatprep.mubr.bf16.mxu1 %v2307_v8 }
 0x40c   : > { %v3495_v60 = vpop.eup %3494  ;;  %v2250_v49 = vadd.f32 1.0, %v3493_v4  ;;  %2489 = vmatmul.mubr.bf16.gmra.mrb[20].mxu1 %v2306_v27  ;;  %v2280_v20 = vmul.f32 %v2248_v18, %v2152_v43 }
 0x40d   : > { %v2251_v41 = vadd.f32 1.0, %v3495_v60  ;;  %v2281_v53 = vmul.f32 %v2249_v23, %v2153_v40  ;;  %v2551_v23 = vld [vmem:[%s4073_s19 + $0x30] sm:$0xff] }
 0x40e   : > { %v2282_v12 = vmul.f32 %v2250_v49, %v2154_v46  ;;  %v2552_v49 = vld [vmem:[%s4073_s19 + $0x38] sm:$0xff] }
 0x40f   : > { %v2283_v47 = vmul.f32 %v2251_v41, %v2155_v3 }
 0x410   : > { %v2308_v1 = vpack.c.bf16 %v2282_v12, %v2280_v20 }
 0x411   : > { %v3497_v52 = vpop.eup %3496  ;;  %v2309_v50 = vpack.c.bf16 %v2283_v47, %v2281_v53  ;;  %v2553_v53 = vld [vmem:[%s4073_s19 + $0x40] sm:$0xff] }
 0x412   : > { %v3499_v62 = vpop.eup %3498  ;;  %v2252_v16 = vadd.f32 1.0, %v3497_v52 }
 0x413   : > { %v3501_v5 = vpop.eup %3500  ;;  %v2253_v21 = vadd.f32 1.0, %v3499_v62  ;;  %2496 = vmatprep.mubr.bf16.mxu1 %v2309_v50  ;;  %v2554_v62 = vld [vmem:[%s4073_s19 + $0x48] sm:$0xff] }
 0x414   : > { %v3503_v19 = vpop.eup %3502  ;;  %v2254_v38 = vadd.f32 1.0, %v3501_v5  ;;  %2497 = vmatmul.mubr.bf16.gmra.mrb[24].mxu1 %v2308_v1  ;;  %v2284_v54 = vmul.f32 %v2252_v16, %v2156_v48  ;;  %v2555_v48 = vld [vmem:[%s4073_s19 + $0x50] sm:$0xff] }
 0x415   : > { %v2255_v0 = vadd.f32 1.0, %v3503_v19  ;;  %v2285_v22 = vmul.f32 %v2253_v21, %v2157_v15 }
 0x416   : > { %v2286_v57 = vmul.f32 %v2254_v38, %v2158_v56 }
 0x417   : > { %v2287_v39 = vmul.f32 %v2255_v0, %v2159_v14  ;;  %v2556_v14 = vld [vmem:[%s4073_s19 + $0x58] sm:$0xff] }
 0x418   : > { %v2310_v61 = vpack.c.bf16 %v2286_v57, %v2284_v54 }
 0x419   : > { %v2311_v27 = vpack.c.bf16 %v2287_v39, %v2285_v22 }
 0x41b   : > { %2504 = vmatprep.mubr.bf16.mxu1 %v2311_v27 }
 0x41c   : > { %2505 = vmatmul.mubr.bf16.gmra.mrb[28].mxu1 %v2310_v61  ;;  %v2557_v61 = vld [vmem:[%s4073_s19 + $0x60] sm:$0xff] }
 0x41d   : > { %2512 = vmatprep.mubr.bf16.mxu1 %v2313_v58 }
 0x424   : > { %2513 = vmatmul.mubr.bf16.gmra.mrb[32].mxu1 %v2312_v2 }
 0x425   : > { %2520 = vmatprep.mubr.bf16.mxu1 %v2315_v42 }
 0x42c   : > { %2521 = vmatmul.mubr.bf16.gmra.mrb[36].mxu1 %v2314_v35 }
 0x42d   : > { %2528 = vmatprep.mubr.bf16.mxu1 %v2317_v32 }
 0x434   : > { %2529 = vmatmul.mubr.bf16.gmra.mrb[40].mxu1 %v2316_v24  ;;  %v2548_v24 = vld [vmem:[%s4073_s19 + $0x18] sm:$0xff] }
 0x435   : > { %2536 = vmatprep.mubr.bf16.mxu1 %v2319_v44 }
 0x43c   : > { %2537 = vmatmul.mubr.bf16.gmra.mrb[44].mxu1 %v2318_v34  ;;  %v2549_v34 = vld [vmem:[%s4073_s19 + $0x20] sm:$0xff] }
 0x4d7   : > { %v2933_v33 = vpop.f32.mrb[16].mxu1 }
 0x4d8   : > { %v2934_v30 = vpop.f32.mrb[17].mxu1 }
 0x4d9   : > { %v2935_v25 = vadd.f32 %v2934_v30, %v2933_v33  ;;  %v2936_v2 = vpop.f32.mrb[18].mxu1 }
 0x4da   : > { %v2937_v58 = vpop.f32.mrb[19].mxu1 }
 0x4db   : > { %v2561_v10 = vadd.f32 %v2935_v25, %v2545_v45  ;;  %v2938_v9 = vadd.f32 %v2937_v58, %v2936_v2  ;;  %v2558_v45 = vld [vmem:[%s4073_s19 + $0x68] sm:$0xff] }
 0x4dd   : > { %2577 = vst [vmem:[%s4073_s19] sm:$0xff] %v2561_v10  ;;  %v2562_v7 = vadd.f32 %v2938_v9, %v2546_v17  ;;  %v2559_v9 = vld [vmem:[%s4073_s19 + $0x70] sm:$0xff] }
 0x4df   : > { %2578 = vst [vmem:[%s4073_s19 + $0x8] sm:$0xff] %v2562_v7  ;;  %v2939_v35 = vpop.f32.mrb[20].mxu1 }
 0x4e0   : > { %v2940_v42 = vpop.f32.mrb[21].mxu1 }
 0x4e1   : > { %v2941_v28 = vadd.f32 %v2940_v42, %v2939_v35  ;;  %v2942_v37 = vpop.f32.mrb[22].mxu1 }
 0x4e2   : > { %v2943_v63 = vpop.f32.mrb[23].mxu1 }
 0x4e3   : > { %v2563_v32 = vadd.f32 %v2941_v28, %v2547_v11  ;;  %v2944_v31 = vadd.f32 %v2943_v63, %v2942_v37  ;;  %v2560_v11 = vld [vmem:[%s4073_s19 + $0x78] sm:$0xff] }
 0x4e5   : > { %2579 = vst [vmem:[%s4073_s19 + $0x10] sm:$0xff] %v2563_v32  ;;  %v2564_v13 = vadd.f32 %v2944_v31, %v2548_v24 }
 0x4e7   : > { %2580 = vst [vmem:[%s4073_s19 + $0x18] sm:$0xff] %v2564_v13  ;;  %v2945_v51 = vpop.f32.mrb[24].mxu1 }
 0x4e8   : > { %v2946_v29 = vpop.f32.mrb[25].mxu1 }
 0x4e9   : > { %v2947_v44 = vadd.f32 %v2946_v29, %v2945_v51  ;;  %v2948_v36 = vpop.f32.mrb[26].mxu1 }
 0x4ea   : > { %v2949_v55 = vpop.f32.mrb[27].mxu1 }
 0x4eb   : > { %v2565_v59 = vadd.f32 %v2947_v44, %v2549_v34  ;;  %v2950_v26 = vadd.f32 %v2949_v55, %v2948_v36 }
 0x4ed   : > { %2581 = vst [vmem:[%s4073_s19 + $0x20] sm:$0xff] %v2565_v59  ;;  %v2566_v8 = vadd.f32 %v2950_v26, %v2550_v6 }
 0x4ef   : > { %2582 = vst [vmem:[%s4073_s19 + $0x28] sm:$0xff] %v2566_v8  ;;  %v2951_v18 = vpop.f32.mrb[28].mxu1 }
 0x4f0   : > { %v2952_v4 = vpop.f32.mrb[29].mxu1 }
 0x4f1   : > { %v2953_v60 = vadd.f32 %v2952_v4, %v2951_v18  ;;  %v2954_v43 = vpop.f32.mrb[30].mxu1 }
 0x4f2   : > { %v2955_v46 = vpop.f32.mrb[31].mxu1 }
 0x4f3   : > { %v2567_v40 = vadd.f32 %v2953_v60, %v2551_v23  ;;  %v2956_v3 = vadd.f32 %v2955_v46, %v2954_v43 }
 0x4f5   : > { %2583 = vst [vmem:[%s4073_s19 + $0x30] sm:$0xff] %v2567_v40  ;;  %v2568_v41 = vadd.f32 %v2956_v3, %v2552_v49 }
 0x4f7   : > { %2584 = vst [vmem:[%s4073_s19 + $0x38] sm:$0xff] %v2568_v41  ;;  %v2957_v20 = vpop.f32.mrb[32].mxu1 }
 0x4f8   : > { %v2958_v12 = vpop.f32.mrb[33].mxu1 }
 0x4f9   : > { %v2959_v47 = vadd.f32 %v2958_v12, %v2957_v20  ;;  %v2960_v52 = vpop.f32.mrb[34].mxu1 }
 0x4fa   : > { %v2961_v1 = vpop.f32.mrb[35].mxu1 }
 0x4fb   : > { %v2569_v50 = vadd.f32 %v2959_v47, %v2553_v53  ;;  %v2962_v16 = vadd.f32 %v2961_v1, %v2960_v52 }
 0x4fd   : > { %2585 = vst [vmem:[%s4073_s19 + $0x40] sm:$0xff] %v2569_v50  ;;  %v2570_v5 = vadd.f32 %v2962_v16, %v2554_v62 }
 0x4ff   : > { %2586 = vst [vmem:[%s4073_s19 + $0x48] sm:$0xff] %v2570_v5  ;;  %v2963_v21 = vpop.f32.mrb[36].mxu1 }
 0x500   : > { %v2964_v19 = vpop.f32.mrb[37].mxu1 }
 0x501   : > { %v2965_v56 = vadd.f32 %v2964_v19, %v2963_v21  ;;  %v2966_v38 = vpop.f32.mrb[38].mxu1 }
 0x502   : > { %v2967_v15 = vpop.f32.mrb[39].mxu1 }
 0x503   : > { %v2571_v0 = vadd.f32 %v2965_v56, %v2555_v48  ;;  %v2968_v54 = vadd.f32 %v2967_v15, %v2966_v38 }
 0x505   : > { %2587 = vst [vmem:[%s4073_s19 + $0x50] sm:$0xff] %v2571_v0  ;;  %v2572_v57 = vadd.f32 %v2968_v54, %v2556_v14 }
 0x507   : > { %2588 = vst [vmem:[%s4073_s19 + $0x58] sm:$0xff] %v2572_v57  ;;  %v2969_v22 = vpop.f32.mrb[40].mxu1 }
 0x508   : > { %v2970_v39 = vpop.f32.mrb[41].mxu1 }
 0x509   : > { %v2971_v27 = vadd.f32 %v2970_v39, %v2969_v22  ;;  %v2972_v33 = vpop.f32.mrb[42].mxu1 }
 0x50a   : > { %v2973_v30 = vpop.f32.mrb[43].mxu1 }
 0x50b   : > { %v2573_v25 = vadd.f32 %v2971_v27, %v2557_v61  ;;  %v2974_v2 = vadd.f32 %v2973_v30, %v2972_v33 }
 0x50d   : > { %2589 = vst [vmem:[%s4073_s19 + $0x60] sm:$0xff] %v2573_v25  ;;  %v2574_v58 = vadd.f32 %v2974_v2, %v2558_v45 }
 0x50f   : > { %2590 = vst [vmem:[%s4073_s19 + $0x68] sm:$0xff] %v2574_v58  ;;  %v2975_v17 = vpop.f32.mrb[44].mxu1 }
 0x510   : > { %v2976_v10 = vpop.f32.mrb[45].mxu1 }
 0x511   : > { %v2977_v7 = vadd.f32 %v2976_v10, %v2975_v17  ;;  %v2978_v35 = vpop.f32.mrb[46].mxu1 }
 0x512   : > { %v2979_v42 = vpop.f32.mrb[47].mxu1 }
 0x513   : > { %v2575_v28 = vadd.f32 %v2977_v7, %v2559_v9  ;;  %v2980_v37 = vadd.f32 %v2979_v42, %v2978_v35 }
 0x515   : > { %2591 = vst [vmem:[%s4073_s19 + $0x70] sm:$0xff] %v2575_v28  ;;  %v2576_v63 = vadd.f32 %v2980_v37, %v2560_v11 }
 0x517   : > { %2592 = vst [vmem:[%s4073_s19 + $0x78] sm:$0xff] %v2576_v63 }
 0x518   : > { %3607 = shalt.err (!%p3604_p9)
}
 0x519   : > { %s3608_s19 = scalar_lea.hbm %s5324_s8, 2048  ;;  %s3612_s18 = scalar_lea.hbm %s5538_s23, 4096 }
 0x51a   : > { %p3609_p2 = scmp.ne.s32.totalorder %s5324_s8, %s3608_s19  ;;  %p3613_p7 = scmp.lt.u32.totalorder %s5324_s8, %s5538_s23 }
 0x51b   : > { %p3614_p8 = scmp.lt.u32.totalorder %s3612_s18, %s3608_s19  ;;  %p3616_p13 = scmp.lt.u32.totalorder %s3608_s19, %s5324_s8 }
 0x51c   : > { %p3610_p3 = pnand %p3609_p2, %p5539_p11 }
 0x51d   : > { %p3615_p12 = por %p3614_p8, %p3613_p7 }
 0x51e   : > { %p3611_p4 = pneg %p3610_p3 }
 0x51f   : > { %p3617_p6 = por %p3616_p13, %p3615_p12 }
 0x521   : > { %p3618_p10 = pnand %p3617_p6, %p3611_p4 }
 0x523   : > { %3621 = shalt.err (!%p3618_p10)
}
 0x524   : > { %s3733_s13 = smov 128   ;;  %s3734_s1 = smov 8  }
 0x525   : > { %3083 = dma.vmem_to_hbm [thread:$0]  (%p5539_p11), %s5326_s12, 2048, %s5324_s8, %s2594_s17, %s3733_s13, %s3733_s13, %s3734_s1  }
 0x526 PF: > { %p3100_p5 = scmp.ge.s32.totalorder %s3720_s11, 2  ;;  %s2623_s24 = sand.u32 1, %s3692_s27  }
 0x527   : > { %p5540_p1 = scmp.ne.s32.totalorder %s5466_s6, 0  ;;  %s2624_s30 = scalar_lea.sflag [#allocation5], %s2623_s24 }
 0x529   : > { %p3096_p0 = pnand %p3100_p5, %p5540_p1 }
 0x52b   : > { %3675 = dma.done.wait (!%p3096_p0), %s2624_s30, 2048  }
 0x52c   : > { %3677 = vsyncadd (!%p3096_p0), %s2624_s30, 4294965248  ;;  %s26_s11 = sadd.s32 1, %s3720_s11   ;;  %s5541_s20 = sld [smem:[#allocation17_spill]] }
 0x52d   : > { %p23_p9 = scmp.ge.s32.totalorder %s26_s11, 6   ;;  %s5542_s21 = sld [smem:[#allocation13_spill]] }
 0x52e   : > { %s5543_s29 = sld [smem:[#allocation19_spill]]  ;;  %s5544_s8 = sld [smem:[#allocation15_spill]] }
 0x52f   : > { %s5545_s10 = sld [smem:[#allocation16_spill]]  ;;  %s5546_s12 = sld [smem:[#allocation18_spill]] }
 0x530   : > { %s5547_s24 = smov %s3684_s25  ;;  %s5548_s25 = smov %s3688_s26 }
 0x531   : > { %s5550_s27 = smov %s3696_s28  ;;  %s5552_s30 = smov %s3712_s9 }
 0x532   : > { %s5549_s26 = smov %s5541_s20  ;;  %25 = sbr.rel (!%p23_p9) target bundleno = 18 (0x12), region = 133 }
 0x533   : > { %s5551_s28 = smov %s5542_s21 }
 0x535   : > { %s5553_s9 = smov %s5545_s10  ;;  %s5554_s10 = smov %s5546_s12 }
 0x539   :  { %2629 = vsyncpa [#allocation4], 1 }
 0x53a   :  { %2631 = vsyncpa [#allocation4 + $0x1], 1 }
 0x53b   :  { %2632 = vsyncpa [#allocation7], 1 }
 0x53c   :  { %2634 = vsyncpa [#allocation7 + $0x1], 1 }
 0x53d   :  { %2635 = vsyncpa [#allocation5], 1 }
 0x53e   :  { %2637 = vsyncpa [#allocation5 + $0x1], 1 }

</bundles_post_ra>
